<compile_context>
chip_gen: v7x
topology: tpu7x:2x2x1
jax: 0.10.0
libtpu: 0.0.40
codegen_flags: <defaults>
</compile_context>

<pallas_src>
import functools

import jax
import jax.numpy as jnp
from jax import lax
from jax.experimental import pallas as pl
from jax.experimental.pallas import tpu as pltpu


def _sam_kernel(x_ref, ximg_ref, w1_ref, b1_ref, w2_ref, b2_ref, w3_ref, b3_ref,
                x1_ref, img_ref, xpad_ref, imgpad_ref, *, H, W, C):
    """Fused SAM forward for one batch element.

    x_ref    : (1, H, W, C)    feature input (NHWC)
    ximg_ref : (1, H, W, 3)    image input   (NHWC)
    w1_ref   : (3, 3, C, C)    conv1 weights (HWIO)
    w2_ref   : (3, 3, C, 3)    conv2 weights (HWIO)
    w3_ref   : (3, 3, 3, C)    conv3 weights (HWIO)
    b*_ref   : (1, Cout)       biases
    x1_ref   : (1, H, W, C)    output 1  (x1 * x2 + x)
    img_ref  : (1, H, W, 3)    output 2  (img)
    xpad_ref   scratch : (H+2, W+2, C)  zero-halo'd copy of x
    imgpad_ref scratch : (H+2, W+2, 3)  zero-halo'd copy of img
    """
    HW = H * W
    f32 = jnp.float32

    # ---- zero only the 1-pixel halo of the padded scratches ------------------
    # The interior is fully overwritten every grid step, so there is no
    # cross-step (or cross-core) state: correct under "parallel" semantics.
    def zero_border(ref, ch):
        zr = jnp.zeros((1, W + 2, ch), f32)
        zc = jnp.zeros((H + 2, 1, ch), f32)
        ref[pl.ds(0, 1), :, :] = zr
        ref[pl.ds(H + 1, 1), :, :] = zr
        ref[:, pl.ds(0, 1), :] = zc
        ref[:, pl.ds(W + 1, 1), :] = zc

    zero_border(xpad_ref, C)
    zero_border(imgpad_ref, 3)

    # ---- build the padded input in VMEM (no wrapper-side jnp.pad) ------------
    x = x_ref[0]                                            # (H, W, C)
    xpad_ref[pl.ds(1, H), pl.ds(1, W), :] = x.astype(f32)

    # ---- 3x3 "SAME" conv as 9 accumulated whole-image matmuls ---------------
    def conv3x3(src_pad_ref, w_ref, cin, cout):
        acc = jnp.zeros((HW, cout), f32)
        for kh in range(3):                                 # statically unrolled
            for kw in range(3):
                patch = src_pad_ref[pl.ds(kh, H), pl.ds(kw, W), :]   # (H, W, cin)
                acc = acc + jnp.dot(patch.reshape(HW, cin), w_ref[kh, kw],
                                    preferred_element_type=f32)      # MXU, M=H*W
        return acc

    b1 = b1_ref[...]                                        # (1, C)
    b2 = b2_ref[...]                                        # (1, 3)
    b3 = b3_ref[...]                                        # (1, C)

    # x1 = conv1(x)
    x1 = conv3x3(xpad_ref, w1_ref, C, C) + b1               # (HW, C)

    # img = conv2(x) + x_img
    img = conv3x3(xpad_ref, w2_ref, C, 3) + b2 + ximg_ref[0].reshape(HW, 3)
    img_hw3 = img.reshape(H, W, 3)
    img_ref[0] = img_hw3.astype(img_ref.dtype)              # bulk store
    imgpad_ref[pl.ds(1, H), pl.ds(1, W), :] = img_hw3       # halo'd copy for conv3

    # x2 = sigmoid(conv3(img))
    a3 = conv3x3(imgpad_ref, w3_ref, 3, C) + b3             # (HW, C)
    x2 = 1.0 / (1.0 + jnp.exp(-a3))                         # EUP exp + VPU

    out = x1 * x2 + x.reshape(HW, C)
    x1_ref[0] = out.reshape(H, W, C).astype(x1_ref.dtype)   # bulk store


def sam_forward(x_nhwc, ximg_nhwc, params):
    N, H, W, C = x_nhwc.shape
    assert ximg_nhwc.shape == (N, H, W, 3)
    # In-kernel (H, W, c) <-> (H*W, c) reshapes stay layout-preserving when the
    # second-minor dim is a multiple of the 8-sublane tiling.
    assert W % 8 == 0, "W must be a multiple of 8 for this kernel"

    kernel = functools.partial(_sam_kernel, H=H, W=W, C=C)

    x1, img = pl.pallas_call(
        kernel,
        out_shape=(jax.ShapeDtypeStruct((N, H, W, C), jnp.float32),
                   jax.ShapeDtypeStruct((N, H, W, 3), jnp.float32)),
        grid=(N,),
        in_specs=[
            pl.BlockSpec((1, H, W, C), lambda n: (n, 0, 0, 0)),
            pl.BlockSpec((1, H, W, 3), lambda n: (n, 0, 0, 0)),
            pl.BlockSpec((3, 3, C, C), lambda n: (0, 0, 0, 0)),
            pl.BlockSpec((1, C), lambda n: (0, 0)),
            pl.BlockSpec((3, 3, C, 3), lambda n: (0, 0, 0, 0)),
            pl.BlockSpec((1, 3), lambda n: (0, 0)),
            pl.BlockSpec((3, 3, 3, C), lambda n: (0, 0, 0, 0)),
            pl.BlockSpec((1, C), lambda n: (0, 0)),
        ],
        out_specs=(
            pl.BlockSpec((1, H, W, C), lambda n: (n, 0, 0, 0)),
            pl.BlockSpec((1, H, W, 3), lambda n: (n, 0, 0, 0)),
        ),
        scratch_shapes=[
            pltpu.VMEM((H + 2, W + 2, C), jnp.float32),
            pltpu.VMEM((H + 2, W + 2, 3), jnp.float32),
        ],
        compiler_params=pltpu.CompilerParams(
            dimension_semantics=("parallel",),      # batch elems are independent
            vmem_limit_bytes=32 * 1024 * 1024,      # whole-image blocks on v5e
        ),
    )(x_nhwc, ximg_nhwc,
      params["w1"], params["b1"], params["w2"], params["b2"],
      params["w3"], params["b3"])
    return x1, img


def init_params(key, nf):
    ks = jax.random.split(key, 6)
    s = 0.1
    return dict(
        w1=jax.random.normal(ks[0], (3, 3, nf, nf), jnp.float32) * s,
        b1=jax.random.normal(ks[1], (1, nf), jnp.float32) * s,
        w2=jax.random.normal(ks[2], (3, 3, nf, 3), jnp.float32) * s,
        b2=jax.random.normal(ks[3], (1, 3), jnp.float32) * s,
        w3=jax.random.normal(ks[4], (3, 3, 3, nf), jnp.float32) * s,
        b3=jax.random.normal(ks[5], (1, nf), jnp.float32) * s,
    )


def reference_forward(x_nhwc, ximg_nhwc, p):
    """Pure-JAX reference of the PyTorch SAM.forward (NHWC)."""
    dn = ("NHWC", "HWIO", "NHWC")
    conv = lambda x, w: lax.conv_general_dilated(x, w, (1, 1), "SAME",
                                                 dimension_numbers=dn)
    x1 = conv(x_nhwc, p["w1"]) + p["b1"]
    img = conv(x_nhwc, p["w2"]) + p["b2"] + ximg_nhwc
    x2 = jax.nn.sigmoid(conv(img, p["w3"]) + p["b3"])
    return x1 * x2 + x_nhwc, img


if __name__ == "__main__":
    key = jax.random.PRNGKey(0)
    kx, ki, kp = jax.random.split(key, 3)

    N, C, H, W = 2, 8, 16, 16
    # PyTorch-style NCHW inputs, transposed to the kernel's NHWC layout.
    x_nchw = jax.random.normal(kx, (N, C, H, W), jnp.float32)
    ximg_nchw = jax.random.normal(ki, (N, 3, H, W), jnp.float32)
    x_nhwc = jnp.transpose(x_nchw, (0, 2, 3, 1))
    ximg_nhwc = jnp.transpose(ximg_nchw, (0, 2, 3, 1))

    params = init_params(kp, C)

    x1, img = sam_forward(x_nhwc, ximg_nhwc, params)
    jax.block_until_ready((x1, img))

    r1, rimg = reference_forward(x_nhwc, ximg_nhwc, params)
    ok = bool(jnp.allclose(x1, r1, atol=1e-3, rtol=1e-3)) and \
         bool(jnp.allclose(img, rimg, atol=1e-3, rtol=1e-3))
    if not ok:
        e1 = float(jnp.max(jnp.abs(x1 - r1)))
        e2 = float(jnp.max(jnp.abs(img - rimg)))
        raise AssertionError(f"Pallas output mismatch: x1 err={e1}, img err={e2}")

    print("KERNEL_OK")
</pallas_src>

<mosaic_0001>
module attributes {stable_mosaic.version = 11 : i64} {
  func.func @_sam_kernel(%arg0: i32, %arg1: memref<1x16x16x8xf32, #tpu.memory_space<vmem>>, %arg2: memref<1x16x16x3xf32, #tpu.memory_space<vmem>>, %arg3: memref<3x3x8x8xf32, #tpu.memory_space<vmem>>, %arg4: memref<1x8xf32, #tpu.memory_space<vmem>>, %arg5: memref<3x3x8x3xf32, #tpu.memory_space<vmem>>, %arg6: memref<1x3xf32, #tpu.memory_space<vmem>>, %arg7: memref<3x3x3x8xf32, #tpu.memory_space<vmem>>, %arg8: memref<1x8xf32, #tpu.memory_space<vmem>>, %arg9: memref<1x16x16x8xf32, #tpu.memory_space<vmem>>, %arg10: memref<1x16x16x3xf32, #tpu.memory_space<vmem>>, %arg11: memref<18x18x8xf32, #tpu.memory_space<vmem>>, %arg12: memref<18x18x3xf32, #tpu.memory_space<vmem>>) attributes {dimension_semantics = [#tpu.dimension_semantics<parallel>], iteration_bounds = array<i64: 2>, scalar_prefetch = 0 : i64, scratch_operands = 2 : i64, tpu.core_type = #tpu.core_type<tc>, window_params = [{transform_indices = @transform_0, window_bounds = array<i64: 1, 16, 16, 8>}, {transform_indices = @transform_1, window_bounds = array<i64: 1, 16, 16, 3>}, {pipeline_mode = #tpu.pipeline_mode<synchronous>, transform_indices = @transform_2, window_bounds = array<i64: 3, 3, 8, 8>}, {pipeline_mode = #tpu.pipeline_mode<synchronous>, transform_indices = @transform_3, window_bounds = array<i64: 1, 8>}, {pipeline_mode = #tpu.pipeline_mode<synchronous>, transform_indices = @transform_4, window_bounds = array<i64: 3, 3, 8, 3>}, {pipeline_mode = #tpu.pipeline_mode<synchronous>, transform_indices = @transform_5, window_bounds = array<i64: 1, 3>}, {pipeline_mode = #tpu.pipeline_mode<synchronous>, transform_indices = @transform_6, window_bounds = array<i64: 3, 3, 3, 8>}, {pipeline_mode = #tpu.pipeline_mode<synchronous>, transform_indices = @transform_7, window_bounds = array<i64: 1, 8>}, {transform_indices = @transform_8, window_bounds = array<i64: 1, 16, 16, 8>}, {transform_indices = @transform_9, window_bounds = array<i64: 1, 16, 16, 3>}]} {
    %cst = arith.constant 0.000000e+00 : f32
    %0 = vector.broadcast %cst : f32 to vector<1x18x8xf32>
    %cst_0 = arith.constant 0.000000e+00 : f32
    %1 = vector.broadcast %cst_0 : f32 to vector<18x1x8xf32>
    %c0 = arith.constant 0 : index
    %c0_1 = arith.constant 0 : index
    %c0_2 = arith.constant 0 : index
    %2 = vector.load %arg11[%c0, %c0_1, %c0_2] : memref<18x18x8xf32, #tpu.memory_space<vmem>>, vector<1x18x8xf32>
    tpu.vector_store %arg11[%c0, %c0_1, %c0_2], %0 {strides = array<i32>} : memref<18x18x8xf32, #tpu.memory_space<vmem>>, vector<1x18x8xf32>,
    %c17 = arith.constant 17 : index
    %c0_3 = arith.constant 0 : index
    %c0_4 = arith.constant 0 : index
    %3 = vector.load %arg11[%c17, %c0_3, %c0_4] : memref<18x18x8xf32, #tpu.memory_space<vmem>>, vector<1x18x8xf32>
    tpu.vector_store %arg11[%c17, %c0_3, %c0_4], %0 {strides = array<i32>} : memref<18x18x8xf32, #tpu.memory_space<vmem>>, vector<1x18x8xf32>,
    %c0_5 = arith.constant 0 : index
    %c0_6 = arith.constant 0 : index
    %c0_7 = arith.constant 0 : index
    %4 = vector.load %arg11[%c0_5, %c0_6, %c0_7] : memref<18x18x8xf32, #tpu.memory_space<vmem>>, vector<18x1x8xf32>
    tpu.vector_store %arg11[%c0_5, %c0_6, %c0_7], %1 {strides = array<i32>} : memref<18x18x8xf32, #tpu.memory_space<vmem>>, vector<18x1x8xf32>,
    %c0_8 = arith.constant 0 : index
    %c17_9 = arith.constant 17 : index
    %c0_10 = arith.constant 0 : index
    %5 = vector.load %arg11[%c0_8, %c17_9, %c0_10] : memref<18x18x8xf32, #tpu.memory_space<vmem>>, vector<18x1x8xf32>
    tpu.vector_store %arg11[%c0_8, %c17_9, %c0_10], %1 {strides = array<i32>} : memref<18x18x8xf32, #tpu.memory_space<vmem>>, vector<18x1x8xf32>,
    %cst_11 = arith.constant 0.000000e+00 : f32
    %6 = vector.broadcast %cst_11 : f32 to vector<1x18x3xf32>
    %cst_12 = arith.constant 0.000000e+00 : f32
    %7 = vector.broadcast %cst_12 : f32 to vector<18x1x3xf32>
    %c0_13 = arith.constant 0 : index
    %c0_14 = arith.constant 0 : index
    %c0_15 = arith.constant 0 : index
    %8 = vector.load %arg12[%c0_13, %c0_14, %c0_15] : memref<18x18x3xf32, #tpu.memory_space<vmem>>, vector<1x18x3xf32>
    tpu.vector_store %arg12[%c0_13, %c0_14, %c0_15], %6 {strides = array<i32>} : memref<18x18x3xf32, #tpu.memory_space<vmem>>, vector<1x18x3xf32>,
    %c17_16 = arith.constant 17 : index
    %c0_17 = arith.constant 0 : index
    %c0_18 = arith.constant 0 : index
    %9 = vector.load %arg12[%c17_16, %c0_17, %c0_18] : memref<18x18x3xf32, #tpu.memory_space<vmem>>, vector<1x18x3xf32>
    tpu.vector_store %arg12[%c17_16, %c0_17, %c0_18], %6 {strides = array<i32>} : memref<18x18x3xf32, #tpu.memory_space<vmem>>, vector<1x18x3xf32>,
    %c0_19 = arith.constant 0 : index
    %c0_20 = arith.constant 0 : index
    %c0_21 = arith.constant 0 : index
    %10 = vector.load %arg12[%c0_19, %c0_20, %c0_21] : memref<18x18x3xf32, #tpu.memory_space<vmem>>, vector<18x1x3xf32>
    tpu.vector_store %arg12[%c0_19, %c0_20, %c0_21], %7 {strides = array<i32>} : memref<18x18x3xf32, #tpu.memory_space<vmem>>, vector<18x1x3xf32>,
    %c0_22 = arith.constant 0 : index
    %c17_23 = arith.constant 17 : index
    %c0_24 = arith.constant 0 : index
    %11 = vector.load %arg12[%c0_22, %c17_23, %c0_24] : memref<18x18x3xf32, #tpu.memory_space<vmem>>, vector<18x1x3xf32>
    tpu.vector_store %arg12[%c0_22, %c17_23, %c0_24], %7 {strides = array<i32>} : memref<18x18x3xf32, #tpu.memory_space<vmem>>, vector<18x1x3xf32>,
    %c0_25 = arith.constant 0 : index
    %c0_26 = arith.constant 0 : index
    %c0_27 = arith.constant 0 : index
    %c0_28 = arith.constant 0 : index
    %12 = vector.load %arg1[%c0_25, %c0_26, %c0_27, %c0_28] : memref<1x16x16x8xf32, #tpu.memory_space<vmem>>, vector<1x16x16x8xf32>
    %13 = vector.shape_cast %12 : vector<1x16x16x8xf32> to vector<16x16x8xf32>
    %c1 = arith.constant 1 : index
    %c1_29 = arith.constant 1 : index
    %c0_30 = arith.constant 0 : index
    %14 = vector.load %arg11[%c1, %c1_29, %c0_30] : memref<18x18x8xf32, #tpu.memory_space<vmem>>, vector<16x16x8xf32>
    tpu.vector_store %arg11[%c1, %c1_29, %c0_30], %13 {strides = array<i32>} : memref<18x18x8xf32, #tpu.memory_space<vmem>>, vector<16x16x8xf32>,
    %c0_31 = arith.constant 0 : index
    %c0_32 = arith.constant 0 : index
    %15 = vector.load %arg4[%c0_31, %c0_32] : memref<1x8xf32, #tpu.memory_space<vmem>>, vector<1x8xf32>
    %c0_33 = arith.constant 0 : index
    %c0_34 = arith.constant 0 : index
    %16 = vector.load %arg6[%c0_33, %c0_34] : memref<1x3xf32, #tpu.memory_space<vmem>>, vector<1x3xf32>
    %c0_35 = arith.constant 0 : index
    %c0_36 = arith.constant 0 : index
    %17 = vector.load %arg8[%c0_35, %c0_36] : memref<1x8xf32, #tpu.memory_space<vmem>>, vector<1x8xf32>
    %cst_37 = arith.constant 0.000000e+00 : f32
    %18 = vector.broadcast %cst_37 : f32 to vector<256x8xf32>
    %c0_38 = arith.constant 0 : index
    %c0_39 = arith.constant 0 : index
    %c0_40 = arith.constant 0 : index
    %19 = vector.load %arg11[%c0_38, %c0_39, %c0_40] : memref<18x18x8xf32, #tpu.memory_space<vmem>>, vector<16x16x8xf32>
    %20 = vector.shape_cast %19 : vector<16x16x8xf32> to vector<256x8xf32>
    %c0_41 = arith.constant 0 : index
    %c0_42 = arith.constant 0 : index
    %c0_43 = arith.constant 0 : index
    %c0_44 = arith.constant 0 : index
    %21 = vector.load %arg3[%c0_41, %c0_42, %c0_43, %c0_44] : memref<3x3x8x8xf32, #tpu.memory_space<vmem>>, vector<1x1x8x8xf32>
    %22 = vector.shape_cast %21 : vector<1x1x8x8xf32> to vector<8x8xf32>
    %cst_45 = arith.constant dense<0.000000e+00> : vector<256x8xf32>
    %23 = tpu.matmul %20, %22, %cst_45 {dimension_numbers = #tpu.dot_dimension_numbers<[1], [0], [0], [1], [0, 0, 1, 1], [], []>} : vector<256x8xf32>, vector<8x8xf32>, vector<256x8xf32> -> vector<256x8xf32>
    %24 = arith.addf %18, %23 : vector<256x8xf32>
    %c0_46 = arith.constant 0 : index
    %c1_47 = arith.constant 1 : index
    %c0_48 = arith.constant 0 : index
    %25 = vector.load %arg11[%c0_46, %c1_47, %c0_48] : memref<18x18x8xf32, #tpu.memory_space<vmem>>, vector<16x16x8xf32>
    %26 = vector.shape_cast %25 : vector<16x16x8xf32> to vector<256x8xf32>
    %c0_49 = arith.constant 0 : index
    %c1_50 = arith.constant 1 : index
    %c0_51 = arith.constant 0 : index
    %c0_52 = arith.constant 0 : index
    %27 = vector.load %arg3[%c0_49, %c1_50, %c0_51, %c0_52] : memref<3x3x8x8xf32, #tpu.memory_space<vmem>>, vector<1x1x8x8xf32>
    %28 = vector.shape_cast %27 : vector<1x1x8x8xf32> to vector<8x8xf32>
    %cst_53 = arith.constant dense<0.000000e+00> : vector<256x8xf32>
    %29 = tpu.matmul %26, %28, %cst_53 {dimension_numbers = #tpu.dot_dimension_numbers<[1], [0], [0], [1], [0, 0, 1, 1], [], []>} : vector<256x8xf32>, vector<8x8xf32>, vector<256x8xf32> -> vector<256x8xf32>
    %30 = arith.addf %24, %29 : vector<256x8xf32>
    %c0_54 = arith.constant 0 : index
    %c2 = arith.constant 2 : index
    %c0_55 = arith.constant 0 : index
    %31 = vector.load %arg11[%c0_54, %c2, %c0_55] : memref<18x18x8xf32, #tpu.memory_space<vmem>>, vector<16x16x8xf32>
    %32 = vector.shape_cast %31 : vector<16x16x8xf32> to vector<256x8xf32>
    %c0_56 = arith.constant 0 : index
    %c2_57 = arith.constant 2 : index
    %c0_58 = arith.constant 0 : index
    %c0_59 = arith.constant 0 : index
    %33 = vector.load %arg3[%c0_56, %c2_57, %c0_58, %c0_59] : memref<3x3x8x8xf32, #tpu.memory_space<vmem>>, vector<1x1x8x8xf32>
    %34 = vector.shape_cast %33 : vector<1x1x8x8xf32> to vector<8x8xf32>
    %cst_60 = arith.constant dense<0.000000e+00> : vector<256x8xf32>
    %35 = tpu.matmul %32, %34, %cst_60 {dimension_numbers = #tpu.dot_dimension_numbers<[1], [0], [0], [1], [0, 0, 1, 1], [], []>} : vector<256x8xf32>, vector<8x8xf32>, vector<256x8xf32> -> vector<256x8xf32>
    %36 = arith.addf %30, %35 : vector<256x8xf32>
    %c1_61 = arith.constant 1 : index
    %c0_62 = arith.constant 0 : index
    %c0_63 = arith.constant 0 : index
    %37 = vector.load %arg11[%c1_61, %c0_62, %c0_63] : memref<18x18x8xf32, #tpu.memory_space<vmem>>, vector<16x16x8xf32>
    %38 = vector.shape_cast %37 : vector<16x16x8xf32> to vector<256x8xf32>
    %c1_64 = arith.constant 1 : index
    %c0_65 = arith.constant 0 : index
    %c0_66 = arith.constant 0 : index
    %c0_67 = arith.constant 0 : index
    %39 = vector.load %arg3[%c1_64, %c0_65, %c0_66, %c0_67] : memref<3x3x8x8xf32, #tpu.memory_space<vmem>>, vector<1x1x8x8xf32>
    %40 = vector.shape_cast %39 : vector<1x1x8x8xf32> to vector<8x8xf32>
    %cst_68 = arith.constant dense<0.000000e+00> : vector<256x8xf32>
    %41 = tpu.matmul %38, %40, %cst_68 {dimension_numbers = #tpu.dot_dimension_numbers<[1], [0], [0], [1], [0, 0, 1, 1], [], []>} : vector<256x8xf32>, vector<8x8xf32>, vector<256x8xf32> -> vector<256x8xf32>
    %42 = arith.addf %36, %41 : vector<256x8xf32>
    %c1_69 = arith.constant 1 : index
    %c1_70 = arith.constant 1 : index
    %c0_71 = arith.constant 0 : index
    %43 = vector.load %arg11[%c1_69, %c1_70, %c0_71] : memref<18x18x8xf32, #tpu.memory_space<vmem>>, vector<16x16x8xf32>
    %44 = vector.shape_cast %43 : vector<16x16x8xf32> to vector<256x8xf32>
    %c1_72 = arith.constant 1 : index
    %c1_73 = arith.constant 1 : index
    %c0_74 = arith.constant 0 : index
    %c0_75 = arith.constant 0 : index
    %45 = vector.load %arg3[%c1_72, %c1_73, %c0_74, %c0_75] : memref<3x3x8x8xf32, #tpu.memory_space<vmem>>, vector<1x1x8x8xf32>
    %46 = vector.shape_cast %45 : vector<1x1x8x8xf32> to vector<8x8xf32>
    %cst_76 = arith.constant dense<0.000000e+00> : vector<256x8xf32>
    %47 = tpu.matmul %44, %46, %cst_76 {dimension_numbers = #tpu.dot_dimension_numbers<[1], [0], [0], [1], [0, 0, 1, 1], [], []>} : vector<256x8xf32>, vector<8x8xf32>, vector<256x8xf32> -> vector<256x8xf32>
    %48 = arith.addf %42, %47 : vector<256x8xf32>
    %c1_77 = arith.constant 1 : index
    %c2_78 = arith.constant 2 : index
    %c0_79 = arith.constant 0 : index
    %49 = vector.load %arg11[%c1_77, %c2_78, %c0_79] : memref<18x18x8xf32, #tpu.memory_space<vmem>>, vector<16x16x8xf32>
    %50 = vector.shape_cast %49 : vector<16x16x8xf32> to vector<256x8xf32>
    %c1_80 = arith.constant 1 : index
    %c2_81 = arith.constant 2 : index
    %c0_82 = arith.constant 0 : index
    %c0_83 = arith.constant 0 : index
    %51 = vector.load %arg3[%c1_80, %c2_81, %c0_82, %c0_83] : memref<3x3x8x8xf32, #tpu.memory_space<vmem>>, vector<1x1x8x8xf32>
    %52 = vector.shape_cast %51 : vector<1x1x8x8xf32> to vector<8x8xf32>
    %cst_84 = arith.constant dense<0.000000e+00> : vector<256x8xf32>
    %53 = tpu.matmul %50, %52, %cst_84 {dimension_numbers = #tpu.dot_dimension_numbers<[1], [0], [0], [1], [0, 0, 1, 1], [], []>} : vector<256x8xf32>, vector<8x8xf32>, vector<256x8xf32> -> vector<256x8xf32>
    %54 = arith.addf %48, %53 : vector<256x8xf32>
    %c2_85 = arith.constant 2 : index
    %c0_86 = arith.constant 0 : index
    %c0_87 = arith.constant 0 : index
    %55 = vector.load %arg11[%c2_85, %c0_86, %c0_87] : memref<18x18x8xf32, #tpu.memory_space<vmem>>, vector<16x16x8xf32>
    %56 = vector.shape_cast %55 : vector<16x16x8xf32> to vector<256x8xf32>
    %c2_88 = arith.constant 2 : index
    %c0_89 = arith.constant 0 : index
    %c0_90 = arith.constant 0 : index
    %c0_91 = arith.constant 0 : index
    %57 = vector.load %arg3[%c2_88, %c0_89, %c0_90, %c0_91] : memref<3x3x8x8xf32, #tpu.memory_space<vmem>>, vector<1x1x8x8xf32>
    %58 = vector.shape_cast %57 : vector<1x1x8x8xf32> to vector<8x8xf32>
    %cst_92 = arith.constant dense<0.000000e+00> : vector<256x8xf32>
    %59 = tpu.matmul %56, %58, %cst_92 {dimension_numbers = #tpu.dot_dimension_numbers<[1], [0], [0], [1], [0, 0, 1, 1], [], []>} : vector<256x8xf32>, vector<8x8xf32>, vector<256x8xf32> -> vector<256x8xf32>
    %60 = arith.addf %54, %59 : vector<256x8xf32>
    %c2_93 = arith.constant 2 : index
    %c1_94 = arith.constant 1 : index
    %c0_95 = arith.constant 0 : index
    %61 = vector.load %arg11[%c2_93, %c1_94, %c0_95] : memref<18x18x8xf32, #tpu.memory_space<vmem>>, vector<16x16x8xf32>
    %62 = vector.shape_cast %61 : vector<16x16x8xf32> to vector<256x8xf32>
    %c2_96 = arith.constant 2 : index
    %c1_97 = arith.constant 1 : index
    %c0_98 = arith.constant 0 : index
    %c0_99 = arith.constant 0 : index
    %63 = vector.load %arg3[%c2_96, %c1_97, %c0_98, %c0_99] : memref<3x3x8x8xf32, #tpu.memory_space<vmem>>, vector<1x1x8x8xf32>
    %64 = vector.shape_cast %63 : vector<1x1x8x8xf32> to vector<8x8xf32>
    %cst_100 = arith.constant dense<0.000000e+00> : vector<256x8xf32>
    %65 = tpu.matmul %62, %64, %cst_100 {dimension_numbers = #tpu.dot_dimension_numbers<[1], [0], [0], [1], [0, 0, 1, 1], [], []>} : vector<256x8xf32>, vector<8x8xf32>, vector<256x8xf32> -> vector<256x8xf32>
    %66 = arith.addf %60, %65 : vector<256x8xf32>
    %c2_101 = arith.constant 2 : index
    %c2_102 = arith.constant 2 : index
    %c0_103 = arith.constant 0 : index
    %67 = vector.load %arg11[%c2_101, %c2_102, %c0_103] : memref<18x18x8xf32, #tpu.memory_space<vmem>>, vector<16x16x8xf32>
    %68 = vector.shape_cast %67 : vector<16x16x8xf32> to vector<256x8xf32>
    %c2_104 = arith.constant 2 : index
    %c2_105 = arith.constant 2 : index
    %c0_106 = arith.constant 0 : index
    %c0_107 = arith.constant 0 : index
    %69 = vector.load %arg3[%c2_104, %c2_105, %c0_106, %c0_107] : memref<3x3x8x8xf32, #tpu.memory_space<vmem>>, vector<1x1x8x8xf32>
    %70 = vector.shape_cast %69 : vector<1x1x8x8xf32> to vector<8x8xf32>
    %cst_108 = arith.constant dense<0.000000e+00> : vector<256x8xf32>
    %71 = tpu.matmul %68, %70, %cst_108 {dimension_numbers = #tpu.dot_dimension_numbers<[1], [0], [0], [1], [0, 0, 1, 1], [], []>} : vector<256x8xf32>, vector<8x8xf32>, vector<256x8xf32> -> vector<256x8xf32>
    %72 = arith.addf %66, %71 : vector<256x8xf32>
    %73 = vector.broadcast %15 : vector<1x8xf32> to vector<256x8xf32>
    %74 = arith.addf %72, %73 : vector<256x8xf32>
    %cst_109 = arith.constant 0.000000e+00 : f32
    %75 = vector.broadcast %cst_109 : f32 to vector<256x3xf32>
    %c0_110 = arith.constant 0 : index
    %c0_111 = arith.constant 0 : index
    %c0_112 = arith.constant 0 : index
    %76 = vector.load %arg11[%c0_110, %c0_111, %c0_112] : memref<18x18x8xf32, #tpu.memory_space<vmem>>, vector<16x16x8xf32>
    %77 = vector.shape_cast %76 : vector<16x16x8xf32> to vector<256x8xf32>
    %c0_113 = arith.constant 0 : index
    %c0_114 = arith.constant 0 : index
    %c0_115 = arith.constant 0 : index
    %c0_116 = arith.constant 0 : index
    %78 = vector.load %arg5[%c0_113, %c0_114, %c0_115, %c0_116] : memref<3x3x8x3xf32, #tpu.memory_space<vmem>>, vector<1x1x8x3xf32>
    %79 = vector.shape_cast %78 : vector<1x1x8x3xf32> to vector<8x3xf32>
    %cst_117 = arith.constant dense<0.000000e+00> : vector<256x3xf32>
    %80 = tpu.matmul %77, %79, %cst_117 {dimension_numbers = #tpu.dot_dimension_numbers<[1], [0], [0], [1], [0, 0, 1, 1], [], []>} : vector<256x8xf32>, vector<8x3xf32>, vector<256x3xf32> -> vector<256x3xf32>
    %81 = arith.addf %75, %80 : vector<256x3xf32>
    %c0_118 = arith.constant 0 : index
    %c1_119 = arith.constant 1 : index
    %c0_120 = arith.constant 0 : index
    %82 = vector.load %arg11[%c0_118, %c1_119, %c0_120] : memref<18x18x8xf32, #tpu.memory_space<vmem>>, vector<16x16x8xf32>
    %83 = vector.shape_cast %82 : vector<16x16x8xf32> to vector<256x8xf32>
    %c0_121 = arith.constant 0 : index
    %c1_122 = arith.constant 1 : index
    %c0_123 = arith.constant 0 : index
    %c0_124 = arith.constant 0 : index
    %84 = vector.load %arg5[%c0_121, %c1_122, %c0_123, %c0_124] : memref<3x3x8x3xf32, #tpu.memory_space<vmem>>, vector<1x1x8x3xf32>
    %85 = vector.shape_cast %84 : vector<1x1x8x3xf32> to vector<8x3xf32>
    %cst_125 = arith.constant dense<0.000000e+00> : vector<256x3xf32>
    %86 = tpu.matmul %83, %85, %cst_125 {dimension_numbers = #tpu.dot_dimension_numbers<[1], [0], [0], [1], [0, 0, 1, 1], [], []>} : vector<256x8xf32>, vector<8x3xf32>, vector<256x3xf32> -> vector<256x3xf32>
    %87 = arith.addf %81, %86 : vector<256x3xf32>
    %c0_126 = arith.constant 0 : index
    %c2_127 = arith.constant 2 : index
    %c0_128 = arith.constant 0 : index
    %88 = vector.load %arg11[%c0_126, %c2_127, %c0_128] : memref<18x18x8xf32, #tpu.memory_space<vmem>>, vector<16x16x8xf32>
    %89 = vector.shape_cast %88 : vector<16x16x8xf32> to vector<256x8xf32>
    %c0_129 = arith.constant 0 : index
    %c2_130 = arith.constant 2 : index
    %c0_131 = arith.constant 0 : index
    %c0_132 = arith.constant 0 : index
    %90 = vector.load %arg5[%c0_129, %c2_130, %c0_131, %c0_132] : memref<3x3x8x3xf32, #tpu.memory_space<vmem>>, vector<1x1x8x3xf32>
    %91 = vector.shape_cast %90 : vector<1x1x8x3xf32> to vector<8x3xf32>
    %cst_133 = arith.constant dense<0.000000e+00> : vector<256x3xf32>
    %92 = tpu.matmul %89, %91, %cst_133 {dimension_numbers = #tpu.dot_dimension_numbers<[1], [0], [0], [1], [0, 0, 1, 1], [], []>} : vector<256x8xf32>, vector<8x3xf32>, vector<256x3xf32> -> vector<256x3xf32>
    %93 = arith.addf %87, %92 : vector<256x3xf32>
    %c1_134 = arith.constant 1 : index
    %c0_135 = arith.constant 0 : index
    %c0_136 = arith.constant 0 : index
    %94 = vector.load %arg11[%c1_134, %c0_135, %c0_136] : memref<18x18x8xf32, #tpu.memory_space<vmem>>, vector<16x16x8xf32>
    %95 = vector.shape_cast %94 : vector<16x16x8xf32> to vector<256x8xf32>
    %c1_137 = arith.constant 1 : index
    %c0_138 = arith.constant 0 : index
    %c0_139 = arith.constant 0 : index
    %c0_140 = arith.constant 0 : index
    %96 = vector.load %arg5[%c1_137, %c0_138, %c0_139, %c0_140] : memref<3x3x8x3xf32, #tpu.memory_space<vmem>>, vector<1x1x8x3xf32>
    %97 = vector.shape_cast %96 : vector<1x1x8x3xf32> to vector<8x3xf32>
    %cst_141 = arith.constant dense<0.000000e+00> : vector<256x3xf32>
    %98 = tpu.matmul %95, %97, %cst_141 {dimension_numbers = #tpu.dot_dimension_numbers<[1], [0], [0], [1], [0, 0, 1, 1], [], []>} : vector<256x8xf32>, vector<8x3xf32>, vector<256x3xf32> -> vector<256x3xf32>
    %99 = arith.addf %93, %98 : vector<256x3xf32>
    %c1_142 = arith.constant 1 : index
    %c1_143 = arith.constant 1 : index
    %c0_144 = arith.constant 0 : index
    %100 = vector.load %arg11[%c1_142, %c1_143, %c0_144] : memref<18x18x8xf32, #tpu.memory_space<vmem>>, vector<16x16x8xf32>
    %101 = vector.shape_cast %100 : vector<16x16x8xf32> to vector<256x8xf32>
    %c1_145 = arith.constant 1 : index
    %c1_146 = arith.constant 1 : index
    %c0_147 = arith.constant 0 : index
    %c0_148 = arith.constant 0 : index
    %102 = vector.load %arg5[%c1_145, %c1_146, %c0_147, %c0_148] : memref<3x3x8x3xf32, #tpu.memory_space<vmem>>, vector<1x1x8x3xf32>
    %103 = vector.shape_cast %102 : vector<1x1x8x3xf32> to vector<8x3xf32>
    %cst_149 = arith.constant dense<0.000000e+00> : vector<256x3xf32>
    %104 = tpu.matmul %101, %103, %cst_149 {dimension_numbers = #tpu.dot_dimension_numbers<[1], [0], [0], [1], [0, 0, 1, 1], [], []>} : vector<256x8xf32>, vector<8x3xf32>, vector<256x3xf32> -> vector<256x3xf32>
    %105 = arith.addf %99, %104 : vector<256x3xf32>
    %c1_150 = arith.constant 1 : index
    %c2_151 = arith.constant 2 : index
    %c0_152 = arith.constant 0 : index
    %106 = vector.load %arg11[%c1_150, %c2_151, %c0_152] : memref<18x18x8xf32, #tpu.memory_space<vmem>>, vector<16x16x8xf32>
    %107 = vector.shape_cast %106 : vector<16x16x8xf32> to vector<256x8xf32>
    %c1_153 = arith.constant 1 : index
    %c2_154 = arith.constant 2 : index
    %c0_155 = arith.constant 0 : index
    %c0_156 = arith.constant 0 : index
    %108 = vector.load %arg5[%c1_153, %c2_154, %c0_155, %c0_156] : memref<3x3x8x3xf32, #tpu.memory_space<vmem>>, vector<1x1x8x3xf32>
    %109 = vector.shape_cast %108 : vector<1x1x8x3xf32> to vector<8x3xf32>
    %cst_157 = arith.constant dense<0.000000e+00> : vector<256x3xf32>
    %110 = tpu.matmul %107, %109, %cst_157 {dimension_numbers = #tpu.dot_dimension_numbers<[1], [0], [0], [1], [0, 0, 1, 1], [], []>} : vector<256x8xf32>, vector<8x3xf32>, vector<256x3xf32> -> vector<256x3xf32>
    %111 = arith.addf %105, %110 : vector<256x3xf32>
    %c2_158 = arith.constant 2 : index
    %c0_159 = arith.constant 0 : index
    %c0_160 = arith.constant 0 : index
    %112 = vector.load %arg11[%c2_158, %c0_159, %c0_160] : memref<18x18x8xf32, #tpu.memory_space<vmem>>, vector<16x16x8xf32>
    %113 = vector.shape_cast %112 : vector<16x16x8xf32> to vector<256x8xf32>
    %c2_161 = arith.constant 2 : index
    %c0_162 = arith.constant 0 : index
    %c0_163 = arith.constant 0 : index
    %c0_164 = arith.constant 0 : index
    %114 = vector.load %arg5[%c2_161, %c0_162, %c0_163, %c0_164] : memref<3x3x8x3xf32, #tpu.memory_space<vmem>>, vector<1x1x8x3xf32>
    %115 = vector.shape_cast %114 : vector<1x1x8x3xf32> to vector<8x3xf32>
    %cst_165 = arith.constant dense<0.000000e+00> : vector<256x3xf32>
    %116 = tpu.matmul %113, %115, %cst_165 {dimension_numbers = #tpu.dot_dimension_numbers<[1], [0], [0], [1], [0, 0, 1, 1], [], []>} : vector<256x8xf32>, vector<8x3xf32>, vector<256x3xf32> -> vector<256x3xf32>
    %117 = arith.addf %111, %116 : vector<256x3xf32>
    %c2_166 = arith.constant 2 : index
    %c1_167 = arith.constant 1 : index
    %c0_168 = arith.constant 0 : index
    %118 = vector.load %arg11[%c2_166, %c1_167, %c0_168] : memref<18x18x8xf32, #tpu.memory_space<vmem>>, vector<16x16x8xf32>
    %119 = vector.shape_cast %118 : vector<16x16x8xf32> to vector<256x8xf32>
    %c2_169 = arith.constant 2 : index
    %c1_170 = arith.constant 1 : index
    %c0_171 = arith.constant 0 : index
    %c0_172 = arith.constant 0 : index
    %120 = vector.load %arg5[%c2_169, %c1_170, %c0_171, %c0_172] : memref<3x3x8x3xf32, #tpu.memory_space<vmem>>, vector<1x1x8x3xf32>
    %121 = vector.shape_cast %120 : vector<1x1x8x3xf32> to vector<8x3xf32>
    %cst_173 = arith.constant dense<0.000000e+00> : vector<256x3xf32>
    %122 = tpu.matmul %119, %121, %cst_173 {dimension_numbers = #tpu.dot_dimension_numbers<[1], [0], [0], [1], [0, 0, 1, 1], [], []>} : vector<256x8xf32>, vector<8x3xf32>, vector<256x3xf32> -> vector<256x3xf32>
    %123 = arith.addf %117, %122 : vector<256x3xf32>
    %c2_174 = arith.constant 2 : index
    %c2_175 = arith.constant 2 : index
    %c0_176 = arith.constant 0 : index
    %124 = vector.load %arg11[%c2_174, %c2_175, %c0_176] : memref<18x18x8xf32, #tpu.memory_space<vmem>>, vector<16x16x8xf32>
    %125 = vector.shape_cast %124 : vector<16x16x8xf32> to vector<256x8xf32>
    %c2_177 = arith.constant 2 : index
    %c2_178 = arith.constant 2 : index
    %c0_179 = arith.constant 0 : index
    %c0_180 = arith.constant 0 : index
    %126 = vector.load %arg5[%c2_177, %c2_178, %c0_179, %c0_180] : memref<3x3x8x3xf32, #tpu.memory_space<vmem>>, vector<1x1x8x3xf32>
    %127 = vector.shape_cast %126 : vector<1x1x8x3xf32> to vector<8x3xf32>
    %cst_181 = arith.constant dense<0.000000e+00> : vector<256x3xf32>
    %128 = tpu.matmul %125, %127, %cst_181 {dimension_numbers = #tpu.dot_dimension_numbers<[1], [0], [0], [1], [0, 0, 1, 1], [], []>} : vector<256x8xf32>, vector<8x3xf32>, vector<256x3xf32> -> vector<256x3xf32>
    %129 = arith.addf %123, %128 : vector<256x3xf32>
    %130 = vector.broadcast %16 : vector<1x3xf32> to vector<256x3xf32>
    %131 = arith.addf %129, %130 : vector<256x3xf32>
    %c0_182 = arith.constant 0 : index
    %c0_183 = arith.constant 0 : index
    %c0_184 = arith.constant 0 : index
    %c0_185 = arith.constant 0 : index
    %132 = vector.load %arg2[%c0_182, %c0_183, %c0_184, %c0_185] : memref<1x16x16x3xf32, #tpu.memory_space<vmem>>, vector<1x16x16x3xf32>
    %133 = vector.shape_cast %132 : vector<1x16x16x3xf32> to vector<16x16x3xf32>
    %134 = vector.shape_cast %133 : vector<16x16x3xf32> to vector<256x3xf32>
    %135 = arith.addf %131, %134 : vector<256x3xf32>
    %136 = vector.shape_cast %135 : vector<256x3xf32> to vector<16x16x3xf32>
    %c0_186 = arith.constant 0 : index
    %c0_187 = arith.constant 0 : index
    %c0_188 = arith.constant 0 : index
    %c0_189 = arith.constant 0 : index
    %137 = vector.load %arg10[%c0_186, %c0_187, %c0_188, %c0_189] : memref<1x16x16x3xf32, #tpu.memory_space<vmem>>, vector<1x16x16x3xf32>
    %138 = vector.shape_cast %137 : vector<1x16x16x3xf32> to vector<16x16x3xf32>
    %139 = vector.shape_cast %136 : vector<16x16x3xf32> to vector<1x16x16x3xf32>
    tpu.vector_store %arg10[%c0_186, %c0_187, %c0_188, %c0_189], %139 {strides = array<i32>} : memref<1x16x16x3xf32, #tpu.memory_space<vmem>>, vector<1x16x16x3xf32>,
    %c1_190 = arith.constant 1 : index
    %c1_191 = arith.constant 1 : index
    %c0_192 = arith.constant 0 : index
    %140 = vector.load %arg12[%c1_190, %c1_191, %c0_192] : memref<18x18x3xf32, #tpu.memory_space<vmem>>, vector<16x16x3xf32>
    tpu.vector_store %arg12[%c1_190, %c1_191, %c0_192], %136 {strides = array<i32>} : memref<18x18x3xf32, #tpu.memory_space<vmem>>, vector<16x16x3xf32>,
    %cst_193 = arith.constant 0.000000e+00 : f32
    %141 = vector.broadcast %cst_193 : f32 to vector<256x8xf32>
    %c0_194 = arith.constant 0 : index
    %c0_195 = arith.constant 0 : index
    %c0_196 = arith.constant 0 : index
    %142 = vector.load %arg12[%c0_194, %c0_195, %c0_196] : memref<18x18x3xf32, #tpu.memory_space<vmem>>, vector<16x16x3xf32>
    %143 = vector.shape_cast %142 : vector<16x16x3xf32> to vector<256x3xf32>
    %c0_197 = arith.constant 0 : index
    %c0_198 = arith.constant 0 : index
    %c0_199 = arith.constant 0 : index
    %c0_200 = arith.constant 0 : index
    %144 = vector.load %arg7[%c0_197, %c0_198, %c0_199, %c0_200] : memref<3x3x3x8xf32, #tpu.memory_space<vmem>>, vector<1x1x3x8xf32>
    %145 = vector.shape_cast %144 : vector<1x1x3x8xf32> to vector<3x8xf32>
    %cst_201 = arith.constant dense<0.000000e+00> : vector<256x8xf32>
    %146 = tpu.matmul %143, %145, %cst_201 {dimension_numbers = #tpu.dot_dimension_numbers<[1], [0], [0], [1], [0, 0, 1, 1], [], []>} : vector<256x3xf32>, vector<3x8xf32>, vector<256x8xf32> -> vector<256x8xf32>
    %147 = arith.addf %141, %146 : vector<256x8xf32>
    %c0_202 = arith.constant 0 : index
    %c1_203 = arith.constant 1 : index
    %c0_204 = arith.constant 0 : index
    %148 = vector.load %arg12[%c0_202, %c1_203, %c0_204] : memref<18x18x3xf32, #tpu.memory_space<vmem>>, vector<16x16x3xf32>
    %149 = vector.shape_cast %148 : vector<16x16x3xf32> to vector<256x3xf32>
    %c0_205 = arith.constant 0 : index
    %c1_206 = arith.constant 1 : index
    %c0_207 = arith.constant 0 : index
    %c0_208 = arith.constant 0 : index
    %150 = vector.load %arg7[%c0_205, %c1_206, %c0_207, %c0_208] : memref<3x3x3x8xf32, #tpu.memory_space<vmem>>, vector<1x1x3x8xf32>
    %151 = vector.shape_cast %150 : vector<1x1x3x8xf32> to vector<3x8xf32>
    %cst_209 = arith.constant dense<0.000000e+00> : vector<256x8xf32>
    %152 = tpu.matmul %149, %151, %cst_209 {dimension_numbers = #tpu.dot_dimension_numbers<[1], [0], [0], [1], [0, 0, 1, 1], [], []>} : vector<256x3xf32>, vector<3x8xf32>, vector<256x8xf32> -> vector<256x8xf32>
    %153 = arith.addf %147, %152 : vector<256x8xf32>
    %c0_210 = arith.constant 0 : index
    %c2_211 = arith.constant 2 : index
    %c0_212 = arith.constant 0 : index
    %154 = vector.load %arg12[%c0_210, %c2_211, %c0_212] : memref<18x18x3xf32, #tpu.memory_space<vmem>>, vector<16x16x3xf32>
    %155 = vector.shape_cast %154 : vector<16x16x3xf32> to vector<256x3xf32>
    %c0_213 = arith.constant 0 : index
    %c2_214 = arith.constant 2 : index
    %c0_215 = arith.constant 0 : index
    %c0_216 = arith.constant 0 : index
    %156 = vector.load %arg7[%c0_213, %c2_214, %c0_215, %c0_216] : memref<3x3x3x8xf32, #tpu.memory_space<vmem>>, vector<1x1x3x8xf32>
    %157 = vector.shape_cast %156 : vector<1x1x3x8xf32> to vector<3x8xf32>
    %cst_217 = arith.constant dense<0.000000e+00> : vector<256x8xf32>
    %158 = tpu.matmul %155, %157, %cst_217 {dimension_numbers = #tpu.dot_dimension_numbers<[1], [0], [0], [1], [0, 0, 1, 1], [], []>} : vector<256x3xf32>, vector<3x8xf32>, vector<256x8xf32> -> vector<256x8xf32>
    %159 = arith.addf %153, %158 : vector<256x8xf32>
    %c1_218 = arith.constant 1 : index
    %c0_219 = arith.constant 0 : index
    %c0_220 = arith.constant 0 : index
    %160 = vector.load %arg12[%c1_218, %c0_219, %c0_220] : memref<18x18x3xf32, #tpu.memory_space<vmem>>, vector<16x16x3xf32>
    %161 = vector.shape_cast %160 : vector<16x16x3xf32> to vector<256x3xf32>
    %c1_221 = arith.constant 1 : index
    %c0_222 = arith.constant 0 : index
    %c0_223 = arith.constant 0 : index
    %c0_224 = arith.constant 0 : index
    %162 = vector.load %arg7[%c1_221, %c0_222, %c0_223, %c0_224] : memref<3x3x3x8xf32, #tpu.memory_space<vmem>>, vector<1x1x3x8xf32>
    %163 = vector.shape_cast %162 : vector<1x1x3x8xf32> to vector<3x8xf32>
    %cst_225 = arith.constant dense<0.000000e+00> : vector<256x8xf32>
    %164 = tpu.matmul %161, %163, %cst_225 {dimension_numbers = #tpu.dot_dimension_numbers<[1], [0], [0], [1], [0, 0, 1, 1], [], []>} : vector<256x3xf32>, vector<3x8xf32>, vector<256x8xf32> -> vector<256x8xf32>
    %165 = arith.addf %159, %164 : vector<256x8xf32>
    %c1_226 = arith.constant 1 : index
    %c1_227 = arith.constant 1 : index
    %c0_228 = arith.constant 0 : index
    %166 = vector.load %arg12[%c1_226, %c1_227, %c0_228] : memref<18x18x3xf32, #tpu.memory_space<vmem>>, vector<16x16x3xf32>
    %167 = vector.shape_cast %166 : vector<16x16x3xf32> to vector<256x3xf32>
    %c1_229 = arith.constant 1 : index
    %c1_230 = arith.constant 1 : index
    %c0_231 = arith.constant 0 : index
    %c0_232 = arith.constant 0 : index
    %168 = vector.load %arg7[%c1_229, %c1_230, %c0_231, %c0_232] : memref<3x3x3x8xf32, #tpu.memory_space<vmem>>, vector<1x1x3x8xf32>
    %169 = vector.shape_cast %168 : vector<1x1x3x8xf32> to vector<3x8xf32>
    %cst_233 = arith.constant dense<0.000000e+00> : vector<256x8xf32>
    %170 = tpu.matmul %167, %169, %cst_233 {dimension_numbers = #tpu.dot_dimension_numbers<[1], [0], [0], [1], [0, 0, 1, 1], [], []>} : vector<256x3xf32>, vector<3x8xf32>, vector<256x8xf32> -> vector<256x8xf32>
    %171 = arith.addf %165, %170 : vector<256x8xf32>
    %c1_234 = arith.constant 1 : index
    %c2_235 = arith.constant 2 : index
    %c0_236 = arith.constant 0 : index
    %172 = vector.load %arg12[%c1_234, %c2_235, %c0_236] : memref<18x18x3xf32, #tpu.memory_space<vmem>>, vector<16x16x3xf32>
    %173 = vector.shape_cast %172 : vector<16x16x3xf32> to vector<256x3xf32>
    %c1_237 = arith.constant 1 : index
    %c2_238 = arith.constant 2 : index
    %c0_239 = arith.constant 0 : index
    %c0_240 = arith.constant 0 : index
    %174 = vector.load %arg7[%c1_237, %c2_238, %c0_239, %c0_240] : memref<3x3x3x8xf32, #tpu.memory_space<vmem>>, vector<1x1x3x8xf32>
    %175 = vector.shape_cast %174 : vector<1x1x3x8xf32> to vector<3x8xf32>
    %cst_241 = arith.constant dense<0.000000e+00> : vector<256x8xf32>
    %176 = tpu.matmul %173, %175, %cst_241 {dimension_numbers = #tpu.dot_dimension_numbers<[1], [0], [0], [1], [0, 0, 1, 1], [], []>} : vector<256x3xf32>, vector<3x8xf32>, vector<256x8xf32> -> vector<256x8xf32>
    %177 = arith.addf %171, %176 : vector<256x8xf32>
    %c2_242 = arith.constant 2 : index
    %c0_243 = arith.constant 0 : index
    %c0_244 = arith.constant 0 : index
    %178 = vector.load %arg12[%c2_242, %c0_243, %c0_244] : memref<18x18x3xf32, #tpu.memory_space<vmem>>, vector<16x16x3xf32>
    %179 = vector.shape_cast %178 : vector<16x16x3xf32> to vector<256x3xf32>
    %c2_245 = arith.constant 2 : index
    %c0_246 = arith.constant 0 : index
    %c0_247 = arith.constant 0 : index
    %c0_248 = arith.constant 0 : index
    %180 = vector.load %arg7[%c2_245, %c0_246, %c0_247, %c0_248] : memref<3x3x3x8xf32, #tpu.memory_space<vmem>>, vector<1x1x3x8xf32>
    %181 = vector.shape_cast %180 : vector<1x1x3x8xf32> to vector<3x8xf32>
    %cst_249 = arith.constant dense<0.000000e+00> : vector<256x8xf32>
    %182 = tpu.matmul %179, %181, %cst_249 {dimension_numbers = #tpu.dot_dimension_numbers<[1], [0], [0], [1], [0, 0, 1, 1], [], []>} : vector<256x3xf32>, vector<3x8xf32>, vector<256x8xf32> -> vector<256x8xf32>
    %183 = arith.addf %177, %182 : vector<256x8xf32>
    %c2_250 = arith.constant 2 : index
    %c1_251 = arith.constant 1 : index
    %c0_252 = arith.constant 0 : index
    %184 = vector.load %arg12[%c2_250, %c1_251, %c0_252] : memref<18x18x3xf32, #tpu.memory_space<vmem>>, vector<16x16x3xf32>
    %185 = vector.shape_cast %184 : vector<16x16x3xf32> to vector<256x3xf32>
    %c2_253 = arith.constant 2 : index
    %c1_254 = arith.constant 1 : index
    %c0_255 = arith.constant 0 : index
    %c0_256 = arith.constant 0 : index
    %186 = vector.load %arg7[%c2_253, %c1_254, %c0_255, %c0_256] : memref<3x3x3x8xf32, #tpu.memory_space<vmem>>, vector<1x1x3x8xf32>
    %187 = vector.shape_cast %186 : vector<1x1x3x8xf32> to vector<3x8xf32>
    %cst_257 = arith.constant dense<0.000000e+00> : vector<256x8xf32>
    %188 = tpu.matmul %185, %187, %cst_257 {dimension_numbers = #tpu.dot_dimension_numbers<[1], [0], [0], [1], [0, 0, 1, 1], [], []>} : vector<256x3xf32>, vector<3x8xf32>, vector<256x8xf32> -> vector<256x8xf32>
    %189 = arith.addf %183, %188 : vector<256x8xf32>
    %c2_258 = arith.constant 2 : index
    %c2_259 = arith.constant 2 : index
    %c0_260 = arith.constant 0 : index
    %190 = vector.load %arg12[%c2_258, %c2_259, %c0_260] : memref<18x18x3xf32, #tpu.memory_space<vmem>>, vector<16x16x3xf32>
    %191 = vector.shape_cast %190 : vector<16x16x3xf32> to vector<256x3xf32>
    %c2_261 = arith.constant 2 : index
    %c2_262 = arith.constant 2 : index
    %c0_263 = arith.constant 0 : index
    %c0_264 = arith.constant 0 : index
    %192 = vector.load %arg7[%c2_261, %c2_262, %c0_263, %c0_264] : memref<3x3x3x8xf32, #tpu.memory_space<vmem>>, vector<1x1x3x8xf32>
    %193 = vector.shape_cast %192 : vector<1x1x3x8xf32> to vector<3x8xf32>
    %cst_265 = arith.constant dense<0.000000e+00> : vector<256x8xf32>
    %194 = tpu.matmul %191, %193, %cst_265 {dimension_numbers = #tpu.dot_dimension_numbers<[1], [0], [0], [1], [0, 0, 1, 1], [], []>} : vector<256x3xf32>, vector<3x8xf32>, vector<256x8xf32> -> vector<256x8xf32>
    %195 = arith.addf %189, %194 : vector<256x8xf32>
    %196 = vector.broadcast %17 : vector<1x8xf32> to vector<256x8xf32>
    %197 = arith.addf %195, %196 : vector<256x8xf32>
    %cst_266 = arith.constant 0.000000e+00 : f32
    %198 = vector.broadcast %cst_266 : f32 to vector<256x8xf32>
    %199 = arith.subf %198, %197 : vector<256x8xf32>
    %200 = math.exp %199 : vector<256x8xf32>
    %cst_267 = arith.constant 1.000000e+00 : f32
    %201 = vector.broadcast %cst_267 : f32 to vector<256x8xf32>
    %202 = arith.addf %201, %200 : vector<256x8xf32>
    %cst_268 = arith.constant 1.000000e+00 : f32
    %203 = vector.broadcast %cst_268 : f32 to vector<256x8xf32>
    %204 = arith.divf %203, %202 : vector<256x8xf32>
    %205 = arith.mulf %74, %204 : vector<256x8xf32>
    %206 = vector.shape_cast %13 : vector<16x16x8xf32> to vector<256x8xf32>
    %207 = arith.addf %205, %206 : vector<256x8xf32>
    %208 = vector.shape_cast %207 : vector<256x8xf32> to vector<16x16x8xf32>
    %c0_269 = arith.constant 0 : index
    %c0_270 = arith.constant 0 : index
    %c0_271 = arith.constant 0 : index
    %c0_272 = arith.constant 0 : index
    %209 = vector.load %arg9[%c0_269, %c0_270, %c0_271, %c0_272] : memref<1x16x16x8xf32, #tpu.memory_space<vmem>>, vector<1x16x16x8xf32>
    %210 = vector.shape_cast %209 : vector<1x16x16x8xf32> to vector<16x16x8xf32>
    %211 = vector.shape_cast %208 : vector<16x16x8xf32> to vector<1x16x16x8xf32>
    tpu.vector_store %arg9[%c0_269, %c0_270, %c0_271, %c0_272], %211 {strides = array<i32>} : memref<1x16x16x8xf32, #tpu.memory_space<vmem>>, vector<1x16x16x8xf32>,
    return
  }
  func.func @transform_0(%arg0: i32) -> (i32, i32, i32, i32) {
    %c0_i32 = arith.constant 0 : i32
    %c0_i32_0 = arith.constant 0 : i32
    %c0_i32_1 = arith.constant 0 : i32
    %c0_i32_2 = arith.constant 0 : i32
    return %arg0, %c0_i32, %c0_i32_0, %c0_i32_1 : i32, i32, i32, i32
  }
  func.func @transform_1(%arg0: i32) -> (i32, i32, i32, i32) {
    %c0_i32 = arith.constant 0 : i32
    %c0_i32_0 = arith.constant 0 : i32
    %c0_i32_1 = arith.constant 0 : i32
    %c0_i32_2 = arith.constant 0 : i32
    return %arg0, %c0_i32, %c0_i32_0, %c0_i32_1 : i32, i32, i32, i32
  }
  func.func @transform_2(%arg0: i32) -> (i32, i32, i32, i32) {
    %c0_i32 = arith.constant 0 : i32
    %c0_i32_0 = arith.constant 0 : i32
    %c0_i32_1 = arith.constant 0 : i32
    %c0_i32_2 = arith.constant 0 : i32
    %c0_i32_3 = arith.constant 0 : i32
    return %c0_i32, %c0_i32_0, %c0_i32_1, %c0_i32_2 : i32, i32, i32, i32
  }
  func.func @transform_3(%arg0: i32) -> (i32, i32) {
    %c0_i32 = arith.constant 0 : i32
    %c0_i32_0 = arith.constant 0 : i32
    %c0_i32_1 = arith.constant 0 : i32
    return %c0_i32, %c0_i32_0 : i32, i32
  }
  func.func @transform_4(%arg0: i32) -> (i32, i32, i32, i32) {
    %c0_i32 = arith.constant 0 : i32
    %c0_i32_0 = arith.constant 0 : i32
    %c0_i32_1 = arith.constant 0 : i32
    %c0_i32_2 = arith.constant 0 : i32
    %c0_i32_3 = arith.constant 0 : i32
    return %c0_i32, %c0_i32_0, %c0_i32_1, %c0_i32_2 : i32, i32, i32, i32
  }
  func.func @transform_5(%arg0: i32) -> (i32, i32) {
    %c0_i32 = arith.constant 0 : i32
    %c0_i32_0 = arith.constant 0 : i32
    %c0_i32_1 = arith.constant 0 : i32
    return %c0_i32, %c0_i32_0 : i32, i32
  }
  func.func @transform_6(%arg0: i32) -> (i32, i32, i32, i32) {
    %c0_i32 = arith.constant 0 : i32
    %c0_i32_0 = arith.constant 0 : i32
    %c0_i32_1 = arith.constant 0 : i32
    %c0_i32_2 = arith.constant 0 : i32
    %c0_i32_3 = arith.constant 0 : i32
    return %c0_i32, %c0_i32_0, %c0_i32_1, %c0_i32_2 : i32, i32, i32, i32
  }
  func.func @transform_7(%arg0: i32) -> (i32, i32) {
    %c0_i32 = arith.constant 0 : i32
    %c0_i32_0 = arith.constant 0 : i32
    %c0_i32_1 = arith.constant 0 : i32
    return %c0_i32, %c0_i32_0 : i32, i32
  }
  func.func @transform_8(%arg0: i32) -> (i32, i32, i32, i32) {
    %c0_i32 = arith.constant 0 : i32
    %c0_i32_0 = arith.constant 0 : i32
    %c0_i32_1 = arith.constant 0 : i32
    %c0_i32_2 = arith.constant 0 : i32
    return %arg0, %c0_i32, %c0_i32_0, %c0_i32_1 : i32, i32, i32, i32
  }
  func.func @transform_9(%arg0: i32) -> (i32, i32, i32, i32) {
    %c0_i32 = arith.constant 0 : i32
    %c0_i32_0 = arith.constant 0 : i32
    %c0_i32_1 = arith.constant 0 : i32
    %c0_i32_2 = arith.constant 0 : i32
    return %arg0, %c0_i32, %c0_i32_0, %c0_i32_1 : i32, i32, i32, i32
  }
}

</mosaic_0001>

<bundles_post_ra>
// kernel: tpu_custom_call.1
= control target key start
LH: loop header
LB: loop body
LE: loop exit
PB: predicated region body
PF: predicated region fallthrough
CT: control target
= control target key end

     0   :  { %s14506_s30 = smov 0   ;;  %s17709_s0 = inlined_call_operand.vmem [shape: f32[2,16,16,8], index: 0, kind: input, shape index: {}]   ;;  %s17710_s1 = inlined_call_operand.vmem [shape: f32[2,16,16,3], index: 1, kind: input, shape index: {}]   ;;  %s17711_s2 = inlined_call_operand.vmem [shape: f32[3,3,8,8], index: 2, kind: input, shape index: {}]   ;;  %s17712_s3 = inlined_call_operand.vmem [shape: f32[1,8], index: 3, kind: input, shape index: {}]   ;;  %s17713_s4 = inlined_call_operand.vmem [shape: f32[3,3,8,3], index: 4, kind: input, shape index: {}]   ;;  %s17714_s5 = inlined_call_operand.vmem [shape: f32[1,3], index: 5, kind: input, shape index: {}]   ;;  %s17715_s6 = inlined_call_operand.vmem [shape: f32[3,3,3,8], index: 6, kind: input, shape index: {}]   ;;  %s17716_s7 = inlined_call_operand.vmem [shape: f32[1,8], index: 7, kind: input, shape index: {}]   ;;  %s17717_s8 = inlined_call_operand.vmem [shape: f32[2,16,16,8], index: 8, kind: output, shape index: {0}]   ;;  %s17718_s9 = inlined_call_operand.vmem [shape: f32[2,16,16,3], index: 9, kind: output, shape index: {1}]  }
   0x1 LB: > { %s10289_s10 = sadd.s32 4294967295, %s14453_s30   ;;  %p10293_p0 = scmp.ge.s32.totalorder %s14453_s30, 1  ;;  %s14453_s30 = sphi %s14506_s30, %s20_s30  }
   0x2   : > { %p300_p1 = scmp.lt.s32.totalorder %s14453_s30, 3 }
   0x4   : > { %p301_p2 = pnand %p10293_p0, %p300_p1 }
   0x6   : > { %304 = sbr.rel (%p301_p2) target bundleno = 1887 (0x75f), region = 52 }
   0xd   : > { %v10302_v0 = vld [vmem:[%s17711_s2 + $0x8] sm:$0xff]  ;;  %vm366_vm0 = vcmask 64512   ;;  %v14520_v1 = vld [vmem:[%s17711_s2] sm:$0xff]  ;;  %vm369_vm1 = vcmask 58368   ;;  %vm375_vm2 = vcmask 57344   ;;  %v17719_v2 = vmov 0.0  }
   0xe   : > { %12099 = vmatprep.subr.mxu1 %v10302_v0  ;;  %367 = vst.msk [vmem:[#allocation2] sm:$0xff] %vm366_vm0, %v17719_v2  ;;  %368 = vst.msk [vmem:[#allocation2 + $0x8] sm:$0xff] %vm366_vm0, %v17719_v2  ;;  %v14599_v3 = vld [vmem:[%s17711_s2 + $0x20] sm:$0xff]  ;;  %p346_p3 = scmp.lt.s32.totalorder %s10289_s10, 1  ;;  %v14606_v4 = vld [vmem:[%s17711_s2 + $0x28] sm:$0xff]  ;;  %vm6579_vm3 = vcmask 1042432  }
   0xf   : > { %372 = vst.msk [vmem:[#allocation2 + $0x198] sm:$0xff] %vm366_vm0, %v17719_v2  ;;  %373 = vst.msk [vmem:[#allocation2 + $0x1a0] sm:$0xff] %vm366_vm0, %v17719_v2  ;;  %12100 = vmatpush3.msra.mxu1 %v10302_v0  ;;  %12299 = vmatprep.subr.mxu0 %v14599_v3  ;;  %v14642_v8 = vld [vmem:[%s17711_s2 + $0x10] sm:$0xff]  ;;  %vm412_vm4 = vcmask 23552   ;;  %vm415_vm5 = vcmask 17408   ;;  %vm421_vm6 = vcmask 16384  }
  0x10   : > { %370 = vst.msk [vmem:[#allocation2 + $0x10] sm:$0x3] %vm369_vm1, %v17719_v2  ;;  %374 = vst.msk [vmem:[#allocation2 + $0x1a8] sm:$0x3] %vm369_vm1, %v17719_v2  ;;  %12149 = vmatprep.subr.mxu1 %v14520_v1  ;;  %s18302_s10 = smov (!%p346_p3, %s10289_s10), 1  ;;  %12300 = vmatpush3.msra.mxu0 %v14599_v3  ;;  %v14772_v33 = vld [vmem:[%s17711_s2 + $0x30] sm:$0xff] }
  0x11   : > { %377 = vst.msk [vmem:[#allocation2 + $0x18] sm:$0x1] %vm375_vm2, %v17719_v2  ;;  %378 = vst.msk [vmem:[#allocation2 + $0x30] sm:$0x1] %vm375_vm2, %v17719_v2  ;;  %12349 = vmatprep.subr.mxu0 %v14606_v4  ;;  %s14622_s19 = sshll.u32 %s18302_s10, 8 }
  0x12   : > { %379 = vst.msk [vmem:[#allocation2 + $0x48] sm:$0x1] %vm375_vm2, %v17719_v2  ;;  %380 = vst.msk [vmem:[#allocation2 + $0x60] sm:$0x1] %vm375_vm2, %v17719_v2  ;;  %s14628_s22 = scalar_lea.vmem %s17709_s0, %s14622_s19  ;;  %s16504_s23 = scalar_lea.vmem %s17710_s1, %s14622_s19 }
  0x13   : > { %381 = vst.msk [vmem:[#allocation2 + $0x78] sm:$0x1] %vm375_vm2, %v17719_v2  ;;  %382 = vst.msk [vmem:[#allocation2 + $0x90] sm:$0x1] %vm375_vm2, %v17719_v2  ;;  %v14631_v5 = vld [vmem:[%s14628_s22] sm:$0xff]  ;;  %v14634_v6 = vld [vmem:[%s14628_s22 + $0x8] sm:$0xff]  ;;  %s16518_s28 = scalar_lea.vmem %s17718_s9, %s14622_s19 }
  0x14   : > { %383 = vst.msk [vmem:[#allocation2 + $0xa8] sm:$0x1] %vm375_vm2, %v17719_v2  ;;  %384 = vst.msk [vmem:[#allocation2 + $0xc0] sm:$0x1] %vm375_vm2, %v17719_v2  ;;  %v14637_v7 = vld [vmem:[%s14628_s22 + $0x10] sm:$0xff]  ;;  %v14655_v11 = vld [vmem:[%s14628_s22 + $0x18] sm:$0xff] }
  0x15   : > { %385 = vst.msk [vmem:[#allocation2 + $0xd8] sm:$0x1] %vm375_vm2, %v17719_v2  ;;  %386 = vst.msk [vmem:[#allocation2 + $0xf0] sm:$0x1] %vm375_vm2, %v17719_v2  ;;  %v14644_v9 = vld [vmem:[#allocation2 + $0x1] sm:$0xff]  ;;  %v14668_v14 = vld [vmem:[%s14628_s22 + $0x30] sm:$0xff] }
  0x16   : > { %387 = vst.msk [vmem:[#allocation2 + $0x108] sm:$0x1] %vm375_vm2, %v17719_v2  ;;  %388 = vst.msk [vmem:[#allocation2 + $0x120] sm:$0x1] %vm375_vm2, %v17719_v2  ;;  %12101 = vmatprep.mubr.msk.f32.mxu1 %vm366_vm0, %v14644_v9  ;;  %v14662_v12 = vld [vmem:[%s14628_s22 + $0x20] sm:$0xff]  ;;  %v14665_v13 = vld [vmem:[%s14628_s22 + $0x28] sm:$0xff] }
  0x17   : > { %389 = vst.msk [vmem:[#allocation2 + $0x138] sm:$0x1] %vm375_vm2, %v17719_v2  ;;  %390 = vst.msk [vmem:[#allocation2 + $0x150] sm:$0x1] %vm375_vm2, %v17719_v2  ;;  %v14646_v10 = vld [vmem:[#allocation2 + $0x9] sm:$0xff]  ;;  %v14679_v15 = vld [vmem:[%s14628_s22 + $0x38] sm:$0xff] }
  0x18   : > { %391 = vst.msk [vmem:[#allocation2 + $0x168] sm:$0x1] %vm375_vm2, %v17719_v2  ;;  %392 = vst.msk [vmem:[#allocation2 + $0x180] sm:$0x1] %vm375_vm2, %v17719_v2  ;;  %12102 = vmatmul.mubr.msk.f32.vlgmr.msra.gmra.mrb[0].mxu1 %vm366_vm0, %v14646_v10  ;;  %v14682_v16 = vld [vmem:[%s14628_s22 + $0x40] sm:$0xff]  ;;  %v14685_v17 = vld [vmem:[%s14628_s22 + $0x48] sm:$0xff] }
  0x19   : > { %395 = vst.msk [vmem:[#allocation2 + $0x29] sm:$0x1] %vm375_vm2, %v17719_v2  ;;  %396 = vst.msk [vmem:[#allocation2 + $0x41] sm:$0x1] %vm375_vm2, %v17719_v2  ;;  %12150 = vmatpush3.msra.mxu1 %v14520_v1  ;;  %v14695_v18 = vld [vmem:[%s14628_s22 + $0x50] sm:$0xff]  ;;  %v14698_v19 = vld [vmem:[%s14628_s22 + $0x58] sm:$0xff] }
  0x1a   : > { %397 = vst.msk [vmem:[#allocation2 + $0x59] sm:$0x1] %vm375_vm2, %v17719_v2  ;;  %398 = vst.msk [vmem:[#allocation2 + $0x71] sm:$0x1] %vm375_vm2, %v17719_v2  ;;  %v14701_v20 = vld [vmem:[%s14628_s22 + $0x60] sm:$0xff]  ;;  %v14710_v21 = vld [vmem:[%s14628_s22 + $0x68] sm:$0xff]  ;;  %12199 = vmatprep.subr.mxu1 %v14642_v8 }
  0x1b   : > { %399 = vst.msk [vmem:[#allocation2 + $0x89] sm:$0x1] %vm375_vm2, %v17719_v2  ;;  %400 = vst.msk [vmem:[#allocation2 + $0xa1] sm:$0x1] %vm375_vm2, %v17719_v2  ;;  %v14713_v22 = vld [vmem:[%s14628_s22 + $0x70] sm:$0xff]  ;;  %v14716_v23 = vld [vmem:[%s14628_s22 + $0x78] sm:$0xff] }
  0x1c   : > { %401 = vst.msk [vmem:[#allocation2 + $0xb9] sm:$0x1] %vm375_vm2, %v17719_v2  ;;  %402 = vst.msk [vmem:[#allocation2 + $0xd1] sm:$0x1] %vm375_vm2, %v17719_v2  ;;  %v14726_v24 = vld [vmem:[%s14628_s22 + $0x80] sm:$0xff]  ;;  %v14729_v25 = vld [vmem:[%s14628_s22 + $0x88] sm:$0xff] }
  0x1d   : > { %403 = vst.msk [vmem:[#allocation2 + $0xe9] sm:$0x1] %vm375_vm2, %v17719_v2  ;;  %404 = vst.msk [vmem:[#allocation2 + $0x101] sm:$0x1] %vm375_vm2, %v17719_v2  ;;  %v14732_v26 = vld [vmem:[%s14628_s22 + $0x90] sm:$0xff]  ;;  %v14741_v27 = vld [vmem:[%s14628_s22 + $0x98] sm:$0xff] }
  0x1e   : > { %405 = vst.msk [vmem:[#allocation2 + $0x119] sm:$0x1] %vm375_vm2, %v17719_v2  ;;  %406 = vst.msk [vmem:[#allocation2 + $0x131] sm:$0x1] %vm375_vm2, %v17719_v2  ;;  %v14744_v28 = vld [vmem:[%s14628_s22 + $0xa0] sm:$0xff]  ;;  %v14747_v29 = vld [vmem:[%s14628_s22 + $0xa8] sm:$0xff] }
  0x1f   : > { %407 = vst.msk [vmem:[#allocation2 + $0x149] sm:$0x1] %vm375_vm2, %v17719_v2  ;;  %408 = vst.msk [vmem:[#allocation2 + $0x161] sm:$0x1] %vm375_vm2, %v17719_v2  ;;  %v14797_v38 = vld [vmem:[%s14628_s22 + $0xb0] sm:$0xff]  ;;  %v14806_v39 = vld [vmem:[%s14628_s22 + $0xb8] sm:$0xff] }
  0x20   : > { %409 = vst.msk [vmem:[#allocation2 + $0x179] sm:$0x1] %vm375_vm2, %v17719_v2  ;;  %410 = vst.msk [vmem:[#allocation2 + $0x191] sm:$0x1] %vm375_vm2, %v17719_v2  ;;  %v14809_v40 = vld [vmem:[%s14628_s22 + $0xc0] sm:$0xff]  ;;  %v14822_v42 = vld [vmem:[%s14628_s22 + $0xc8] sm:$0xff] }
  0x21   : > { %394 = vst.msk [vmem:[#allocation2 + $0x11] sm:$0x1] %vm375_vm2, %v17719_v2  ;;  %376 = vst.msk [vmem:[#allocation2] sm:$0x1] %vm375_vm2, %v17719_v2  ;;  %v14829_v44 = vld [vmem:[%s14628_s22 + $0xd0] sm:$0xff]  ;;  %v14832_v45 = vld [vmem:[%s14628_s22 + $0xd8] sm:$0xff] }
  0x22   : > { %393 = vst.msk [vmem:[#allocation2 + $0x198] sm:$0x1] %vm375_vm2, %v17719_v2  ;;  %411 = vst.msk [vmem:[#allocation2 + $0x1a9] sm:$0x1] %vm375_vm2, %v17719_v2  ;;  %v14839_v46 = vld [vmem:[%s14628_s22 + $0xe0] sm:$0xff]  ;;  %v14848_v47 = vld [vmem:[%s14628_s22 + $0xe8] sm:$0xff] }
  0x23   : > { %17926 = vst [vmem:[#allocation4_spill] sm:$0xff] %v14631_v5  ;;  %17927 = vst [vmem:[#allocation5_spill] sm:$0xff] %v14634_v6  ;;  %v14899_v57 = vld [vmem:[%s14628_s22 + $0xf0] sm:$0xff]  ;;  %v14902_v58 = vld [vmem:[%s14628_s22 + $0xf8] sm:$0xff] }
  0x24   : > { %17928 = vst [vmem:[#allocation6_spill] sm:$0xff] %v14637_v7  ;;  %17929 = vst [vmem:[#allocation7_spill] sm:$0xff] %v14644_v9  ;;  %v14939_v1 = vld [vmem:[%s17711_s2 + $0x38] sm:$0xff] }
  0x25   : > { %17930 = vst [vmem:[#allocation8_spill] sm:$0xff] %v14646_v10  ;;  %491 = vst.msk [vmem:[#allocation2 + $0x19] sm:$0xff] %vm366_vm0, %v14631_v5 }
  0x26   : > { %492 = vst.msk [vmem:[#allocation2 + $0x21] sm:$0xff] %vm366_vm0, %v14634_v6  ;;  %493 = vst.msk [vmem:[#allocation2 + $0x31] sm:$0xff] %vm366_vm0, %v14637_v7 }
  0x27   : > { %17931 = vst [vmem:[#allocation9_spill] sm:$0xff] %v14655_v11  ;;  %494 = vst.msk [vmem:[#allocation2 + $0x39] sm:$0xff] %vm366_vm0, %v14655_v11 }
  0x28   : > { %17932 = vst [vmem:[#allocation10_spill] sm:$0xff] %v14662_v12  ;;  %17933 = vst [vmem:[#allocation11_spill] sm:$0xff] %v14665_v13 }
  0x29   : > { %17934 = vst [vmem:[#allocation12_spill] sm:$0xff] %v14668_v14  ;;  %495 = vst.msk [vmem:[#allocation2 + $0x49] sm:$0xff] %vm366_vm0, %v14662_v12 }
  0x2a   : > { %496 = vst.msk [vmem:[#allocation2 + $0x51] sm:$0xff] %vm366_vm0, %v14665_v13  ;;  %497 = vst.msk [vmem:[#allocation2 + $0x61] sm:$0xff] %vm366_vm0, %v14668_v14 }
  0x2b   : > { %17935 = vst [vmem:[#allocation13_spill] sm:$0xff] %v14679_v15  ;;  %17936 = vst [vmem:[#allocation14_spill] sm:$0xff] %v14682_v16 }
  0x2c   : > { %17937 = vst [vmem:[#allocation15_spill] sm:$0xff] %v14685_v17  ;;  %498 = vst.msk [vmem:[#allocation2 + $0x69] sm:$0xff] %vm366_vm0, %v14679_v15  ;;  %v14749_v30 = vld [vmem:[#allocation2 + $0x19] sm:$0xff] }
  0x2d   : > { %499 = vst.msk [vmem:[#allocation2 + $0x79] sm:$0xff] %vm366_vm0, %v14682_v16  ;;  %500 = vst.msk [vmem:[#allocation2 + $0x81] sm:$0xff] %vm366_vm0, %v14685_v17  ;;  %v14751_v31 = vld [vmem:[#allocation2 + $0x21] sm:$0xff]  ;;  %v14753_v32 = vld [vmem:[#allocation2 + $0x31] sm:$0xff]  ;;  %12104 = vmatprep.mubr.msk.f32.mxu1 %vm366_vm0, %v14749_v30  ;;  %12301 = vmatprep.mubr.msk.f32.mxu0 %vm366_vm0, %v14749_v30 }
  0x2e   : > { %17938 = vst [vmem:[#allocation16_spill] sm:$0xff] %v14695_v18  ;;  %17939 = vst [vmem:[#allocation17_spill] sm:$0xff] %v14698_v19  ;;  %12105 = vmatmul.mubr.msk.f32.gmra.mrb[2].mxu1 %vm366_vm0, %v14751_v31  ;;  %12302 = vmatmul.mubr.msk.f32.vlgmr.msra.gmra.mrb[0].mxu0 %vm366_vm0, %v14751_v31  ;;  %v14778_v34 = vld [vmem:[#allocation2 + $0x39] sm:$0xff]  ;;  %v14918_v60 = vld [vmem:[#allocation2 + $0x22] sm:$0xff] }
  0x2f   : > { %17940 = vst [vmem:[#allocation18_spill] sm:$0xff] %v14701_v20  ;;  %501 = vst.msk [vmem:[#allocation2 + $0x91] sm:$0xff] %vm366_vm0, %v14695_v18  ;;  %12107 = vmatprep.mubr.msk.f32.mxu1 %vm366_vm0, %v14753_v32  ;;  %12304 = vmatprep.mubr.msk.f32.mxu0 %vm366_vm0, %v14753_v32  ;;  %v14894_v55 = vld [vmem:[#allocation2 + $0x1a] sm:$0xff]  ;;  %v14922_v62 = vld [vmem:[#allocation2 + $0x32] sm:$0xff] }
  0x30   : > { %502 = vst.msk [vmem:[#allocation2 + $0x99] sm:$0xff] %vm366_vm0, %v14698_v19  ;;  %503 = vst.msk [vmem:[#allocation2 + $0xa9] sm:$0xff] %vm366_vm0, %v14701_v20  ;;  %v14780_v35 = vld [vmem:[#allocation2 + $0x49] sm:$0xff]  ;;  %12350 = vmatpush3.msra.mxu0 %v14606_v4  ;;  %v14934_v0 = vld [vmem:[#allocation2 + $0x3a] sm:$0xff] }
  0x31   : > { %17941 = vst [vmem:[#allocation19_spill] sm:$0xff] %v14710_v21  ;;  %17942 = vst [vmem:[#allocation20_spill] sm:$0xff] %v14713_v22  ;;  %12399 = vmatprep.subr.mxu0 %v14772_v33  ;;  %v14792_v36 = vld [vmem:[#allocation2 + $0x51] sm:$0xff]  ;;  %v14794_v37 = vld [vmem:[#allocation2 + $0x61] sm:$0xff] }
  0x32   : > { %17943 = vst [vmem:[#allocation21_spill] sm:$0xff] %v14716_v23  ;;  %504 = vst.msk [vmem:[#allocation2 + $0xb1] sm:$0xff] %vm366_vm0, %v14710_v21  ;;  %12108 = vmatmul.mubr.msk.f32.gmra.mrb[4].mxu1 %vm366_vm0, %v14778_v34  ;;  %12305 = vmatmul.mubr.msk.f32.gmra.mrb[2].mxu0 %vm366_vm0, %v14778_v34  ;;  %v14943_v2 = vld [vmem:[#allocation2 + $0x4a] sm:$0xff]  ;;  %v15039_v19 = vld [vmem:[#allocation2 + $0x18] sm:$0xff] }
  0x33   : > { %505 = vst.msk [vmem:[#allocation2 + $0xc1] sm:$0xff] %vm366_vm0, %v14713_v22  ;;  %506 = vst.msk [vmem:[#allocation2 + $0xc9] sm:$0xff] %vm366_vm0, %v14716_v23  ;;  %12110 = vmatprep.mubr.msk.f32.mxu1 %vm366_vm0, %v14780_v35  ;;  %12307 = vmatprep.mubr.msk.f32.mxu0 %vm366_vm0, %v14780_v35  ;;  %v14815_v41 = vld [vmem:[#allocation2 + $0x69] sm:$0xff]  ;;  %v15023_v23 = vld [vmem:[#allocation2] sm:$0xff] }
  0x34   : > { %17944 = vst [vmem:[#allocation22_spill] sm:$0xff] %v14726_v24  ;;  %17945 = vst [vmem:[#allocation23_spill] sm:$0xff] %v14729_v25  ;;  %v14824_v43 = vld [vmem:[#allocation2 + $0x79] sm:$0xff]  ;;  %v14854_v48 = vld [vmem:[#allocation2 + $0x81] sm:$0xff] }
  0x35   : > { %17946 = vst [vmem:[#allocation24_spill] sm:$0xff] %v14732_v26  ;;  %507 = vst.msk [vmem:[#allocation2 + $0xd9] sm:$0xff] %vm366_vm0, %v14726_v24  ;;  %v15035_v21 = vld [vmem:[#allocation2 + $0x8] sm:$0xff]  ;;  %v15046_v17 = vld [vmem:[%s17711_s2 + $0x18] sm:$0xff] }
  0x36   : > { %508 = vst.msk [vmem:[#allocation2 + $0xe1] sm:$0xff] %vm366_vm0, %v14729_v25  ;;  %509 = vst.msk [vmem:[#allocation2 + $0xf1] sm:$0xff] %vm366_vm0, %v14732_v26  ;;  %12111 = vmatmul.mubr.msk.f32.gmra.mrb[6].mxu1 %vm366_vm0, %v14792_v36  ;;  %12308 = vmatmul.mubr.msk.f32.gmra.mrb[4].mxu0 %vm366_vm0, %v14792_v36  ;;  %v14858_v49 = vld [vmem:[#allocation2 + $0x91] sm:$0xff]  ;;  %v15055_v14 = vld [vmem:[#allocation2 + $0x20] sm:$0xff] }
  0x37   : > { %17947 = vst [vmem:[#allocation25_spill] sm:$0xff] %v14741_v27  ;;  %17948 = vst [vmem:[#allocation26_spill] sm:$0xff] %v14744_v28  ;;  %12113 = vmatprep.mubr.msk.f32.mxu1 %vm366_vm0, %v14794_v37  ;;  %12310 = vmatprep.mubr.msk.f32.mxu0 %vm366_vm0, %v14794_v37  ;;  %v14868_v50 = vld [vmem:[#allocation2 + $0x99] sm:$0xff]  ;;  %v14870_v51 = vld [vmem:[#allocation2 + $0xa9] sm:$0xff] }
  0x38   : > { %17949 = vst [vmem:[#allocation27_spill] sm:$0xff] %v14747_v29  ;;  %17950 = vst [vmem:[#allocation28_spill] sm:$0xff] %v14749_v30  ;;  %v15005_v26 = vld [vmem:[#allocation2 + $0x9a] sm:$0xff]  ;;  %v15061_v12 = vld [vmem:[#allocation2 + $0x30] sm:$0xff] }
  0x39   : > { %17951 = vst [vmem:[#allocation29_spill] sm:$0xff] %v14751_v31  ;;  %17952 = vst [vmem:[#allocation30_spill] sm:$0xff] %v14753_v32  ;;  %v14880_v52 = vld [vmem:[#allocation2 + $0xb1] sm:$0xff]  ;;  %v15078_v11 = vld [vmem:[#allocation2 + $0x48] sm:$0xff] }
  0x3a   : > { %510 = vst.msk [vmem:[#allocation2 + $0xf9] sm:$0xff] %vm366_vm0, %v14741_v27  ;;  %511 = vst.msk [vmem:[#allocation2 + $0x109] sm:$0xff] %vm366_vm0, %v14744_v28  ;;  %12114 = vmatmul.mubr.msk.f32.gmra.mrb[8].mxu1 %vm366_vm0, %v14815_v41  ;;  %12311 = vmatmul.mubr.msk.f32.gmra.mrb[6].mxu0 %vm366_vm0, %v14815_v41  ;;  %v14882_v53 = vld [vmem:[#allocation2 + $0xc1] sm:$0xff]  ;;  %v14892_v54 = vld [vmem:[#allocation2 + $0xc9] sm:$0xff] }
  0x3b   : > { %512 = vst.msk [vmem:[#allocation2 + $0x111] sm:$0xff] %vm366_vm0, %v14747_v29  ;;  %17953 = vst [vmem:[#allocation31_spill] sm:$0xff] %v14778_v34  ;;  %12116 = vmatprep.mubr.msk.f32.mxu1 %vm366_vm0, %v14824_v43  ;;  %12313 = vmatprep.mubr.msk.f32.mxu0 %vm366_vm0, %v14824_v43  ;;  %v14993_v28 = vld [vmem:[#allocation2 + $0x92] sm:$0xff]  ;;  %v15009_v24 = vld [vmem:[#allocation2 + $0xaa] sm:$0xff] }
  0x3c   : > { %17954 = vst [vmem:[#allocation32_spill] sm:$0xff] %v14780_v35  ;;  %17955 = vst [vmem:[#allocation33_spill] sm:$0xff] %v14792_v36  ;;  %v14896_v56 = vld [vmem:[#allocation2 + $0xd9] sm:$0xff]  ;;  %v15025_v20 = vld [vmem:[#allocation2 + $0xc2] sm:$0xff] }
  0x3d   : > { %17956 = vst [vmem:[#allocation34_spill] sm:$0xff] %v14794_v37  ;;  %17957 = vst [vmem:[#allocation35_spill] sm:$0xff] %v14797_v38  ;;  %v14916_v59 = vld [vmem:[#allocation2 + $0xe1] sm:$0xff]  ;;  %v14920_v61 = vld [vmem:[#allocation2 + $0xf1] sm:$0xff] }
  0x3e   : > { %513 = vst.msk [vmem:[#allocation2 + $0x121] sm:$0xff] %vm366_vm0, %v14797_v38  ;;  %17958 = vst [vmem:[#allocation36_spill] sm:$0xff] %v14806_v39  ;;  %12117 = vmatmul.mubr.msk.f32.gmra.mrb[10].mxu1 %vm366_vm0, %v14854_v48  ;;  %12314 = vmatmul.mubr.msk.f32.gmra.mrb[8].mxu0 %vm366_vm0, %v14854_v48  ;;  %v14989_v38 = vld [vmem:[#allocation2 + $0x82] sm:$0xff]  ;;  %v15021_v22 = vld [vmem:[#allocation2 + $0xb2] sm:$0xff] }
  0x3f   : > { %17959 = vst [vmem:[#allocation37_spill] sm:$0xff] %v14809_v40  ;;  %17960 = vst [vmem:[#allocation38_spill] sm:$0xff] %v14815_v41  ;;  %12119 = vmatprep.mubr.msk.f32.mxu1 %vm366_vm0, %v14858_v49  ;;  %12316 = vmatprep.mubr.msk.f32.mxu0 %vm366_vm0, %v14858_v49  ;;  %v15037_v18 = vld [vmem:[#allocation2 + $0xca] sm:$0xff]  ;;  %v15041_v16 = vld [vmem:[#allocation2 + $0xda] sm:$0xff] }
  0x40   : > { %514 = vst.msk [vmem:[#allocation2 + $0x129] sm:$0xff] %vm366_vm0, %v14806_v39  ;;  %515 = vst.msk [vmem:[#allocation2 + $0x139] sm:$0xff] %vm366_vm0, %v14809_v40  ;;  %v14977_v40 = vld [vmem:[#allocation2 + $0x7a] sm:$0xff]  ;;  %v15057_v15 = vld [vmem:[#allocation2 + $0xe2] sm:$0xff] }
  0x41   : > { %17961 = vst [vmem:[#allocation39_spill] sm:$0xff] %v14822_v42  ;;  %17962 = vst [vmem:[#allocation40_spill] sm:$0xff] %v14824_v43  ;;  %v14932_v63 = vld [vmem:[#allocation2 + $0xf9] sm:$0xff]  ;;  %v14941_v4 = vld [vmem:[#allocation2 + $0x109] sm:$0xff] }
  0x42   : > { %516 = vst.msk [vmem:[#allocation2 + $0x141] sm:$0xff] %vm366_vm0, %v14822_v42  ;;  %17963 = vst [vmem:[#allocation41_spill] sm:$0xff] %v14829_v44  ;;  %12120 = vmatmul.mubr.msk.f32.gmra.mrb[12].mxu1 %vm366_vm0, %v14868_v50  ;;  %12317 = vmatmul.mubr.msk.f32.gmra.mrb[10].mxu0 %vm366_vm0, %v14868_v50  ;;  %v15063_v13 = vld [vmem:[#allocation2 + $0xf2] sm:$0xff]  ;;  %v15076_v7 = vld [vmem:[#allocation2 + $0xfa] sm:$0xff] }
  0x43   : > { %17964 = vst [vmem:[#allocation42_spill] sm:$0xff] %v14832_v45  ;;  %517 = vst.msk [vmem:[#allocation2 + $0x151] sm:$0xff] %vm366_vm0, %v14829_v44  ;;  %12122 = vmatprep.mubr.msk.f32.mxu1 %vm366_vm0, %v14870_v51  ;;  %12319 = vmatprep.mubr.msk.f32.mxu0 %vm366_vm0, %v14870_v51  ;;  %v14973_v44 = vld [vmem:[#allocation2 + $0x6a] sm:$0xff]  ;;  %v15110_v9 = vld [vmem:[#allocation2 + $0x78] sm:$0xff] }
  0x44   : > { %518 = vst.msk [vmem:[#allocation2 + $0x159] sm:$0xff] %vm366_vm0, %v14832_v45  ;;  %17965 = vst [vmem:[#allocation43_spill] sm:$0xff] %v14839_v46  ;;  %v15080_v5 = vld [vmem:[#allocation2 + $0x10a] sm:$0xff] }
  0x45   : > { %519 = vst.msk [vmem:[#allocation2 + $0x169] sm:$0xff] %vm366_vm0, %v14839_v46  ;;  %17966 = vst [vmem:[#allocation44_spill] sm:$0xff] %v14848_v47  ;;  %v14959_v46 = vld [vmem:[#allocation2 + $0x121] sm:$0xff]  ;;  %v15090_v6 = vld [vmem:[#allocation2 + $0x50] sm:$0xff] }
  0x46   : > { %17967 = vst [vmem:[#allocation45_spill] sm:$0xff] %v14854_v48  ;;  %520 = vst.msk [vmem:[#allocation2 + $0x171] sm:$0xff] %vm366_vm0, %v14848_v47  ;;  %12123 = vmatmul.mubr.msk.f32.gmra.mrb[14].mxu1 %vm366_vm0, %v14880_v52  ;;  %12320 = vmatmul.mubr.msk.f32.gmra.mrb[12].mxu0 %vm366_vm0, %v14880_v52  ;;  %v15106_v30 = vld [vmem:[#allocation2 + $0x68] sm:$0xff] }
  0x47   : > { %17968 = vst [vmem:[#allocation46_spill] sm:$0xff] %v14858_v49  ;;  %17969 = vst [vmem:[#allocation47_spill] sm:$0xff] %v14868_v50  ;;  %12125 = vmatprep.mubr.msk.f32.mxu1 %vm366_vm0, %v14882_v53  ;;  %12322 = vmatprep.mubr.msk.f32.mxu0 %vm366_vm0, %v14882_v53  ;;  %v14971_v47 = vld [vmem:[#allocation2 + $0x129] sm:$0xff]  ;;  %v14975_v45 = vld [vmem:[#allocation2 + $0x139] sm:$0xff] }
  0x48   : > { %17970 = vst [vmem:[#allocation48_spill] sm:$0xff] %v14870_v51  ;;  %17971 = vst [vmem:[#allocation49_spill] sm:$0xff] %v14880_v52  ;;  %v15096_v31 = vld [vmem:[#allocation2 + $0x122] sm:$0xff]  ;;  %v15108_v10 = vld [vmem:[#allocation2 + $0x12a] sm:$0xff] }
  0x49   : > { %17972 = vst [vmem:[#allocation50_spill] sm:$0xff] %v14882_v53  ;;  %17973 = vst [vmem:[#allocation51_spill] sm:$0xff] %v14892_v54  ;;  %v14987_v42 = vld [vmem:[#allocation2 + $0x141] sm:$0xff] }
  0x4a   : > { %17974 = vst [vmem:[#allocation52_spill] sm:$0xff] %v14894_v55  ;;  %17975 = vst [vmem:[#allocation53_spill] sm:$0xff] %v14896_v56  ;;  %12126 = vmatmul.mubr.msk.f32.gmra.mrb[16].mxu1 %vm366_vm0, %v14892_v54  ;;  %12323 = vmatmul.mubr.msk.f32.gmra.mrb[14].mxu0 %vm366_vm0, %v14892_v54  ;;  %v14991_v39 = vld [vmem:[#allocation2 + $0x151] sm:$0xff]  ;;  %v15184_v54 = vld [vmem:[#allocation2 + $0xe0] sm:$0xff] }
  0x4b   : > { %17976 = vst [vmem:[#allocation54_spill] sm:$0xff] %v14899_v57  ;;  %17977 = vst [vmem:[#allocation55_spill] sm:$0xff] %v14902_v58  ;;  %12128 = vmatprep.mubr.msk.f32.mxu1 %vm366_vm0, %v14896_v56  ;;  %12351 = vmatprep.mubr.msk.f32.mxu0 %vm366_vm0, %v14894_v55  ;;  %v15003_v29 = vld [vmem:[#allocation2 + $0x159] sm:$0xff] }
  0x4c   : > { %521 = vst.msk [vmem:[#allocation2 + $0x181] sm:$0xff] %vm366_vm0, %v14899_v57  ;;  %522 = vst.msk [vmem:[#allocation2 + $0x189] sm:$0xff] %vm366_vm0, %v14902_v58  ;;  %v14955_v57 = vld [vmem:[#allocation2 + $0x111] sm:$0xff]  ;;  %v15007_v27 = vld [vmem:[#allocation2 + $0x169] sm:$0xff] }
  0x4d   : > { %17978 = vst [vmem:[#allocation56_spill] sm:$0xff] %v14916_v59  ;;  %17979 = vst [vmem:[#allocation57_spill] sm:$0xff] %v14918_v60  ;;  %v14957_v58 = vld [vmem:[#allocation2 + $0x52] sm:$0xff] }
  0x4e   : > { %17980 = vst [vmem:[#allocation58_spill] sm:$0xff] %v14920_v61  ;;  %12129 = vmatmul.mubr.msk.f32.gmra.mrb[18].mxu1 %vm366_vm0, %v14916_v59  ;;  %12352 = vmatmul.mubr.msk.f32.vlgmr.msra.gmra.mrb[0].mxu0 %vm366_vm0, %v14918_v60  ;;  %17981 = vst [vmem:[#allocation59_spill] sm:$0xff] %v14932_v63  ;;  %v15019_v25 = vld [vmem:[#allocation2 + $0x171] sm:$0xff] }
  0x4f   : > { %12131 = vmatprep.mubr.msk.f32.mxu1 %vm366_vm0, %v14920_v61  ;;  %12354 = vmatprep.mubr.msk.f32.mxu0 %vm366_vm0, %v14922_v62  ;;  %17982 = vst [vmem:[#allocation60_spill] sm:$0xff] %v14941_v4  ;;  %17983 = vst [vmem:[#allocation61_spill] sm:$0xff] %v14955_v57  ;;  %v15158_v61 = vld [vmem:[#allocation2 + $0xc0] sm:$0xff] }
  0x50   : > { %12400 = vmatpush3.msra.mxu0 %v14772_v33  ;;  %17984 = vst [vmem:[#allocation62_spill] sm:$0xff] %v14959_v46  ;;  %v14961_v33 = vld [vmem:[#allocation2 + $0x62] sm:$0xff]  ;;  %17985 = vst [vmem:[#allocation63_spill] sm:$0xff] %v14971_v47 }
  0x51   : > { %12449 = vmatprep.subr.mxu0 %v14939_v1  ;;  %17986 = vst [vmem:[#allocation64_spill] sm:$0xff] %v14975_v45  ;;  %17987 = vst [vmem:[#allocation65_spill] sm:$0xff] %v14987_v42 }
  0x52   : > { %12132 = vmatmul.mubr.msk.f32.gmra.mrb[20].mxu1 %vm366_vm0, %v14932_v63  ;;  %12355 = vmatmul.mubr.msk.f32.gmra.mrb[2].mxu0 %vm366_vm0, %v14934_v0  ;;  %17988 = vst [vmem:[#allocation66_spill] sm:$0xff] %v14991_v39  ;;  %17989 = vst [vmem:[#allocation67_spill] sm:$0xff] %v15003_v29  ;;  %v15156_v63 = vld [vmem:[#allocation2 + $0x172] sm:$0xff] }
  0x53   : > { %12134 = vmatprep.mubr.msk.f32.mxu1 %vm366_vm0, %v14941_v4  ;;  %12357 = vmatprep.mubr.msk.f32.mxu0 %vm366_vm0, %v14943_v2  ;;  %17990 = vst [vmem:[#allocation68_spill] sm:$0xff] %v15007_v27  ;;  %17991 = vst [vmem:[#allocation69_spill] sm:$0xff] %v15019_v25  ;;  %v15154_v4 = vld [vmem:[#allocation2 + $0xb0] sm:$0xff]  ;;  %v15160_v59 = vld [vmem:[#allocation2 + $0x182] sm:$0xff] }
  0x54   : > { %17992 = vst [vmem:[#allocation70_spill] sm:$0xff] %v15023_v23  ;;  %17993 = vst [vmem:[#allocation71_spill] sm:$0xff] %v15035_v21  ;;  %v15172_v56 = vld [vmem:[#allocation2 + $0x18a] sm:$0xff] }
  0x55   : > { %17994 = vst [vmem:[#allocation72_spill] sm:$0xff] %v15039_v19  ;;  %17995 = vst [vmem:[#allocation73_spill] sm:$0xff] %v15055_v14 }
  0x56   : > { %12135 = vmatmul.mubr.msk.f32.gmra.mrb[22].mxu1 %vm366_vm0, %v14955_v57  ;;  %12358 = vmatmul.mubr.msk.f32.gmra.mrb[4].mxu0 %vm366_vm0, %v14957_v58  ;;  %17996 = vst [vmem:[#allocation74_spill] sm:$0xff] %v15061_v12  ;;  %17998 = vst [vmem:[#allocation76_spill] sm:$0xff] %v15078_v11  ;;  %v15144_v57 = vld [vmem:[#allocation2 + $0x16a] sm:$0xff] }
  0x57   : > { %12137 = vmatprep.mubr.msk.f32.mxu1 %vm366_vm0, %v14959_v46  ;;  %12360 = vmatprep.mubr.msk.f32.mxu0 %vm366_vm0, %v14961_v33  ;;  %17999 = vst [vmem:[#allocation77_spill] sm:$0xff] %v15090_v6  ;;  %18001 = vst [vmem:[#allocation79_spill] sm:$0xff] %v15106_v30  ;;  %v15142_v46 = vld [vmem:[#allocation2 + $0xa8] sm:$0xff] }
  0x58   : > { %18002 = vst [vmem:[#allocation80_spill] sm:$0xff] %v15110_v9  ;;  %18007 = vst [vmem:[#allocation85_spill] sm:$0xff] %v15142_v46 }
  0x59   : > { %18008 = vst [vmem:[#allocation86_spill] sm:$0xff] %v15144_v57  ;;  %18009 = vst [vmem:[#allocation87_spill] sm:$0xff] %v15154_v4 }
  0x5a   : > { %12138 = vmatmul.mubr.msk.f32.gmra.mrb[24].mxu1 %vm366_vm0, %v14971_v47  ;;  %12361 = vmatmul.mubr.msk.f32.gmra.mrb[6].mxu0 %vm366_vm0, %v14973_v44  ;;  %v15140_v47 = vld [vmem:[#allocation2 + $0x15a] sm:$0xff]  ;;  %18010 = vst [vmem:[#allocation88_spill] sm:$0xff] %v15156_v63  ;;  %18011 = vst [vmem:[#allocation89_spill] sm:$0xff] %v15158_v61 }
  0x5b   : > { %12140 = vmatprep.mubr.msk.f32.mxu1 %vm366_vm0, %v14975_v45  ;;  %12363 = vmatprep.mubr.msk.f32.mxu0 %vm366_vm0, %v14977_v40  ;;  %v15138_v45 = vld [vmem:[#allocation2 + $0x98] sm:$0xff]  ;;  %18006 = vst [vmem:[#allocation84_spill] sm:$0xff] %v15140_v47  ;;  %18012 = vst [vmem:[#allocation90_spill] sm:$0xff] %v15160_v59 }
  0x5c   : > { %18005 = vst [vmem:[#allocation83_spill] sm:$0xff] %v15138_v45  ;;  %18013 = vst [vmem:[#allocation91_spill] sm:$0xff] %v15172_v56 }
  0x5e   : > { %12141 = vmatmul.mubr.msk.f32.gmra.mrb[26].mxu1 %vm366_vm0, %v14987_v42  ;;  %12364 = vmatmul.mubr.msk.f32.gmra.mrb[8].mxu0 %vm366_vm0, %v14989_v38  ;;  %v15128_v42 = vld [vmem:[#allocation2 + $0x152] sm:$0xff] }
  0x5f   : > { %12143 = vmatprep.mubr.msk.f32.mxu1 %vm366_vm0, %v14991_v39  ;;  %12366 = vmatprep.mubr.msk.f32.mxu0 %vm366_vm0, %v14993_v28  ;;  %v15126_v39 = vld [vmem:[#allocation2 + $0x90] sm:$0xff] }
  0x60   : > { %18004 = vst [vmem:[#allocation82_spill] sm:$0xff] %v15126_v39 }
  0x62   : > { %12144 = vmatmul.mubr.msk.f32.gmra.mrb[28].mxu1 %vm366_vm0, %v15003_v29  ;;  %12367 = vmatmul.mubr.msk.f32.gmra.mrb[10].mxu0 %vm366_vm0, %v15005_v26  ;;  %v15124_v29 = vld [vmem:[#allocation2 + $0x142] sm:$0xff] }
  0x63   : > { %12146 = vmatprep.mubr.msk.f32.mxu1 %vm366_vm0, %v15007_v27  ;;  %12369 = vmatprep.mubr.msk.f32.mxu0 %vm366_vm0, %v15009_v24  ;;  %v15122_v27 = vld [vmem:[#allocation2 + $0x80] sm:$0xff] }
  0x64   : > { %18003 = vst [vmem:[#allocation81_spill] sm:$0xff] %v15122_v27 }
  0x66   : > { %12147 = vmatmul.mubr.msk.f32.gmra.mrb[30].mxu1 %vm366_vm0, %v15019_v25  ;;  %12370 = vmatmul.mubr.msk.f32.gmra.mrb[12].mxu0 %vm366_vm0, %v15021_v22  ;;  %v15112_v25 = vld [vmem:[#allocation2 + $0x13a] sm:$0xff] }
  0x67   : > { %12151 = vmatprep.mubr.msk.f32.mxu1 %vm366_vm0, %v15023_v23  ;;  %12372 = vmatprep.mubr.msk.f32.mxu0 %vm366_vm0, %v15025_v20  ;;  %v15094_v23 = vld [vmem:[#allocation2 + $0x60] sm:$0xff] }
  0x68   : > { %18000 = vst [vmem:[#allocation78_spill] sm:$0xff] %v15094_v23 }
  0x6a   : > { %12152 = vmatmul.mubr.msk.f32.vlgmr.msra.gmra.mrb[0].mxu1 %vm366_vm0, %v15035_v21  ;;  %12373 = vmatmul.mubr.msk.f32.gmra.mrb[14].mxu0 %vm366_vm0, %v15037_v18  ;;  %v15092_v21 = vld [vmem:[#allocation2 + $0x112] sm:$0xff] }
  0x6b   : > { %12200 = vmatpush3.msra.mxu1 %v14642_v8  ;;  %12154 = vmatprep.mubr.msk.f32.mxu1 %vm366_vm0, %v15039_v19  ;;  %v15074_v8 = vld [vmem:[#allocation2 + $0x38] sm:$0xff] }
  0x6c   : > { %12375 = vmatprep.mubr.msk.f32.mxu0 %vm366_vm0, %v15041_v16  ;;  %12249 = vmatprep.subr.mxu1 %v15046_v17  ;;  %17997 = vst [vmem:[#allocation75_spill] sm:$0xff] %v15074_v8  ;;  %v15174_v19 = vld [vmem:[#allocation2 + $0xd8] sm:$0xff] }
  0x6e   : > { %12155 = vmatmul.mubr.msk.f32.gmra.mrb[2].mxu1 %vm366_vm0, %v15055_v14  ;;  %12376 = vmatmul.mubr.msk.f32.gmra.mrb[16].mxu0 %vm366_vm0, %v15057_v15  ;;  %v15170_v14 = vld [vmem:[#allocation2 + $0xc8] sm:$0xff] }
  0x6f   : > { %12157 = vmatprep.mubr.msk.f32.mxu1 %vm366_vm0, %v15061_v12  ;;  %12378 = vmatprep.mubr.msk.f32.mxu0 %vm366_vm0, %v15063_v13 }
  0x72   : > { %12158 = vmatmul.mubr.msk.f32.gmra.mrb[4].mxu1 %vm366_vm0, %v15074_v8  ;;  %12379 = vmatmul.mubr.msk.f32.gmra.mrb[18].mxu0 %vm366_vm0, %v15076_v7 }
  0x73   : > { %12160 = vmatprep.mubr.msk.f32.mxu1 %vm366_vm0, %v15078_v11  ;;  %12381 = vmatprep.mubr.msk.f32.mxu0 %vm366_vm0, %v15080_v5 }
  0x76   : > { %12161 = vmatmul.mubr.msk.f32.gmra.mrb[6].mxu1 %vm366_vm0, %v15090_v6  ;;  %12382 = vmatmul.mubr.msk.f32.gmra.mrb[20].mxu0 %vm366_vm0, %v15092_v21 }
  0x77   : > { %12163 = vmatprep.mubr.msk.f32.mxu1 %vm366_vm0, %v15094_v23  ;;  %12384 = vmatprep.mubr.msk.f32.mxu0 %vm366_vm0, %v15096_v31 }
  0x7a   : > { %12164 = vmatmul.mubr.msk.f32.gmra.mrb[8].mxu1 %vm366_vm0, %v15106_v30  ;;  %12385 = vmatmul.mubr.msk.f32.gmra.mrb[22].mxu0 %vm366_vm0, %v15108_v10 }
  0x7b   : > { %12166 = vmatprep.mubr.msk.f32.mxu1 %vm366_vm0, %v15110_v9  ;;  %12387 = vmatprep.mubr.msk.f32.mxu0 %vm366_vm0, %v15112_v25 }
  0x7e   : > { %12167 = vmatmul.mubr.msk.f32.gmra.mrb[10].mxu1 %vm366_vm0, %v15122_v27  ;;  %12388 = vmatmul.mubr.msk.f32.gmra.mrb[24].mxu0 %vm366_vm0, %v15124_v29 }
  0x7f   : > { %12169 = vmatprep.mubr.msk.f32.mxu1 %vm366_vm0, %v15126_v39  ;;  %12390 = vmatprep.mubr.msk.f32.mxu0 %vm366_vm0, %v15128_v42 }
  0x82   : > { %12170 = vmatmul.mubr.msk.f32.gmra.mrb[12].mxu1 %vm366_vm0, %v15138_v45  ;;  %12391 = vmatmul.mubr.msk.f32.gmra.mrb[26].mxu0 %vm366_vm0, %v15140_v47 }
  0x83   : > { %12172 = vmatprep.mubr.msk.f32.mxu1 %vm366_vm0, %v15142_v46  ;;  %12393 = vmatprep.mubr.msk.f32.mxu0 %vm366_vm0, %v15144_v57 }
  0x86   : > { %12173 = vmatmul.mubr.msk.f32.gmra.mrb[14].mxu1 %vm366_vm0, %v15154_v4  ;;  %12394 = vmatmul.mubr.msk.f32.gmra.mrb[28].mxu0 %vm366_vm0, %v15156_v63  ;;  %v15203_v63 = vld [vmem:[#allocation2 + $0x108] sm:$0xff] }
  0x87   : > { %12175 = vmatprep.mubr.msk.f32.mxu1 %vm366_vm0, %v15158_v61  ;;  %12396 = vmatprep.mubr.msk.f32.mxu0 %vm366_vm0, %v15160_v59  ;;  %v15186_v59 = vld [vmem:[#allocation2 + $0xf0] sm:$0xff] }
  0x8a   : > { %12176 = vmatmul.mubr.msk.f32.gmra.mrb[16].mxu1 %vm366_vm0, %v15170_v14  ;;  %12397 = vmatmul.mubr.msk.f32.gmra.mrb[30].mxu0 %vm366_vm0, %v15172_v56  ;;  %v15195_v56 = vld [vmem:[%s17711_s2 + $0x40] sm:$0xff] }
  0x8b   : > { %12178 = vmatprep.mubr.msk.f32.mxu1 %vm366_vm0, %v15174_v19  ;;  %12401 = vmatprep.mubr.msk.f32.mxu0 %vm366_vm0, %v15061_v12  ;;  %v15201_v12 = vld [vmem:[#allocation2 + $0xf8] sm:$0xff] }
  0x8e   : > { %12179 = vmatmul.mubr.msk.f32.gmra.mrb[18].mxu1 %vm366_vm0, %v15184_v54  ;;  %12402 = vmatmul.mubr.msk.f32.vlgmr.msra.gmra.mrb[0].mxu0 %vm366_vm0, %v15074_v8  ;;  %v15217_v8 = vld [vmem:[#allocation2 + $0x120] sm:$0xff] }
  0x8f   : > { %12181 = vmatprep.mubr.msk.f32.mxu1 %vm366_vm0, %v15186_v59  ;;  %12404 = vmatprep.mubr.msk.f32.mxu0 %vm366_vm0, %v15078_v11  ;;  %v15215_v11 = vld [vmem:[#allocation2 + $0x110] sm:$0xff]  ;;  %18014 = vst [vmem:[#allocation92_spill] sm:$0xff] %v15217_v8 }
  0x90   : > { %12450 = vmatpush3.msra.mxu0 %v14939_v1  ;;  %v15227_v1 = vld [vmem:[#allocation2 + $0x128] sm:$0xff] }
  0x91   : > { %12499 = vmatprep.subr.mxu0 %v15195_v56  ;;  %18015 = vst [vmem:[#allocation93_spill] sm:$0xff] %v15227_v1 }
  0x92   : > { %12182 = vmatmul.mubr.msk.f32.gmra.mrb[20].mxu1 %vm366_vm0, %v15201_v12  ;;  %12405 = vmatmul.mubr.msk.f32.gmra.mrb[2].mxu0 %vm366_vm0, %v15090_v6  ;;  %v15229_v6 = vld [vmem:[#allocation2 + $0x138] sm:$0xff] }
  0x93   : > { %12184 = vmatprep.mubr.msk.f32.mxu1 %vm366_vm0, %v15203_v63  ;;  %12407 = vmatprep.mubr.msk.f32.mxu0 %vm366_vm0, %v15094_v23  ;;  %18016 = vst [vmem:[#allocation94_spill] sm:$0xff] %v15229_v6  ;;  %v15241_v23 = vld [vmem:[#allocation2 + $0x150] sm:$0xff] }
  0x94   : > { %18018 = vst [vmem:[#allocation96_spill] sm:$0xff] %v15241_v23 }
  0x96   : > { %12185 = vmatmul.mubr.msk.f32.gmra.mrb[22].mxu1 %vm366_vm0, %v15215_v11  ;;  %12408 = vmatmul.mubr.msk.f32.gmra.mrb[4].mxu0 %vm366_vm0, %v15106_v30  ;;  %v15239_v30 = vld [vmem:[#allocation2 + $0x140] sm:$0xff] }
  0x97   : > { %12187 = vmatprep.mubr.msk.f32.mxu1 %vm366_vm0, %v15217_v8  ;;  %12410 = vmatprep.mubr.msk.f32.mxu0 %vm366_vm0, %v15110_v9  ;;  %18017 = vst [vmem:[#allocation95_spill] sm:$0xff] %v15239_v30  ;;  %v15253_v9 = vld [vmem:[#allocation2 + $0x168] sm:$0xff] }
  0x98   : > { %18020 = vst [vmem:[#allocation98_spill] sm:$0xff] %v15253_v9 }
  0x9a   : > { %12188 = vmatmul.mubr.msk.f32.gmra.mrb[24].mxu1 %vm366_vm0, %v15227_v1  ;;  %12411 = vmatmul.mubr.msk.f32.gmra.mrb[6].mxu0 %vm366_vm0, %v15122_v27  ;;  %v15251_v27 = vld [vmem:[#allocation2 + $0x158] sm:$0xff] }
  0x9b   : > { %12190 = vmatprep.mubr.msk.f32.mxu1 %vm366_vm0, %v15229_v6  ;;  %12413 = vmatprep.mubr.msk.f32.mxu0 %vm366_vm0, %v15126_v39  ;;  %18019 = vst [vmem:[#allocation97_spill] sm:$0xff] %v15251_v27  ;;  %v15265_v39 = vld [vmem:[#allocation2 + $0x2] sm:$0xff] }
  0x9c   : > { %18022 = vst [vmem:[#allocation100_spill] sm:$0xff] %v15265_v39 }
  0x9e   : > { %12191 = vmatmul.mubr.msk.f32.gmra.mrb[26].mxu1 %vm366_vm0, %v15239_v30  ;;  %12414 = vmatmul.mubr.msk.f32.gmra.mrb[8].mxu0 %vm366_vm0, %v15138_v45  ;;  %v15263_v45 = vld [vmem:[#allocation2 + $0x170] sm:$0xff] }
  0x9f   : > { %12193 = vmatprep.mubr.msk.f32.mxu1 %vm366_vm0, %v15241_v23  ;;  %12416 = vmatprep.mubr.msk.f32.mxu0 %vm366_vm0, %v15142_v46  ;;  %18021 = vst [vmem:[#allocation99_spill] sm:$0xff] %v15263_v45 }
  0xa2   : > { %12194 = vmatmul.mubr.msk.f32.gmra.mrb[28].mxu1 %vm366_vm0, %v15251_v27  ;;  %12417 = vmatmul.mubr.msk.f32.gmra.mrb[10].mxu0 %vm366_vm0, %v15154_v4  ;;  %v15275_v4 = vld [vmem:[#allocation2 + $0xa] sm:$0xff] }
  0xa3   : > { %12196 = vmatprep.mubr.msk.f32.mxu1 %vm366_vm0, %v15253_v9  ;;  %12419 = vmatprep.mubr.msk.f32.mxu0 %vm366_vm0, %v15158_v61  ;;  %18023 = vst [vmem:[#allocation101_spill] sm:$0xff] %v15275_v4 }
  0xa6   : > { %12197 = vmatmul.mubr.msk.f32.gmra.mrb[30].mxu1 %vm366_vm0, %v15263_v45  ;;  %12420 = vmatmul.mubr.msk.f32.gmra.mrb[12].mxu0 %vm366_vm0, %v15170_v14 }
  0xa7   : > { %12201 = vmatprep.mubr.msk.f32.mxu1 %vm366_vm0, %v15265_v39  ;;  %12422 = vmatprep.mubr.msk.f32.mxu0 %vm366_vm0, %v15174_v19  ;;  %v18031_v39 = vld [vmem:[#allocation53_spill] sm:$0xff] }
  0xaa   : > { %12202 = vmatmul.mubr.msk.f32.vlgmr.msra.gmra.mrb[0].mxu1 %vm366_vm0, %v15275_v4  ;;  %12423 = vmatmul.mubr.msk.f32.gmra.mrb[14].mxu0 %vm366_vm0, %v15184_v54  ;;  %v15349_v4 = vld [vmem:[#allocation2 + $0x1a0] sm:$0xff] }
  0xab   : > { %12250 = vmatpush3.msra.mxu1 %v15046_v17  ;;  %12204 = vmatprep.mubr.msk.f32.mxu1 %vm366_vm0, %v14894_v55  ;;  %v15327_v17 = vld [vmem:[#allocation2 + $0x180] sm:$0xff]  ;;  %v15339_v55 = vld [vmem:[#allocation2 + $0x198] sm:$0xff]  ;;  %18027 = vst [vmem:[#allocation105_spill] sm:$0xff] %v15349_v4 }
  0xac   : > { %12425 = vmatprep.mubr.msk.f32.mxu0 %vm366_vm0, %v15186_v59  ;;  %13449 = vmatprep.subr.mxu1 %v14599_v3  ;;  %18024 = vst [vmem:[#allocation102_spill] sm:$0xff] %v15327_v17  ;;  %18026 = vst [vmem:[#allocation104_spill] sm:$0xff] %v15339_v55 }
  0xae   : > { %12205 = vmatmul.mubr.msk.f32.gmra.mrb[2].mxu1 %vm366_vm0, %v14918_v60  ;;  %12426 = vmatmul.mubr.msk.f32.gmra.mrb[16].mxu0 %vm366_vm0, %v15201_v12  ;;  %v15337_v60 = vld [vmem:[#allocation2 + $0x188] sm:$0xff] }
  0xaf   : > { %12207 = vmatprep.mubr.msk.f32.mxu1 %vm366_vm0, %v14922_v62  ;;  %12428 = vmatprep.mubr.msk.f32.mxu0 %vm366_vm0, %v15203_v63  ;;  %18025 = vst [vmem:[#allocation103_spill] sm:$0xff] %v15337_v60 }
  0xb2   : > { %12208 = vmatmul.mubr.msk.f32.gmra.mrb[4].mxu1 %vm366_vm0, %v14934_v0  ;;  %12429 = vmatmul.mubr.msk.f32.gmra.mrb[18].mxu0 %vm366_vm0, %v15215_v11 }
  0xb3   : > { %12210 = vmatprep.mubr.msk.f32.mxu1 %vm366_vm0, %v14943_v2  ;;  %12431 = vmatprep.mubr.msk.f32.mxu0 %vm366_vm0, %v15217_v8 }
  0xb6   : > { %12211 = vmatmul.mubr.msk.f32.gmra.mrb[6].mxu1 %vm366_vm0, %v14957_v58  ;;  %12432 = vmatmul.mubr.msk.f32.gmra.mrb[20].mxu0 %vm366_vm0, %v15227_v1 }
  0xb7   : > { %12213 = vmatprep.mubr.msk.f32.mxu1 %vm366_vm0, %v14961_v33  ;;  %12434 = vmatprep.mubr.msk.f32.mxu0 %vm366_vm0, %v15229_v6 }
  0xba   : > { %12214 = vmatmul.mubr.msk.f32.gmra.mrb[8].mxu1 %vm366_vm0, %v14973_v44  ;;  %12435 = vmatmul.mubr.msk.f32.gmra.mrb[22].mxu0 %vm366_vm0, %v15239_v30 }
  0xbb   : > { %12216 = vmatprep.mubr.msk.f32.mxu1 %vm366_vm0, %v14977_v40  ;;  %12437 = vmatprep.mubr.msk.f32.mxu0 %vm366_vm0, %v15241_v23 }
  0xbe   : > { %12217 = vmatmul.mubr.msk.f32.gmra.mrb[10].mxu1 %vm366_vm0, %v14989_v38  ;;  %12438 = vmatmul.mubr.msk.f32.gmra.mrb[24].mxu0 %vm366_vm0, %v15251_v27 }
  0xbf   : > { %12219 = vmatprep.mubr.msk.f32.mxu1 %vm366_vm0, %v14993_v28  ;;  %12440 = vmatprep.mubr.msk.f32.mxu0 %vm366_vm0, %v15253_v9 }
  0xc2   : > { %12220 = vmatmul.mubr.msk.f32.gmra.mrb[12].mxu1 %vm366_vm0, %v15005_v26  ;;  %12441 = vmatmul.mubr.msk.f32.gmra.mrb[26].mxu0 %vm366_vm0, %v15263_v45 }
  0xc3   : > { %12222 = vmatprep.mubr.msk.f32.mxu1 %vm366_vm0, %v15009_v24  ;;  %12443 = vmatprep.mubr.msk.f32.mxu0 %vm366_vm0, %v15327_v17 }
  0xc6   : > { %12223 = vmatmul.mubr.msk.f32.gmra.mrb[14].mxu1 %vm366_vm0, %v15021_v22  ;;  %12444 = vmatmul.mubr.msk.f32.gmra.mrb[28].mxu0 %vm366_vm0, %v15337_v60 }
  0xc7   : > { %12225 = vmatprep.mubr.msk.f32.mxu1 %vm366_vm0, %v15025_v20  ;;  %12446 = vmatprep.mubr.msk.f32.mxu0 %vm366_vm0, %v15339_v55  ;;  %v18030_v55 = vld [vmem:[#allocation72_spill] sm:$0xff] }
  0xca   : > { %12226 = vmatmul.mubr.msk.f32.gmra.mrb[16].mxu1 %vm366_vm0, %v15037_v18  ;;  %12447 = vmatmul.mubr.msk.f32.gmra.mrb[30].mxu0 %vm366_vm0, %v15349_v4  ;;  %v18029_v4 = vld [vmem:[#allocation51_spill] sm:$0xff] }
  0xcb   : > { %12228 = vmatprep.mubr.msk.f32.mxu1 %vm366_vm0, %v15041_v16  ;;  %12451 = vmatprep.mubr.msk.f32.mxu0 %vm366_vm0, %v14753_v32  ;;  %v18053_v32 = vld [vmem:[#allocation67_spill] sm:$0xff] }
  0xce   : > { %12229 = vmatmul.mubr.msk.f32.gmra.mrb[18].mxu1 %vm366_vm0, %v15057_v15  ;;  %12452 = vmatmul.mubr.msk.f32.vlgmr.msra.gmra.mrb[0].mxu0 %vm366_vm0, %v14778_v34  ;;  %v18051_v34 = vld [vmem:[#allocation66_spill] sm:$0xff] }
  0xcf   : > { %12231 = vmatprep.mubr.msk.f32.mxu1 %vm366_vm0, %v15063_v13  ;;  %12454 = vmatprep.mubr.msk.f32.mxu0 %vm366_vm0, %v14780_v35  ;;  %v18049_v35 = vld [vmem:[#allocation65_spill] sm:$0xff] }
  0xd0   : > { %12500 = vmatpush3.msra.mxu0 %v15195_v56  ;;  %v18028_v56 = vld [vmem:[#allocation88_spill] sm:$0xff] }
  0xd2   : > { %12232 = vmatmul.mubr.msk.f32.gmra.mrb[20].mxu1 %vm366_vm0, %v15076_v7  ;;  %12455 = vmatmul.mubr.msk.f32.gmra.mrb[2].mxu0 %vm366_vm0, %v14792_v36  ;;  %v18047_v36 = vld [vmem:[#allocation64_spill] sm:$0xff] }
  0xd3   : > { %12234 = vmatprep.mubr.msk.f32.mxu1 %vm366_vm0, %v15080_v5  ;;  %12457 = vmatprep.mubr.msk.f32.mxu0 %vm366_vm0, %v14794_v37  ;;  %v18045_v37 = vld [vmem:[#allocation63_spill] sm:$0xff] }
  0xd6   : > { %12235 = vmatmul.mubr.msk.f32.gmra.mrb[22].mxu1 %vm366_vm0, %v15092_v21  ;;  %12458 = vmatmul.mubr.msk.f32.gmra.mrb[4].mxu0 %vm366_vm0, %v14815_v41  ;;  %v18043_v41 = vld [vmem:[#allocation62_spill] sm:$0xff] }
  0xd7   : > { %12237 = vmatprep.mubr.msk.f32.mxu1 %vm366_vm0, %v15096_v31  ;;  %12460 = vmatprep.mubr.msk.f32.mxu0 %vm366_vm0, %v14824_v43  ;;  %v18042_v43 = vld [vmem:[#allocation78_spill] sm:$0xff] }
  0xda   : > { %12238 = vmatmul.mubr.msk.f32.gmra.mrb[24].mxu1 %vm366_vm0, %v15108_v10  ;;  %12461 = vmatmul.mubr.msk.f32.gmra.mrb[6].mxu0 %vm366_vm0, %v14854_v48  ;;  %v18039_v48 = vld [vmem:[#allocation60_spill] sm:$0xff] }
  0xdb   : > { %12240 = vmatprep.mubr.msk.f32.mxu1 %vm366_vm0, %v15112_v25  ;;  %12463 = vmatprep.mubr.msk.f32.mxu0 %vm366_vm0, %v14858_v49  ;;  %v18037_v49 = vld [vmem:[#allocation59_spill] sm:$0xff] }
  0xde   : > { %12241 = vmatmul.mubr.msk.f32.gmra.mrb[26].mxu1 %vm366_vm0, %v15124_v29  ;;  %12464 = vmatmul.mubr.msk.f32.gmra.mrb[8].mxu0 %vm366_vm0, %v14868_v50  ;;  %v18036_v50 = vld [vmem:[#allocation75_spill] sm:$0xff] }
  0xdf   : > { %12243 = vmatprep.mubr.msk.f32.mxu1 %vm366_vm0, %v15128_v42  ;;  %12466 = vmatprep.mubr.msk.f32.mxu0 %vm366_vm0, %v14870_v51  ;;  %v18032_v51 = vld [vmem:[#allocation73_spill] sm:$0xff] }
  0xe2   : > { %12244 = vmatmul.mubr.msk.f32.gmra.mrb[28].mxu1 %vm366_vm0, %v15140_v47  ;;  %12467 = vmatmul.mubr.msk.f32.gmra.mrb[10].mxu0 %vm366_vm0, %v14880_v52  ;;  %v15419_v52 = vld [vmem:[%s17713_s4 + $0x8] sm:$0xff] }
  0xe3   : > { %12246 = vmatprep.mubr.msk.f32.mxu1 %vm366_vm0, %v15144_v57  ;;  %12469 = vmatprep.mubr.msk.f32.mxu0 %vm366_vm0, %v14882_v53  ;;  %v18033_v53 = vld [vmem:[#allocation56_spill] sm:$0xff] }
  0xe6   : > { %12247 = vmatmul.mubr.msk.f32.gmra.mrb[30].mxu1 %vm366_vm0, %v18028_v56  ;;  %12470 = vmatmul.mubr.msk.f32.gmra.mrb[12].mxu0 %vm366_vm0, %v18029_v4  ;;  %v18034_v4 = vld [vmem:[#allocation74_spill] sm:$0xff]  ;;  %v18056_v56 = vld [vmem:[#allocation87_spill] sm:$0xff] }
  0xe7   : > { %12251 = vmatprep.mubr.msk.f32.mxu1 %vm366_vm0, %v18030_v55  ;;  %12472 = vmatprep.mubr.msk.f32.mxu0 %vm366_vm0, %v18031_v39  ;;  %v18035_v55 = vld [vmem:[#allocation58_spill] sm:$0xff] }
  0xea   : > { %12252 = vmatmul.mubr.msk.f32.vlgmr.msra.gmra.mrb[0].mxu1 %vm366_vm0, %v18032_v51  ;;  %12473 = vmatmul.mubr.msk.f32.gmra.mrb[14].mxu0 %vm366_vm0, %v18033_v53  ;;  %v18038_v51 = vld [vmem:[#allocation76_spill] sm:$0xff] }
  0xeb   : > { %13450 = vmatpush3.msra.mxu1 %v14599_v3  ;;  %12254 = vmatprep.mubr.msk.f32.mxu1 %vm366_vm0, %v18034_v4  ;;  %v18040_v3 = vld [vmem:[#allocation77_spill] sm:$0xff] }
  0xec   : > { %12475 = vmatprep.mubr.msk.f32.mxu0 %vm366_vm0, %v18035_v55  ;;  %12549 = vmatprep.subr.mxu1 %v15419_v52  ;;  %v18041_v4 = vld [vmem:[#allocation61_spill] sm:$0xff] }
  0xee   : > { %12255 = vmatmul.mubr.msk.f32.gmra.mrb[2].mxu1 %vm366_vm0, %v18036_v50  ;;  %12476 = vmatmul.mubr.msk.f32.gmra.mrb[16].mxu0 %vm366_vm0, %v18037_v49  ;;  %v18044_v50 = vld [vmem:[#allocation79_spill] sm:$0xff] }
  0xef   : > { %12257 = vmatprep.mubr.msk.f32.mxu1 %vm366_vm0, %v18038_v51  ;;  %12478 = vmatprep.mubr.msk.f32.mxu0 %vm366_vm0, %v18039_v48  ;;  %v18046_v51 = vld [vmem:[#allocation80_spill] sm:$0xff] }
  0xf2   : > { %12258 = vmatmul.mubr.msk.f32.gmra.mrb[4].mxu1 %vm366_vm0, %v18040_v3  ;;  %12479 = vmatmul.mubr.msk.f32.gmra.mrb[18].mxu0 %vm366_vm0, %v18041_v4  ;;  %v18048_v3 = vld [vmem:[#allocation81_spill] sm:$0xff] }
  0xf3   : > { %12260 = vmatprep.mubr.msk.f32.mxu1 %vm366_vm0, %v18042_v43  ;;  %12481 = vmatprep.mubr.msk.f32.mxu0 %vm366_vm0, %v18043_v41  ;;  %v18050_v43 = vld [vmem:[#allocation82_spill] sm:$0xff] }
  0xf6   : > { %12261 = vmatmul.mubr.msk.f32.gmra.mrb[6].mxu1 %vm366_vm0, %v18044_v50  ;;  %12482 = vmatmul.mubr.msk.f32.gmra.mrb[20].mxu0 %vm366_vm0, %v18045_v37  ;;  %v18052_v50 = vld [vmem:[#allocation83_spill] sm:$0xff] }
  0xf7   : > { %12263 = vmatprep.mubr.msk.f32.mxu1 %vm366_vm0, %v18046_v51  ;;  %12484 = vmatprep.mubr.msk.f32.mxu0 %vm366_vm0, %v18047_v36  ;;  %v18054_v51 = vld [vmem:[#allocation68_spill] sm:$0xff] }
  0xfa   : > { %12264 = vmatmul.mubr.msk.f32.gmra.mrb[8].mxu1 %vm366_vm0, %v18048_v3  ;;  %12485 = vmatmul.mubr.msk.f32.gmra.mrb[22].mxu0 %vm366_vm0, %v18049_v35  ;;  %v15471_v3 = vld [vmem:[#allocation2 + $0x181] sm:$0xff] }
  0xfb   : > { %12266 = vmatprep.mubr.msk.f32.mxu1 %vm366_vm0, %v18050_v43  ;;  %12487 = vmatprep.mubr.msk.f32.mxu0 %vm366_vm0, %v18051_v34  ;;  %18055 = vst [vmem:[#allocation53_spill] sm:$0xff] %v15471_v3  ;;  %v18057_v43 = vld [vmem:[#allocation69_spill] sm:$0xff] }
  0xfe   : > { %12267 = vmatmul.mubr.msk.f32.gmra.mrb[10].mxu1 %vm366_vm0, %v18052_v50  ;;  %12488 = vmatmul.mubr.msk.f32.gmra.mrb[24].mxu0 %vm366_vm0, %v18053_v32  ;;  %v15481_v50 = vld [vmem:[#allocation2 + $0x189] sm:$0xff] }
  0xff   : > { %12269 = vmatprep.mubr.msk.f32.mxu1 %vm366_vm0, %v15142_v46  ;;  %12490 = vmatprep.mubr.msk.f32.mxu0 %vm366_vm0, %v18054_v51  ;;  %18058 = vst [vmem:[#allocation56_spill] sm:$0xff] %v15481_v50  ;;  %v15483_v46 = vld [vmem:[#allocation2 + $0x199] sm:$0xff] }
 0x100   : > { %18059 = vst [vmem:[#allocation58_spill] sm:$0xff] %v15483_v46 }
 0x102   : > { %12270 = vmatmul.mubr.msk.f32.gmra.mrb[12].mxu1 %vm366_vm0, %v18056_v56  ;;  %12491 = vmatmul.mubr.msk.f32.gmra.mrb[26].mxu0 %vm366_vm0, %v18057_v43 }
 0x103   : > { %12272 = vmatprep.mubr.msk.f32.mxu1 %vm366_vm0, %v15158_v61  ;;  %12493 = vmatprep.mubr.msk.f32.mxu0 %vm366_vm0, %v15471_v3  ;;  %v15493_v61 = vld [vmem:[#allocation2 + $0x1a1] sm:$0xff] }
 0x104   : > { %18060 = vst [vmem:[#allocation59_spill] sm:$0xff] %v15493_v61 }
 0x106   : > { %12273 = vmatmul.mubr.msk.f32.gmra.mrb[14].mxu1 %vm366_vm0, %v15170_v14  ;;  %12494 = vmatmul.mubr.msk.f32.gmra.mrb[28].mxu0 %vm366_vm0, %v15481_v50 }
 0x107   : > { %12275 = vmatprep.mubr.msk.f32.mxu1 %vm366_vm0, %v15174_v19  ;;  %12496 = vmatprep.mubr.msk.f32.mxu0 %vm366_vm0, %v15483_v46  ;;  %v18062_v46 = vld [vmem:[#allocation90_spill] sm:$0xff] }
 0x10a   : > { %12276 = vmatmul.mubr.msk.f32.gmra.mrb[16].mxu1 %vm366_vm0, %v15184_v54  ;;  %12497 = vmatmul.mubr.msk.f32.gmra.mrb[30].mxu0 %vm366_vm0, %v15493_v61  ;;  %v3983_v61 = vld [vmem:[%s17713_s4] sm:$0xff] }
 0x10b   : > { %12278 = vmatprep.mubr.msk.f32.mxu1 %vm366_vm0, %v15186_v59  ;;  %12501 = vmatprep.mubr.msk.f32.mxu0 %vm366_vm0, %v14922_v62 }
 0x10e   : > { %12279 = vmatmul.mubr.msk.f32.gmra.mrb[18].mxu1 %vm366_vm0, %v15201_v12  ;;  %12502 = vmatmul.mubr.msk.f32.vlgmr.msra.gmra.mrb[0].mxu0 %vm366_vm0, %v14934_v0 }
 0x10f   : > { %12281 = vmatprep.mubr.msk.f32.mxu1 %vm366_vm0, %v15203_v63  ;;  %12504 = vmatprep.mubr.msk.f32.mxu0 %vm366_vm0, %v14943_v2 }
 0x112   : > { %12282 = vmatmul.mubr.msk.f32.gmra.mrb[20].mxu1 %vm366_vm0, %v15215_v11  ;;  %12505 = vmatmul.mubr.msk.f32.gmra.mrb[2].mxu0 %vm366_vm0, %v14957_v58 }
 0x113   : > { %12284 = vmatprep.mubr.msk.f32.mxu1 %vm366_vm0, %v15217_v8  ;;  %12507 = vmatprep.mubr.msk.f32.mxu0 %vm366_vm0, %v14961_v33 }
 0x116   : > { %12285 = vmatmul.mubr.msk.f32.gmra.mrb[22].mxu1 %vm366_vm0, %v15227_v1  ;;  %12508 = vmatmul.mubr.msk.f32.gmra.mrb[4].mxu0 %vm366_vm0, %v14973_v44 }
 0x117   : > { %12287 = vmatprep.mubr.msk.f32.mxu1 %vm366_vm0, %v15229_v6  ;;  %12510 = vmatprep.mubr.msk.f32.mxu0 %vm366_vm0, %v14977_v40 }
 0x11a   : > { %12288 = vmatmul.mubr.msk.f32.gmra.mrb[24].mxu1 %vm366_vm0, %v15239_v30  ;;  %12511 = vmatmul.mubr.msk.f32.gmra.mrb[6].mxu0 %vm366_vm0, %v14989_v38 }
 0x11b   : > { %12290 = vmatprep.mubr.msk.f32.mxu1 %vm366_vm0, %v15241_v23  ;;  %12513 = vmatprep.mubr.msk.f32.mxu0 %vm366_vm0, %v14993_v28 }
 0x11e   : > { %12291 = vmatmul.mubr.msk.f32.gmra.mrb[26].mxu1 %vm366_vm0, %v15251_v27  ;;  %12514 = vmatmul.mubr.msk.f32.gmra.mrb[8].mxu0 %vm366_vm0, %v15005_v26 }
 0x11f   : > { %12293 = vmatprep.mubr.msk.f32.mxu1 %vm366_vm0, %v15253_v9  ;;  %12516 = vmatprep.mubr.msk.f32.mxu0 %vm366_vm0, %v15009_v24 }
 0x122   : > { %12294 = vmatmul.mubr.msk.f32.gmra.mrb[28].mxu1 %vm366_vm0, %v15263_v45  ;;  %12517 = vmatmul.mubr.msk.f32.gmra.mrb[10].mxu0 %vm366_vm0, %v15021_v22 }
 0x123   : > { %12296 = vmatprep.mubr.msk.f32.mxu1 %vm366_vm0, %v15327_v17  ;;  %12519 = vmatprep.mubr.msk.f32.mxu0 %vm366_vm0, %v15025_v20  ;;  %v18064_v17 = vld [vmem:[#allocation91_spill] sm:$0xff] }
 0x126   : > { %12297 = vmatmul.mubr.msk.f32.gmra.mrb[30].mxu1 %vm366_vm0, %v15337_v60  ;;  %12520 = vmatmul.mubr.msk.f32.gmra.mrb[12].mxu0 %vm366_vm0, %v15037_v18  ;;  %v15619_v60 = vld [vmem:[#allocation2 + $0x19a] sm:$0xff] }
 0x127   : > { %12325 = vmatprep.mubr.msk.f32.mxu1 %vm366_vm0, %v18031_v39  ;;  %12522 = vmatprep.mubr.msk.f32.mxu0 %vm366_vm0, %v15041_v16  ;;  %18063 = vst [vmem:[#allocation60_spill] sm:$0xff] %v15619_v60 }
 0x12a   : > { %12326 = vmatmul.mubr.msk.f32.vlgmr.msra.gmra.mrb[16].mxu1 %vm366_vm0, %v18033_v53  ;;  %12523 = vmatmul.mubr.msk.f32.gmra.mrb[14].mxu0 %vm366_vm0, %v15057_v15 }
 0x12b   : > { %12550 = vmatpush3.msra.mxu1 %v15419_v52  ;;  %12328 = vmatprep.mubr.msk.f32.mxu1 %vm366_vm0, %v18035_v55  ;;  %v18061_v52 = vld [vmem:[#allocation88_spill] sm:$0xff] }
 0x12c   : > { %12525 = vmatprep.mubr.msk.f32.mxu0 %vm366_vm0, %v15063_v13  ;;  %12599 = vmatprep.subr.mxu1 %v3983_v61 }
 0x12e   : > { %12329 = vmatmul.mubr.msk.f32.gmra.mrb[18].mxu1 %vm366_vm0, %v18037_v49  ;;  %12526 = vmatmul.mubr.msk.f32.gmra.mrb[16].mxu0 %vm366_vm0, %v15076_v7 }
 0x12f   : > { %12331 = vmatprep.mubr.msk.f32.mxu1 %vm366_vm0, %v18039_v48  ;;  %12528 = vmatprep.mubr.msk.f32.mxu0 %vm366_vm0, %v15080_v5 }
 0x132   : > { %12332 = vmatmul.mubr.msk.f32.gmra.mrb[20].mxu1 %vm366_vm0, %v18041_v4  ;;  %12529 = vmatmul.mubr.msk.f32.gmra.mrb[18].mxu0 %vm366_vm0, %v15092_v21 }
 0x133   : > { %12334 = vmatprep.mubr.msk.f32.mxu1 %vm366_vm0, %v18043_v41  ;;  %12531 = vmatprep.mubr.msk.f32.mxu0 %vm366_vm0, %v15096_v31 }
 0x136   : > { %12335 = vmatmul.mubr.msk.f32.gmra.mrb[22].mxu1 %vm366_vm0, %v18045_v37  ;;  %12532 = vmatmul.mubr.msk.f32.gmra.mrb[20].mxu0 %vm366_vm0, %v15108_v10 }
 0x137   : > { %12337 = vmatprep.mubr.msk.f32.mxu1 %vm366_vm0, %v18047_v36  ;;  %12534 = vmatprep.mubr.msk.f32.mxu0 %vm366_vm0, %v15112_v25 }
 0x13a   : > { %12338 = vmatmul.mubr.msk.f32.gmra.mrb[24].mxu1 %vm366_vm0, %v18049_v35  ;;  %12535 = vmatmul.mubr.msk.f32.gmra.mrb[22].mxu0 %vm366_vm0, %v15124_v29 }
 0x13b   : > { %12340 = vmatprep.mubr.msk.f32.mxu1 %vm366_vm0, %v18051_v34  ;;  %12537 = vmatprep.mubr.msk.f32.mxu0 %vm366_vm0, %v15128_v42 }
 0x13e   : > { %12341 = vmatmul.mubr.msk.f32.gmra.mrb[26].mxu1 %vm366_vm0, %v18053_v32  ;;  %12538 = vmatmul.mubr.msk.f32.gmra.mrb[24].mxu0 %vm366_vm0, %v15140_v47  ;;  %v18072_v47 = vld [vmem:[#allocation32_spill] sm:$0xff] }
 0x13f   : > { %12343 = vmatprep.mubr.msk.f32.mxu1 %vm366_vm0, %v18054_v51  ;;  %12540 = vmatprep.mubr.msk.f32.mxu0 %vm366_vm0, %v15144_v57  ;;  %v18065_v57 = vld [vmem:[#allocation7_spill] sm:$0xff] }
 0x142   : > { %12344 = vmatmul.mubr.msk.f32.gmra.mrb[28].mxu1 %vm366_vm0, %v18057_v43  ;;  %12541 = vmatmul.mubr.msk.f32.gmra.mrb[26].mxu0 %vm366_vm0, %v18061_v52  ;;  %v15629_v52 = vld [vmem:[#allocation2 + $0x1a2] sm:$0xff] }
 0x143   : > { %12346 = vmatprep.mubr.msk.f32.mxu1 %vm366_vm0, %v15471_v3  ;;  %12543 = vmatprep.mubr.msk.f32.mxu0 %vm366_vm0, %v18062_v46  ;;  %18066 = vst [vmem:[#allocation61_spill] sm:$0xff] %v15629_v52  ;;  %v10664_v46 = vld [vmem:[%s17713_s4 + $0x10] sm:$0xff]  ;;  %v18067_v3 = vld [vmem:[#allocation8_spill] sm:$0xff] }
 0x146   : > { %12347 = vmatmul.mubr.msk.f32.gmra.mrb[30].mxu1 %vm366_vm0, %v15481_v50  ;;  %12544 = vmatmul.mubr.msk.f32.gmra.mrb[28].mxu0 %vm366_vm0, %v18064_v17  ;;  %v18068_v17 = vld [vmem:[#allocation28_spill] sm:$0xff]  ;;  %v18071_v50 = vld [vmem:[#allocation31_spill] sm:$0xff] }
 0x147   : > { %12546 = vmatprep.mubr.msk.f32.mxu0 %vm366_vm0, %v15619_v60  ;;  %12551 = vmatprep.mubr.msk.f32.mxu1 %vm366_vm0, %v18065_v57  ;;  %v18069_v60 = vld [vmem:[#allocation29_spill] sm:$0xff]  ;;  %v18070_v57 = vld [vmem:[#allocation30_spill] sm:$0xff] }
 0x14a   : > { %12547 = vmatmul.mubr.msk.f32.gmra.mrb[30].mxu0 %vm366_vm0, %v15629_v52  ;;  %12552 = vmatmul.mubr.msk.f32.vlgmr.msra.gmra.mrb[32].mxu1 %vm366_vm0, %v18067_v3  ;;  %v18073_v52 = vld [vmem:[#allocation33_spill] sm:$0xff]  ;;  %v18075_v3 = vld [vmem:[#allocation38_spill] sm:$0xff] }
 0x14b   : > { %12600 = vmatpush3.msra.mxu1 %v3983_v61  ;;  %12554 = vmatprep.mubr.msk.f32.mxu1 %vm366_vm0, %v18068_v17  ;;  %v18074_v61 = vld [vmem:[#allocation34_spill] sm:$0xff]  ;;  %v18076_v17 = vld [vmem:[#allocation40_spill] sm:$0xff] }
 0x14c   : > { %12649 = vmatprep.subr.mxu1 %v10664_v46 }
 0x14e   : > { %12555 = vmatmul.mubr.msk.f32.gmra.mrb[34].mxu1 %vm366_vm0, %v18069_v60  ;;  %v18077_v60 = vld [vmem:[#allocation45_spill] sm:$0xff] }
 0x14f   : > { %12557 = vmatprep.mubr.msk.f32.mxu1 %vm366_vm0, %v18070_v57  ;;  %v18078_v57 = vld [vmem:[#allocation46_spill] sm:$0xff] }
 0x152   : > { %12558 = vmatmul.mubr.msk.f32.gmra.mrb[36].mxu1 %vm366_vm0, %v18071_v50  ;;  %v18079_v50 = vld [vmem:[#allocation47_spill] sm:$0xff] }
 0x153   : > { %12560 = vmatprep.mubr.msk.f32.mxu1 %vm366_vm0, %v18072_v47  ;;  %v18080_v47 = vld [vmem:[#allocation48_spill] sm:$0xff] }
 0x156   : > { %12561 = vmatmul.mubr.msk.f32.gmra.mrb[38].mxu1 %vm366_vm0, %v18073_v52  ;;  %v18081_v52 = vld [vmem:[#allocation49_spill] sm:$0xff] }
 0x157   : > { %12563 = vmatprep.mubr.msk.f32.mxu1 %vm366_vm0, %v18074_v61  ;;  %v18082_v61 = vld [vmem:[#allocation50_spill] sm:$0xff] }
 0x15a   : > { %12564 = vmatmul.mubr.msk.f32.gmra.mrb[40].mxu1 %vm366_vm0, %v18075_v3  ;;  %v18083_v3 = vld [vmem:[#allocation51_spill] sm:$0xff] }
 0x15b   : > { %12566 = vmatprep.mubr.msk.f32.mxu1 %vm366_vm0, %v18076_v17  ;;  %v18098_v17 = vld [vmem:[#allocation85_spill] sm:$0xff] }
 0x15e   : > { %12567 = vmatmul.mubr.msk.f32.gmra.mrb[42].mxu1 %vm366_vm0, %v18077_v60  ;;  %v18099_v60 = vld [vmem:[#allocation89_spill] sm:$0xff] }
 0x15f   : > { %12569 = vmatprep.mubr.msk.f32.mxu1 %vm366_vm0, %v18078_v57 }
 0x162   : > { %12570 = vmatmul.mubr.msk.f32.gmra.mrb[44].mxu1 %vm366_vm0, %v18079_v50 }
 0x163   : > { %12572 = vmatprep.mubr.msk.f32.mxu1 %vm366_vm0, %v18080_v47 }
 0x166   : > { %12573 = vmatmul.mubr.msk.f32.gmra.mrb[46].mxu1 %vm366_vm0, %v18081_v52 }
 0x167   : > { %12575 = vmatprep.mubr.msk.f32.mxu1 %vm366_vm0, %v18082_v61 }
 0x16a   : > { %12576 = vmatmul.mubr.msk.f32.gmra.mrb[48].mxu1 %vm366_vm0, %v18083_v3 }
 0x16b   : > { %12578 = vmatprep.mubr.msk.f32.mxu1 %vm366_vm0, %v18031_v39  ;;  %v18084_v39 = vld [vmem:[#allocation70_spill] sm:$0xff] }
 0x16e   : > { %12579 = vmatmul.mubr.msk.f32.gmra.mrb[50].mxu1 %vm366_vm0, %v18033_v53  ;;  %v18094_v53 = vld [vmem:[#allocation80_spill] sm:$0xff] }
 0x16f   : > { %12581 = vmatprep.mubr.msk.f32.mxu1 %vm366_vm0, %v18035_v55  ;;  %v18095_v55 = vld [vmem:[#allocation81_spill] sm:$0xff] }
 0x172   : > { %12582 = vmatmul.mubr.msk.f32.gmra.mrb[52].mxu1 %vm366_vm0, %v18037_v49  ;;  %v18092_v49 = vld [vmem:[#allocation78_spill] sm:$0xff] }
 0x173   : > { %12584 = vmatprep.mubr.msk.f32.mxu1 %vm366_vm0, %v18039_v48  ;;  %v18091_v48 = vld [vmem:[#allocation77_spill] sm:$0xff] }
 0x176   : > { %12585 = vmatmul.mubr.msk.f32.gmra.mrb[54].mxu1 %vm366_vm0, %v18041_v4  ;;  %v18096_v4 = vld [vmem:[#allocation82_spill] sm:$0xff] }
 0x177   : > { %12587 = vmatprep.mubr.msk.f32.mxu1 %vm366_vm0, %v18043_v41  ;;  %v18089_v41 = vld [vmem:[#allocation75_spill] sm:$0xff] }
 0x17a   : > { %12588 = vmatmul.mubr.msk.f32.gmra.mrb[56].mxu1 %vm366_vm0, %v18045_v37  ;;  %v18088_v37 = vld [vmem:[#allocation74_spill] sm:$0xff] }
 0x17b   : > { %12590 = vmatprep.mubr.msk.f32.mxu1 %vm366_vm0, %v18047_v36  ;;  %v10697_v36 = vld [vmem:[%s17713_s4 + $0x18] sm:$0xff] }
 0x17e   : > { %12591 = vmatmul.mubr.msk.f32.gmra.mrb[58].mxu1 %vm366_vm0, %v18049_v35  ;;  %v18085_v35 = vld [vmem:[#allocation71_spill] sm:$0xff] }
 0x17f   : > { %12593 = vmatprep.mubr.msk.f32.mxu1 %vm366_vm0, %v18051_v34  ;;  %v18086_v34 = vld [vmem:[#allocation72_spill] sm:$0xff] }
 0x182   : > { %12594 = vmatmul.mubr.msk.f32.gmra.mrb[60].mxu1 %vm366_vm0, %v18053_v32  ;;  %v18087_v32 = vld [vmem:[#allocation73_spill] sm:$0xff] }
 0x183   : > { %12596 = vmatprep.mubr.msk.f32.mxu1 %vm366_vm0, %v18054_v51  ;;  %v18093_v51 = vld [vmem:[#allocation79_spill] sm:$0xff] }
 0x186   : > { %12597 = vmatmul.mubr.msk.f32.gmra.mrb[62].mxu1 %vm366_vm0, %v18057_v43  ;;  %v18090_v43 = vld [vmem:[#allocation76_spill] sm:$0xff] }
 0x187   : > { %12601 = vmatprep.mubr.msk.f32.mxu1 %vm366_vm0, %v18084_v39  ;;  %v18100_v39 = vld [vmem:[#allocation100_spill] sm:$0xff] }
 0x18a   : > { %12602 = vmatmul.mubr.msk.f32.vlgmr.msra.gmra.mrb[32].mxu1 %vm366_vm0, %v18085_v35 }
 0x18b   : > { %12650 = vmatpush3.msra.mxu1 %v10664_v46  ;;  %12604 = vmatprep.mubr.msk.f32.mxu1 %vm366_vm0, %v18086_v34  ;;  %v18097_v46 = vld [vmem:[#allocation83_spill] sm:$0xff] }
 0x18c   : > { %12699 = vmatprep.subr.mxu1 %v10697_v36 }
 0x18e   : > { %12605 = vmatmul.mubr.msk.f32.gmra.mrb[34].mxu1 %vm366_vm0, %v18087_v32 }
 0x18f   : > { %12607 = vmatprep.mubr.msk.f32.mxu1 %vm366_vm0, %v18088_v37 }
 0x192   : > { %12608 = vmatmul.mubr.msk.f32.gmra.mrb[36].mxu1 %vm366_vm0, %v18089_v41 }
 0x193   : > { %12610 = vmatprep.mubr.msk.f32.mxu1 %vm366_vm0, %v18090_v43 }
 0x196   : > { %12611 = vmatmul.mubr.msk.f32.gmra.mrb[38].mxu1 %vm366_vm0, %v18091_v48 }
 0x197   : > { %12613 = vmatprep.mubr.msk.f32.mxu1 %vm366_vm0, %v18092_v49 }
 0x19a   : > { %12614 = vmatmul.mubr.msk.f32.gmra.mrb[40].mxu1 %vm366_vm0, %v18093_v51 }
 0x19b   : > { %12616 = vmatprep.mubr.msk.f32.mxu1 %vm366_vm0, %v18094_v53 }
 0x19e   : > { %12617 = vmatmul.mubr.msk.f32.gmra.mrb[42].mxu1 %vm366_vm0, %v18095_v55 }
 0x19f   : > { %12619 = vmatprep.mubr.msk.f32.mxu1 %vm366_vm0, %v18096_v4 }
 0x1a2   : > { %12620 = vmatmul.mubr.msk.f32.gmra.mrb[44].mxu1 %vm366_vm0, %v18097_v46 }
 0x1a3   : > { %12622 = vmatprep.mubr.msk.f32.mxu1 %vm366_vm0, %v18098_v17 }
 0x1a6   : > { %12623 = vmatmul.mubr.msk.f32.gmra.mrb[46].mxu1 %vm366_vm0, %v18056_v56 }
 0x1a7   : > { %12625 = vmatprep.mubr.msk.f32.mxu1 %vm366_vm0, %v18099_v60 }
 0x1aa   : > { %12626 = vmatmul.mubr.msk.f32.gmra.mrb[48].mxu1 %vm366_vm0, %v15170_v14 }
 0x1ab   : > { %12628 = vmatprep.mubr.msk.f32.mxu1 %vm366_vm0, %v15174_v19 }
 0x1ae   : > { %12629 = vmatmul.mubr.msk.f32.gmra.mrb[50].mxu1 %vm366_vm0, %v15184_v54 }
 0x1af   : > { %12631 = vmatprep.mubr.msk.f32.mxu1 %vm366_vm0, %v15186_v59 }
 0x1b2   : > { %12632 = vmatmul.mubr.msk.f32.gmra.mrb[52].mxu1 %vm366_vm0, %v15201_v12 }
 0x1b3   : > { %12634 = vmatprep.mubr.msk.f32.mxu1 %vm366_vm0, %v15203_v63 }
 0x1b6   : > { %12635 = vmatmul.mubr.msk.f32.gmra.mrb[54].mxu1 %vm366_vm0, %v15215_v11 }
 0x1b7   : > { %12637 = vmatprep.mubr.msk.f32.mxu1 %vm366_vm0, %v15217_v8 }
 0x1ba   : > { %12638 = vmatmul.mubr.msk.f32.gmra.mrb[56].mxu1 %vm366_vm0, %v15227_v1  ;;  %v18103_v1 = vld [vmem:[#allocation57_spill] sm:$0xff] }
 0x1bb   : > { %12640 = vmatprep.mubr.msk.f32.mxu1 %vm366_vm0, %v15229_v6  ;;  %v18101_v6 = vld [vmem:[#allocation101_spill] sm:$0xff] }
 0x1bd   : > { %v12253_v57 = vpop.f32.mrb[0].mxu1 }
 0x1be   : > { %v1818_v50 = vpop.f32.mrb[1].mxu1  ;;  %12641 = vmatmul.mubr.msk.f32.gmra.mrb[58].mxu1 %vm366_vm0, %v15239_v30 }
 0x1bf   : > { %12643 = vmatprep.mubr.msk.f32.mxu1 %vm366_vm0, %v15241_v23  ;;  %v15770_v23 = vld [vmem:[%s17713_s4 + $0x20] sm:$0xff] }
 0x1c1   : > { %v12256_v47 = vpop.f32.mrb[2].mxu1 }
 0x1c2   : > { %v1828_v52 = vpop.f32.mrb[3].mxu1  ;;  %12644 = vmatmul.mubr.msk.f32.gmra.mrb[60].mxu1 %vm366_vm0, %v15251_v27 }
 0x1c3   : > { %12646 = vmatprep.mubr.msk.f32.mxu1 %vm366_vm0, %v15253_v9  ;;  %v18102_v9 = vld [vmem:[#allocation52_spill] sm:$0xff] }
 0x1c5   : > { %v12259_v61 = vpop.f32.mrb[4].mxu1 }
 0x1c6   : > { %v1838_v3 = vpop.f32.mrb[5].mxu1  ;;  %12647 = vmatmul.mubr.msk.f32.gmra.mrb[62].mxu1 %vm366_vm0, %v15263_v45 }
 0x1c7   : > { %12651 = vmatprep.mubr.msk.f32.mxu1 %vm366_vm0, %v18100_v39 }
 0x1c9   : > { %v12262_v35 = vpop.f32.mrb[6].mxu1 }
 0x1ca   : > { %v1848_v30 = vpop.f32.mrb[7].mxu1  ;;  %12652 = vmatmul.mubr.msk.f32.vlgmr.msra.gmra.mrb[32].mxu1 %vm366_vm0, %v18101_v6 }
 0x1cb   : > { %12700 = vmatpush3.msra.mxu1 %v10697_v36  ;;  %12654 = vmatprep.mubr.msk.f32.mxu1 %vm366_vm0, %v18102_v9 }
 0x1cc   : > { %12749 = vmatprep.subr.mxu1 %v15770_v23 }
 0x1cd   : > { %v12265_v45 = vpop.f32.mrb[8].mxu1 }
 0x1ce   : > { %v1858_v27 = vpop.f32.mrb[9].mxu1  ;;  %12655 = vmatmul.mubr.msk.f32.gmra.mrb[34].mxu1 %vm366_vm0, %v18103_v1 }
 0x1cf   : > { %12657 = vmatprep.mubr.msk.f32.mxu1 %vm366_vm0, %v14922_v62 }
 0x1d1   : > { %v12268_v39 = vpop.f32.mrb[10].mxu1 }
 0x1d2   : > { %v1868_v8 = vpop.f32.mrb[11].mxu1  ;;  %12658 = vmatmul.mubr.msk.f32.gmra.mrb[36].mxu1 %vm366_vm0, %v14934_v0 }
 0x1d3   : > { %12660 = vmatprep.mubr.msk.f32.mxu1 %vm366_vm0, %v14943_v2 }
 0x1d5   : > { %v12271_v6 = vpop.f32.mrb[12].mxu1 }
 0x1d6   : > { %v1878_v9 = vpop.f32.mrb[13].mxu1  ;;  %12661 = vmatmul.mubr.msk.f32.gmra.mrb[38].mxu1 %vm366_vm0, %v14957_v58 }
 0x1d7   : > { %12663 = vmatprep.mubr.msk.f32.mxu1 %vm366_vm0, %v14961_v33 }
 0x1d9   : > { %v12274_v1 = vpop.f32.mrb[14].mxu1 }
 0x1da   : > { %v1888_v36 = vpop.f32.mrb[15].mxu1  ;;  %12664 = vmatmul.mubr.msk.f32.gmra.mrb[40].mxu1 %vm366_vm0, %v14973_v44 }
 0x1db   : > { %12666 = vmatprep.mubr.msk.f32.mxu1 %vm366_vm0, %v14977_v40 }
 0x1de   : > { %12667 = vmatmul.mubr.msk.f32.gmra.mrb[42].mxu1 %vm366_vm0, %v14989_v38 }
 0x1df   : > { %12669 = vmatprep.mubr.msk.f32.mxu1 %vm366_vm0, %v14993_v28 }
 0x1e1   : > { %v12503_v2 = vpop.f32.mrb[0].mxu0 }
 0x1e2   : > { %v15797_v62 = vadd.f32 %v12503_v2, %v12253_v57  ;;  %v3754_v58 = vpop.f32.mrb[1].mxu0  ;;  %12670 = vmatmul.mubr.msk.f32.gmra.mrb[44].mxu1 %vm366_vm0, %v15005_v26 }
 0x1e3   : > { %v15801_v0 = vadd.f32 %v3754_v58, %v1818_v50  ;;  %12672 = vmatprep.mubr.msk.f32.mxu1 %vm366_vm0, %v15009_v24 }
 0x1e4   : > { %18104 = vst [vmem:[#allocation62_spill] sm:$0xff] %v15797_v62  ;;  %v14418_v62 = vld [vmem:[#allocation2 + $0x30] sm:$0xff] }
 0x1e5   : > { %18105 = vst [vmem:[#allocation63_spill] sm:$0xff] %v15801_v0  ;;  %v12506_v44 = vpop.f32.mrb[2].mxu0  ;;  %v16223_v0 = vld [vmem:[#allocation2 + $0x18a] sm:$0xff] }
 0x1e6   : > { %v15805_v40 = vadd.f32 %v12506_v44, %v12256_v47  ;;  %v3764_v33 = vpop.f32.mrb[3].mxu0  ;;  %12673 = vmatmul.mubr.msk.f32.gmra.mrb[46].mxu1 %vm366_vm0, %v15021_v22  ;;  %v18121_v44 = vld [vmem:[#allocation84_spill] sm:$0xff]  ;;  %18157 = vst [vmem:[#allocation79_spill] sm:$0xff] %v16223_v0 }
 0x1e7   : > { %v15809_v28 = vadd.f32 %v3764_v33, %v1828_v52  ;;  %12675 = vmatprep.mubr.msk.f32.mxu1 %vm366_vm0, %v15025_v20  ;;  %v18123_v33 = vld [vmem:[#allocation86_spill] sm:$0xff] }
 0x1e8   : > { %18106 = vst [vmem:[#allocation64_spill] sm:$0xff] %v15805_v40  ;;  %v16219_v40 = vld [vmem:[#allocation2 + $0x182] sm:$0xff] }
 0x1e9   : > { %18107 = vst [vmem:[#allocation65_spill] sm:$0xff] %v15809_v28  ;;  %v12509_v38 = vpop.f32.mrb[4].mxu0  ;;  %v16215_v28 = vld [vmem:[#allocation2 + $0x172] sm:$0xff]  ;;  %18156 = vst [vmem:[#allocation78_spill] sm:$0xff] %v16219_v40 }
 0x1ea   : > { %v15813_v57 = vadd.f32 %v12509_v38, %v12259_v61  ;;  %v3774_v26 = vpop.f32.mrb[5].mxu0  ;;  %12676 = vmatmul.mubr.msk.f32.gmra.mrb[48].mxu1 %vm366_vm0, %v15037_v18  ;;  %18155 = vst [vmem:[#allocation77_spill] sm:$0xff] %v16215_v28 }
 0x1eb   : > { %v15817_v24 = vadd.f32 %v3774_v26, %v1838_v3  ;;  %12678 = vmatprep.mubr.msk.f32.mxu1 %vm366_vm0, %v15041_v16 }
 0x1ec   : > { %18108 = vst [vmem:[#allocation66_spill] sm:$0xff] %v15813_v57  ;;  %v16211_v57 = vld [vmem:[#allocation2 + $0x16a] sm:$0xff] }
 0x1ed   : > { %18109 = vst [vmem:[#allocation67_spill] sm:$0xff] %v15817_v24  ;;  %v12512_v50 = vpop.f32.mrb[6].mxu0  ;;  %v16207_v24 = vld [vmem:[#allocation2 + $0x15a] sm:$0xff]  ;;  %18154 = vst [vmem:[#allocation76_spill] sm:$0xff] %v16211_v57 }
 0x1ee   : > { %v15821_v47 = vadd.f32 %v12512_v50, %v12262_v35  ;;  %v3784_v22 = vpop.f32.mrb[7].mxu0  ;;  %12679 = vmatmul.mubr.msk.f32.gmra.mrb[50].mxu1 %vm366_vm0, %v15057_v15  ;;  %v18125_v50 = vld [vmem:[#allocation88_spill] sm:$0xff]  ;;  %18153 = vst [vmem:[#allocation75_spill] sm:$0xff] %v16207_v24 }
 0x1ef   : > { %v15825_v20 = vadd.f32 %v3784_v22, %v1848_v30  ;;  %12681 = vmatprep.mubr.msk.f32.mxu1 %vm366_vm0, %v15063_v13 }
 0x1f0   : > { %18110 = vst [vmem:[#allocation68_spill] sm:$0xff] %v15821_v47  ;;  %v16203_v47 = vld [vmem:[#allocation2 + $0x152] sm:$0xff] }
 0x1f1   : > { %18111 = vst [vmem:[#allocation87_spill] sm:$0xff] %v15825_v20  ;;  %v12515_v52 = vpop.f32.mrb[8].mxu0  ;;  %v16199_v20 = vld [vmem:[#allocation2 + $0x142] sm:$0xff]  ;;  %18152 = vst [vmem:[#allocation74_spill] sm:$0xff] %v16203_v47 }
 0x1f2   : > { %v15829_v61 = vadd.f32 %v12515_v52, %v12265_v45  ;;  %v3794_v18 = vpop.f32.mrb[9].mxu0  ;;  %12682 = vmatmul.mubr.msk.f32.gmra.mrb[52].mxu1 %vm366_vm0, %v15076_v7  ;;  %18151 = vst [vmem:[#allocation73_spill] sm:$0xff] %v16199_v20 }
 0x1f3   : > { %v15833_v16 = vadd.f32 %v3794_v18, %v1858_v27  ;;  %12684 = vmatprep.mubr.msk.f32.mxu1 %vm366_vm0, %v15080_v5 }
 0x1f4   : > { %18112 = vst [vmem:[#allocation69_spill] sm:$0xff] %v15829_v61  ;;  %v16195_v61 = vld [vmem:[#allocation2 + $0x13a] sm:$0xff] }
 0x1f5   : > { %18113 = vst [vmem:[#allocation90_spill] sm:$0xff] %v15833_v16  ;;  %v12518_v3 = vpop.f32.mrb[10].mxu0  ;;  %v16191_v16 = vld [vmem:[#allocation2 + $0x12a] sm:$0xff] }
 0x1f6   : > { %v15837_v35 = vadd.f32 %v12518_v3, %v12268_v39  ;;  %v3804_v15 = vpop.f32.mrb[11].mxu0  ;;  %12685 = vmatmul.mubr.msk.f32.gmra.mrb[54].mxu1 %vm366_vm0, %v15092_v21  ;;  %v15880_v3 = vld [vmem:[%s17713_s4 + $0x28] sm:$0xff] }
 0x1f7   : > { %v15841_v13 = vadd.f32 %v3804_v15, %v1868_v8  ;;  %12687 = vmatprep.mubr.msk.f32.mxu1 %vm366_vm0, %v15096_v31 }
 0x1f8   : > { %18114 = vst [vmem:[#allocation91_spill] sm:$0xff] %v15837_v35  ;;  %v16187_v35 = vld [vmem:[#allocation2 + $0x122] sm:$0xff] }
 0x1f9   : > { %18115 = vst [vmem:[#allocation7_spill] sm:$0xff] %v15841_v13  ;;  %v12521_v30 = vpop.f32.mrb[12].mxu0  ;;  %v16183_v13 = vld [vmem:[#allocation2 + $0x112] sm:$0xff] }
 0x1fa   : > { %v15845_v45 = vadd.f32 %v12521_v30, %v12271_v6  ;;  %v3814_v7 = vpop.f32.mrb[13].mxu0  ;;  %12688 = vmatmul.mubr.msk.f32.gmra.mrb[56].mxu1 %vm366_vm0, %v15108_v10 }
 0x1fb   : > { %v15849_v5 = vadd.f32 %v3814_v7, %v1878_v9  ;;  %12690 = vmatprep.mubr.msk.f32.mxu1 %vm366_vm0, %v15112_v25 }
 0x1fc   : > { %18116 = vst [vmem:[#allocation8_spill] sm:$0xff] %v15845_v45  ;;  %v16179_v45 = vld [vmem:[#allocation2 + $0x10a] sm:$0xff] }
 0x1fd   : > { %18117 = vst [vmem:[#allocation28_spill] sm:$0xff] %v15849_v5  ;;  %v12327_v27 = vpop.f32.mrb[16].mxu1  ;;  %v12524_v39 = vpop.f32.mrb[14].mxu0  ;;  %v16175_v5 = vld [vmem:[#allocation2 + $0xfa] sm:$0xff] }
 0x1fe   : > { %v15853_v21 = vadd.f32 %v12524_v39, %v12274_v1  ;;  %v2285_v8 = vpop.f32.mrb[17].mxu1  ;;  %v3824_v2 = vpop.f32.mrb[15].mxu0  ;;  %12691 = vmatmul.mubr.msk.f32.gmra.mrb[58].mxu1 %vm366_vm0, %v15124_v29 }
 0x1ff   : > { %v15857_v31 = vadd.f32 %v3824_v2, %v1888_v36  ;;  %12693 = vmatprep.mubr.msk.f32.mxu1 %vm366_vm0, %v15128_v42 }
 0x200   : > { %18118 = vst [vmem:[#allocation29_spill] sm:$0xff] %v15853_v21  ;;  %v16171_v21 = vld [vmem:[#allocation2 + $0xf2] sm:$0xff] }
 0x201   : > { %18119 = vst [vmem:[#allocation30_spill] sm:$0xff] %v15857_v31  ;;  %v12330_v10 = vpop.f32.mrb[18].mxu1  ;;  %v12527_v6 = vpop.f32.mrb[16].mxu0  ;;  %v16167_v31 = vld [vmem:[#allocation2 + $0xe2] sm:$0xff] }
 0x202   : > { %v15861_v9 = vadd.f32 %v12527_v6, %v12327_v27  ;;  %v2295_v58 = vpop.f32.mrb[19].mxu1  ;;  %v3834_v25 = vpop.f32.mrb[17].mxu0  ;;  %12694 = vmatmul.mubr.msk.f32.gmra.mrb[60].mxu1 %vm366_vm0, %v18121_v44 }
 0x203   : > { %v15865_v1 = vadd.f32 %v3834_v25, %v2285_v8  ;;  %12696 = vmatprep.mubr.msk.f32.mxu1 %vm366_vm0, %v18123_v33 }
 0x204   : > { %18120 = vst [vmem:[#allocation31_spill] sm:$0xff] %v15861_v9  ;;  %v16163_v9 = vld [vmem:[#allocation2 + $0xda] sm:$0xff] }
 0x205   : > { %18122 = vst [vmem:[#allocation32_spill] sm:$0xff] %v15865_v1  ;;  %v12333_v29 = vpop.f32.mrb[20].mxu1  ;;  %v12530_v36 = vpop.f32.mrb[18].mxu0  ;;  %v16159_v1 = vld [vmem:[#allocation2 + $0xca] sm:$0xff] }
 0x206   : > { %v15869_v38 = vadd.f32 %v12530_v36, %v12330_v10  ;;  %v2305_v26 = vpop.f32.mrb[21].mxu1  ;;  %v3844_v42 = vpop.f32.mrb[19].mxu0  ;;  %12697 = vmatmul.mubr.msk.f32.gmra.mrb[62].mxu1 %vm366_vm0, %v18125_v50 }
 0x207   : > { %v15873_v22 = vadd.f32 %v3844_v42, %v2295_v58  ;;  %12701 = vmatprep.mubr.msk.f32.mxu1 %vm366_vm0, %v18086_v34 }
 0x208   : > { %18124 = vst [vmem:[#allocation33_spill] sm:$0xff] %v15869_v38  ;;  %v16155_v38 = vld [vmem:[#allocation2 + $0xc2] sm:$0xff] }
 0x209   : > { %18126 = vst [vmem:[#allocation34_spill] sm:$0xff] %v15873_v22  ;;  %v12336_v52 = vpop.f32.mrb[22].mxu1  ;;  %v12533_v18 = vpop.f32.mrb[20].mxu0  ;;  %v16151_v22 = vld [vmem:[#allocation2 + $0xb2] sm:$0xff] }
 0x20a   : > { %v15882_v15 = vadd.f32 %v12533_v18, %v12333_v29  ;;  %v2315_v30 = vpop.f32.mrb[23].mxu1  ;;  %v3854_v7 = vpop.f32.mrb[21].mxu0  ;;  %12702 = vmatmul.mubr.msk.f32.vlgmr.msra.gmra.mrb[32].mxu1 %vm366_vm0, %v18087_v32 }
 0x20b   : > { %v15886_v27 = vadd.f32 %v3854_v7, %v2305_v26  ;;  %12750 = vmatpush3.msra.mxu1 %v15770_v23  ;;  %12704 = vmatprep.mubr.msk.f32.mxu1 %vm366_vm0, %v18088_v37 }
 0x20c   : > { %18127 = vst [vmem:[#allocation38_spill] sm:$0xff] %v15882_v15  ;;  %12799 = vmatprep.subr.mxu1 %v15880_v3  ;;  %v16147_v15 = vld [vmem:[#allocation2 + $0xaa] sm:$0xff] }
 0x20d   : > { %18128 = vst [vmem:[#allocation40_spill] sm:$0xff] %v15886_v27  ;;  %v12339_v34 = vpop.f32.mrb[24].mxu1  ;;  %v12536_v39 = vpop.f32.mrb[22].mxu0  ;;  %v16143_v27 = vld [vmem:[#allocation2 + $0x9a] sm:$0xff] }
 0x20e   : > { %v15892_v8 = vadd.f32 %v12536_v39, %v12336_v52  ;;  %v2325_v2 = vpop.f32.mrb[25].mxu1  ;;  %v3864_v10 = vpop.f32.mrb[23].mxu0  ;;  %12705 = vmatmul.mubr.msk.f32.gmra.mrb[34].mxu1 %vm366_vm0, %v18089_v41  ;;  %v14357_v39 = vld [vmem:[#allocation2 + $0x21] sm:$0xff] }
 0x20f   : > { %v15896_v6 = vadd.f32 %v3864_v10, %v2315_v30  ;;  %12707 = vmatprep.mubr.msk.f32.mxu1 %vm366_vm0, %v18090_v43  ;;  %v15986_v10 = vld [vmem:[#allocation2 + $0x39] sm:$0xff] }
 0x210   : > { %18129 = vst [vmem:[#allocation45_spill] sm:$0xff] %v15892_v8  ;;  %v16139_v8 = vld [vmem:[#allocation2 + $0x92] sm:$0xff] }
 0x211   : > { %18130 = vst [vmem:[#allocation46_spill] sm:$0xff] %v15896_v6  ;;  %v12342_v23 = vpop.f32.mrb[26].mxu1  ;;  %v12539_v32 = vpop.f32.mrb[24].mxu0  ;;  %v16135_v6 = vld [vmem:[#allocation2 + $0x82] sm:$0xff] }
 0x212   : > { %v15900_v58 = vadd.f32 %v12539_v32, %v12339_v34  ;;  %v2335_v37 = vpop.f32.mrb[27].mxu1  ;;  %v3874_v25 = vpop.f32.mrb[25].mxu0  ;;  %12708 = vmatmul.mubr.msk.f32.gmra.mrb[36].mxu1 %vm366_vm0, %v18091_v48  ;;  %v15994_v32 = vld [vmem:[#allocation2 + $0x51] sm:$0xff] }
 0x213   : > { %v15904_v44 = vadd.f32 %v3874_v25, %v2325_v2  ;;  %12710 = vmatprep.mubr.msk.f32.mxu1 %vm366_vm0, %v18092_v49  ;;  %v15981_v2 = vld [vmem:[#allocation2 + $0x31] sm:$0xff]  ;;  %v16006_v25 = vld [vmem:[#allocation2 + $0x79] sm:$0xff] }
 0x214   : > { %18131 = vst [vmem:[#allocation47_spill] sm:$0xff] %v15900_v58  ;;  %v16131_v58 = vld [vmem:[#allocation2 + $0x7a] sm:$0xff] }
 0x215   : > { %18132 = vst [vmem:[#allocation48_spill] sm:$0xff] %v15904_v44  ;;  %v12345_v41 = vpop.f32.mrb[28].mxu1  ;;  %v12542_v33 = vpop.f32.mrb[26].mxu0  ;;  %v16127_v44 = vld [vmem:[#allocation2 + $0x6a] sm:$0xff] }
 0x216   : > { %v15908_v29 = vadd.f32 %v12542_v33, %v12342_v23  ;;  %v2345_v36 = vpop.f32.mrb[29].mxu1  ;;  %v3884_v43 = vpop.f32.mrb[27].mxu0  ;;  %12711 = vmatmul.mubr.msk.f32.gmra.mrb[38].mxu1 %vm366_vm0, %v18093_v51  ;;  %v15990_v23 = vld [vmem:[#allocation2 + $0x49] sm:$0xff]  ;;  %v16014_v33 = vld [vmem:[#allocation2 + $0x91] sm:$0xff] }
 0x217   : > { %v15912_v26 = vadd.f32 %v3884_v43, %v2335_v37  ;;  %12713 = vmatprep.mubr.msk.f32.mxu1 %vm366_vm0, %v18094_v53  ;;  %v16002_v37 = vld [vmem:[#allocation2 + $0x69] sm:$0xff] }
 0x218   : > { %18133 = vst [vmem:[#allocation49_spill] sm:$0xff] %v15908_v29  ;;  %v16022_v43 = vld [vmem:[#allocation2 + $0xa9] sm:$0xff]  ;;  %v16111_v29 = vld [vmem:[#allocation2 + $0x3a] sm:$0xff] }
 0x219   : > { %18134 = vst [vmem:[#allocation50_spill] sm:$0xff] %v15912_v26  ;;  %v12348_v48 = vpop.f32.mrb[30].mxu1  ;;  %v12545_v42 = vpop.f32.mrb[28].mxu0  ;;  %v16106_v26 = vld [vmem:[#allocation2 + $0x32] sm:$0xff] }
 0x21a   : > { %v15916_v50 = vadd.f32 %v12545_v42, %v12345_v41  ;;  %v2355_v52 = vpop.f32.mrb[31].mxu1  ;;  %v3894_v49 = vpop.f32.mrb[29].mxu0  ;;  %12714 = vmatmul.mubr.msk.f32.gmra.mrb[40].mxu1 %vm366_vm0, %v18095_v55  ;;  %v10598_v55 = vld [vmem:[%s17712_s3] ss:$0 sm:$0xff]  ;;  %v16010_v41 = vld [vmem:[#allocation2 + $0x81] sm:$0xff] }
 0x21b   : > { %v15920_v18 = vadd.f32 %v3894_v49, %v2345_v36  ;;  %12716 = vmatprep.mubr.msk.f32.mxu1 %vm366_vm0, %v18096_v4  ;;  %v18147_v4 = vld [vmem:[#allocation102_spill] sm:$0xff]  ;;  %v16018_v36 = vld [vmem:[#allocation2 + $0x99] sm:$0xff]  ;;  %v16030_v42 = vld [vmem:[#allocation2 + $0xc1] sm:$0xff] }
 0x21c   : > { %18135 = vst [vmem:[#allocation51_spill] sm:$0xff] %v15916_v50  ;;  %v16038_v49 = vld [vmem:[#allocation2 + $0xd9] sm:$0xff]  ;;  %v14387_v50 = vld [vmem:[#allocation2 + $0x22] sm:$0xff] }
 0x21d   : > { %18136 = vst [vmem:[#allocation70_spill] sm:$0xff] %v15920_v18  ;;  %v12548_v51 = vpop.f32.mrb[30].mxu0  ;;  %v16102_v18 = vld [vmem:[%s17713_s4 + $0x38] sm:$0xff] }
 0x21e   : > { %v15924_v30 = vadd.f32 %v12548_v51, %v12348_v48  ;;  %v3904_v7 = vpop.f32.mrb[31].mxu0  ;;  %12717 = vmatmul.mubr.msk.f32.gmra.mrb[42].mxu1 %vm366_vm0, %v18097_v46  ;;  %v18148_v46 = vld [vmem:[#allocation103_spill] sm:$0xff]  ;;  %v16042_v51 = vld [vmem:[#allocation2 + $0xe1] sm:$0xff] }
 0x21f   : > { %v13482_v53 = vadd.f32 %v3904_v7, %v2355_v52  ;;  %12719 = vmatprep.mubr.msk.f32.mxu1 %vm366_vm0, %v18098_v17  ;;  %v14356_v17 = vld [vmem:[#allocation2 + $0x19] sm:$0xff]  ;;  %v16026_v48 = vld [vmem:[#allocation2 + $0xb1] sm:$0xff]  ;;  %v16034_v52 = vld [vmem:[#allocation2 + $0xc9] sm:$0xff] }
 0x220   : > { %18137 = vst [vmem:[#allocation71_spill] sm:$0xff] %v15924_v30  ;;  %v16046_v7 = vld [vmem:[#allocation2 + $0xf1] sm:$0xff]  ;;  %v14386_v30 = vld [vmem:[#allocation2 + $0x1a] sm:$0xff] }
 0x221   : > { %v15933_v34 = vadd.f32 %v13482_v53, %v10598_v55  ;;  %v16050_v53 = vld [vmem:[#allocation2 + $0xf9] sm:$0xff]  ;;  %v16054_v55 = vld [vmem:[#allocation2 + $0x109] sm:$0xff] }
 0x222   : > { %12720 = vmatmul.mubr.msk.f32.gmra.mrb[44].mxu1 %vm366_vm0, %v18056_v56  ;;  %v18139_v56 = vld [vmem:[#allocation92_spill] sm:$0xff] }
 0x223   : > { %18138 = vst [vmem:[#allocation72_spill] sm:$0xff] %v15933_v34  ;;  %12722 = vmatprep.mubr.msk.f32.mxu1 %vm366_vm0, %v18099_v60  ;;  %v15977_v60 = vld [vmem:[%s17713_s4 + $0x30] sm:$0xff]  ;;  %v18150_v34 = vld [vmem:[#allocation56_spill] sm:$0xff] }
 0x226   : > { %12723 = vmatmul.mubr.msk.f32.gmra.mrb[46].mxu1 %vm366_vm0, %v15170_v14  ;;  %v18140_v14 = vld [vmem:[#allocation93_spill] sm:$0xff] }
 0x227   : > { %12725 = vmatprep.mubr.msk.f32.mxu1 %vm366_vm0, %v15174_v19  ;;  %v18141_v19 = vld [vmem:[#allocation94_spill] sm:$0xff] }
 0x22a   : > { %12726 = vmatmul.mubr.msk.f32.gmra.mrb[48].mxu1 %vm366_vm0, %v15184_v54  ;;  %v18142_v54 = vld [vmem:[#allocation95_spill] sm:$0xff] }
 0x22b   : > { %12728 = vmatprep.mubr.msk.f32.mxu1 %vm366_vm0, %v15186_v59  ;;  %v18143_v59 = vld [vmem:[#allocation96_spill] sm:$0xff] }
 0x22e   : > { %12729 = vmatmul.mubr.msk.f32.gmra.mrb[50].mxu1 %vm366_vm0, %v15201_v12  ;;  %v18144_v12 = vld [vmem:[#allocation97_spill] sm:$0xff] }
 0x22f   : > { %12731 = vmatprep.mubr.msk.f32.mxu1 %vm366_vm0, %v15203_v63  ;;  %v18145_v63 = vld [vmem:[#allocation98_spill] sm:$0xff] }
 0x232   : > { %12732 = vmatmul.mubr.msk.f32.gmra.mrb[52].mxu1 %vm366_vm0, %v15215_v11  ;;  %v18146_v11 = vld [vmem:[#allocation99_spill] sm:$0xff] }
 0x233   : > { %12734 = vmatprep.mubr.msk.f32.mxu1 %vm366_vm0, %v18139_v56  ;;  %v16058_v56 = vld [vmem:[#allocation2 + $0x111] sm:$0xff] }
 0x236   : > { %12735 = vmatmul.mubr.msk.f32.gmra.mrb[54].mxu1 %vm366_vm0, %v18140_v14  ;;  %v16062_v14 = vld [vmem:[#allocation2 + $0x121] sm:$0xff] }
 0x237   : > { %12737 = vmatprep.mubr.msk.f32.mxu1 %vm366_vm0, %v18141_v19  ;;  %v16066_v19 = vld [vmem:[#allocation2 + $0x129] sm:$0xff] }
 0x23a   : > { %12738 = vmatmul.mubr.msk.f32.gmra.mrb[56].mxu1 %vm366_vm0, %v18142_v54  ;;  %v16070_v54 = vld [vmem:[#allocation2 + $0x139] sm:$0xff] }
 0x23b   : > { %12740 = vmatprep.mubr.msk.f32.mxu1 %vm366_vm0, %v18143_v59  ;;  %v16074_v59 = vld [vmem:[#allocation2 + $0x141] sm:$0xff] }
 0x23e   : > { %12741 = vmatmul.mubr.msk.f32.gmra.mrb[58].mxu1 %vm366_vm0, %v18144_v12  ;;  %v16078_v12 = vld [vmem:[#allocation2 + $0x151] sm:$0xff] }
 0x23f   : > { %12743 = vmatprep.mubr.msk.f32.mxu1 %vm366_vm0, %v18145_v63  ;;  %v16082_v63 = vld [vmem:[#allocation2 + $0x159] sm:$0xff] }
 0x242   : > { %12744 = vmatmul.mubr.msk.f32.gmra.mrb[60].mxu1 %vm366_vm0, %v18146_v11  ;;  %v16086_v11 = vld [vmem:[#allocation2 + $0x169] sm:$0xff] }
 0x243   : > { %12746 = vmatprep.mubr.msk.f32.mxu1 %vm366_vm0, %v18147_v4 }
 0x246   : > { %12747 = vmatmul.mubr.msk.f32.gmra.mrb[62].mxu1 %vm366_vm0, %v18148_v46 }
 0x247   : > { %12751 = vmatprep.mubr.msk.f32.mxu1 %vm366_vm0, %v14356_v17  ;;  %v16090_v17 = vld [vmem:[#allocation2 + $0x171] sm:$0xff] }
 0x24a   : > { %12752 = vmatmul.mubr.msk.f32.vlgmr.msra.gmra.mrb[32].mxu1 %vm366_vm0, %v14357_v39  ;;  %v18149_v39 = vld [vmem:[#allocation53_spill] sm:$0xff] }
 0x24b   : > { %12800 = vmatpush3.msra.mxu1 %v15880_v3  ;;  %12754 = vmatprep.mubr.msk.f32.mxu1 %vm366_vm0, %v15981_v2  ;;  %v15998_v3 = vld [vmem:[#allocation2 + $0x61] sm:$0xff] }
 0x24c   : > { %12849 = vmatprep.subr.mxu1 %v15977_v60 }
 0x24e   : > { %12755 = vmatmul.mubr.msk.f32.gmra.mrb[34].mxu1 %vm366_vm0, %v15986_v10 }
 0x24f   : > { %12757 = vmatprep.mubr.msk.f32.mxu1 %vm366_vm0, %v15990_v23 }
 0x252   : > { %12758 = vmatmul.mubr.msk.f32.gmra.mrb[36].mxu1 %vm366_vm0, %v15994_v32 }
 0x253   : > { %12760 = vmatprep.mubr.msk.f32.mxu1 %vm366_vm0, %v15998_v3 }
 0x256   : > { %12761 = vmatmul.mubr.msk.f32.gmra.mrb[38].mxu1 %vm366_vm0, %v16002_v37 }
 0x257   : > { %12763 = vmatprep.mubr.msk.f32.mxu1 %vm366_vm0, %v16006_v25 }
 0x25a   : > { %12764 = vmatmul.mubr.msk.f32.gmra.mrb[40].mxu1 %vm366_vm0, %v16010_v41 }
 0x25b   : > { %12766 = vmatprep.mubr.msk.f32.mxu1 %vm366_vm0, %v16014_v33 }
 0x25e   : > { %12767 = vmatmul.mubr.msk.f32.gmra.mrb[42].mxu1 %vm366_vm0, %v16018_v36 }
 0x25f   : > { %12769 = vmatprep.mubr.msk.f32.mxu1 %vm366_vm0, %v16022_v43 }
 0x262   : > { %12770 = vmatmul.mubr.msk.f32.gmra.mrb[44].mxu1 %vm366_vm0, %v16026_v48 }
 0x263   : > { %12772 = vmatprep.mubr.msk.f32.mxu1 %vm366_vm0, %v16030_v42 }
 0x266   : > { %12773 = vmatmul.mubr.msk.f32.gmra.mrb[46].mxu1 %vm366_vm0, %v16034_v52 }
 0x267   : > { %12775 = vmatprep.mubr.msk.f32.mxu1 %vm366_vm0, %v16038_v49 }
 0x26a   : > { %12776 = vmatmul.mubr.msk.f32.gmra.mrb[48].mxu1 %vm366_vm0, %v16042_v51 }
 0x26b   : > { %12778 = vmatprep.mubr.msk.f32.mxu1 %vm366_vm0, %v16046_v7 }
 0x26e   : > { %12779 = vmatmul.mubr.msk.f32.gmra.mrb[50].mxu1 %vm366_vm0, %v16050_v53 }
 0x26f   : > { %12781 = vmatprep.mubr.msk.f32.mxu1 %vm366_vm0, %v16054_v55 }
 0x272   : > { %12782 = vmatmul.mubr.msk.f32.gmra.mrb[52].mxu1 %vm366_vm0, %v16058_v56 }
 0x273   : > { %12784 = vmatprep.mubr.msk.f32.mxu1 %vm366_vm0, %v16062_v14 }
 0x276   : > { %12785 = vmatmul.mubr.msk.f32.gmra.mrb[54].mxu1 %vm366_vm0, %v16066_v19 }
 0x277   : > { %12787 = vmatprep.mubr.msk.f32.mxu1 %vm366_vm0, %v16070_v54 }
 0x27a   : > { %12788 = vmatmul.mubr.msk.f32.gmra.mrb[56].mxu1 %vm366_vm0, %v16074_v59 }
 0x27b   : > { %12790 = vmatprep.mubr.msk.f32.mxu1 %vm366_vm0, %v16078_v12 }
 0x27e   : > { %12791 = vmatmul.mubr.msk.f32.gmra.mrb[58].mxu1 %vm366_vm0, %v16082_v63 }
 0x27f   : > { %12793 = vmatprep.mubr.msk.f32.mxu1 %vm366_vm0, %v16086_v11 }
 0x282   : > { %12794 = vmatmul.mubr.msk.f32.gmra.mrb[60].mxu1 %vm366_vm0, %v16090_v17 }
 0x283   : > { %12796 = vmatprep.mubr.msk.f32.mxu1 %vm366_vm0, %v18149_v39 }
 0x286   : > { %12797 = vmatmul.mubr.msk.f32.gmra.mrb[62].mxu1 %vm366_vm0, %v18150_v34 }
 0x287   : > { %12801 = vmatprep.mubr.msk.f32.mxu1 %vm366_vm0, %v14386_v30  ;;  %v16115_v30 = vld [vmem:[#allocation2 + $0x4a] sm:$0xff] }
 0x28a   : > { %12802 = vmatmul.mubr.msk.f32.vlgmr.msra.gmra.mrb[32].mxu1 %vm366_vm0, %v14387_v50  ;;  %v16119_v50 = vld [vmem:[#allocation2 + $0x52] sm:$0xff] }
 0x28b   : > { %12850 = vmatpush3.msra.mxu1 %v15977_v60  ;;  %12804 = vmatprep.mubr.msk.f32.mxu1 %vm366_vm0, %v16106_v26  ;;  %v16123_v60 = vld [vmem:[#allocation2 + $0x62] sm:$0xff] }
 0x28c   : > { %12899 = vmatprep.subr.mxu1 %v16102_v18 }
 0x28e   : > { %12805 = vmatmul.mubr.msk.f32.gmra.mrb[34].mxu1 %vm366_vm0, %v16111_v29 }
 0x28f   : > { %12807 = vmatprep.mubr.msk.f32.mxu1 %vm366_vm0, %v16115_v30 }
 0x292   : > { %12808 = vmatmul.mubr.msk.f32.gmra.mrb[36].mxu1 %vm366_vm0, %v16119_v50 }
 0x293   : > { %12810 = vmatprep.mubr.msk.f32.mxu1 %vm366_vm0, %v16123_v60 }
 0x296   : > { %12811 = vmatmul.mubr.msk.f32.gmra.mrb[38].mxu1 %vm366_vm0, %v16127_v44 }
 0x297   : > { %12813 = vmatprep.mubr.msk.f32.mxu1 %vm366_vm0, %v16131_v58 }
 0x29a   : > { %12814 = vmatmul.mubr.msk.f32.gmra.mrb[40].mxu1 %vm366_vm0, %v16135_v6 }
 0x29b   : > { %12816 = vmatprep.mubr.msk.f32.mxu1 %vm366_vm0, %v16139_v8 }
 0x29e   : > { %12817 = vmatmul.mubr.msk.f32.gmra.mrb[42].mxu1 %vm366_vm0, %v16143_v27 }
 0x29f   : > { %12819 = vmatprep.mubr.msk.f32.mxu1 %vm366_vm0, %v16147_v15 }
 0x2a2   : > { %12820 = vmatmul.mubr.msk.f32.gmra.mrb[44].mxu1 %vm366_vm0, %v16151_v22 }
 0x2a3   : > { %12822 = vmatprep.mubr.msk.f32.mxu1 %vm366_vm0, %v16155_v38 }
 0x2a6   : > { %12823 = vmatmul.mubr.msk.f32.gmra.mrb[46].mxu1 %vm366_vm0, %v16159_v1 }
 0x2a7   : > { %12825 = vmatprep.mubr.msk.f32.mxu1 %vm366_vm0, %v16163_v9 }
 0x2aa   : > { %12826 = vmatmul.mubr.msk.f32.gmra.mrb[48].mxu1 %vm366_vm0, %v16167_v31 }
 0x2ab   : > { %12828 = vmatprep.mubr.msk.f32.mxu1 %vm366_vm0, %v16171_v21 }
 0x2ae   : > { %12829 = vmatmul.mubr.msk.f32.gmra.mrb[50].mxu1 %vm366_vm0, %v16175_v5 }
 0x2af   : > { %12831 = vmatprep.mubr.msk.f32.mxu1 %vm366_vm0, %v16179_v45 }
 0x2b2   : > { %12832 = vmatmul.mubr.msk.f32.gmra.mrb[52].mxu1 %vm366_vm0, %v16183_v13 }
 0x2b3   : > { %12834 = vmatprep.mubr.msk.f32.mxu1 %vm366_vm0, %v16187_v35 }
 0x2b6   : > { %12835 = vmatmul.mubr.msk.f32.gmra.mrb[54].mxu1 %vm366_vm0, %v16191_v16 }
 0x2b7   : > { %12837 = vmatprep.mubr.msk.f32.mxu1 %vm366_vm0, %v16195_v61 }
 0x2ba   : > { %12838 = vmatmul.mubr.msk.f32.gmra.mrb[56].mxu1 %vm366_vm0, %v16199_v20  ;;  %v14428_v20 = vld [vmem:[#allocation2 + $0xa8] sm:$0xff] }
 0x2bb   : > { %12840 = vmatprep.mubr.msk.f32.mxu1 %vm366_vm0, %v16203_v47  ;;  %v14424_v47 = vld [vmem:[#allocation2 + $0x78] sm:$0xff] }
 0x2be   : > { %12841 = vmatmul.mubr.msk.f32.gmra.mrb[58].mxu1 %vm366_vm0, %v16207_v24  ;;  %v14419_v24 = vld [vmem:[#allocation2 + $0x38] sm:$0xff] }
 0x2bf   : > { %12843 = vmatprep.mubr.msk.f32.mxu1 %vm366_vm0, %v16211_v57  ;;  %v16231_v57 = vld [vmem:[%s17713_s4 + $0x40] sm:$0xff] }
 0x2c2   : > { %12844 = vmatmul.mubr.msk.f32.gmra.mrb[60].mxu1 %vm366_vm0, %v16215_v28  ;;  %v14420_v28 = vld [vmem:[#allocation2 + $0x48] sm:$0xff] }
 0x2c3   : > { %12846 = vmatprep.mubr.msk.f32.mxu1 %vm366_vm0, %v16219_v40  ;;  %v14421_v40 = vld [vmem:[#allocation2 + $0x50] sm:$0xff] }
 0x2c6   : > { %12847 = vmatmul.mubr.msk.f32.gmra.mrb[62].mxu1 %vm366_vm0, %v16223_v0  ;;  %v14422_v0 = vld [vmem:[#allocation2 + $0x60] sm:$0xff] }
 0x2c7   : > { %12851 = vmatprep.mubr.msk.f32.mxu1 %vm366_vm0, %v14418_v62  ;;  %v14423_v62 = vld [vmem:[#allocation2 + $0x68] sm:$0xff] }
 0x2ca   : > { %12852 = vmatmul.mubr.msk.f32.vlgmr.msra.gmra.mrb[32].mxu1 %vm366_vm0, %v14419_v24  ;;  %v14425_v24 = vld [vmem:[#allocation2 + $0x80] sm:$0xff] }
 0x2cb   : > { %12900 = vmatpush3.msra.mxu1 %v16102_v18  ;;  %12854 = vmatprep.mubr.msk.f32.mxu1 %vm366_vm0, %v14420_v28  ;;  %v14426_v18 = vld [vmem:[#allocation2 + $0x90] sm:$0xff]  ;;  %v14427_v28 = vld [vmem:[#allocation2 + $0x98] sm:$0xff] }
 0x2cc   : > { %12949 = vmatprep.subr.mxu1 %v16231_v57 }
 0x2ce   : > { %12855 = vmatmul.mubr.msk.f32.gmra.mrb[34].mxu1 %vm366_vm0, %v14421_v40  ;;  %v14429_v40 = vld [vmem:[#allocation2 + $0xb0] sm:$0xff] }
 0x2cf   : > { %12857 = vmatprep.mubr.msk.f32.mxu1 %vm366_vm0, %v14422_v0  ;;  %v14430_v0 = vld [vmem:[#allocation2 + $0xc0] sm:$0xff] }
 0x2d2   : > { %12858 = vmatmul.mubr.msk.f32.gmra.mrb[36].mxu1 %vm366_vm0, %v14423_v62  ;;  %v14431_v62 = vld [vmem:[#allocation2 + $0xc8] sm:$0xff] }
 0x2d3   : > { %12860 = vmatprep.mubr.msk.f32.mxu1 %vm366_vm0, %v14424_v47  ;;  %v14432_v47 = vld [vmem:[#allocation2 + $0xd8] sm:$0xff] }
 0x2d6   : > { %12861 = vmatmul.mubr.msk.f32.gmra.mrb[38].mxu1 %vm366_vm0, %v14425_v24  ;;  %v14433_v24 = vld [vmem:[#allocation2 + $0xe0] sm:$0xff] }
 0x2d7   : > { %12863 = vmatprep.mubr.msk.f32.mxu1 %vm366_vm0, %v14426_v18  ;;  %v14434_v18 = vld [vmem:[#allocation2 + $0xf0] sm:$0xff] }
 0x2da   : > { %12864 = vmatmul.mubr.msk.f32.gmra.mrb[40].mxu1 %vm366_vm0, %v14427_v28  ;;  %v14435_v28 = vld [vmem:[#allocation2 + $0xf8] sm:$0xff] }
 0x2db   : > { %12866 = vmatprep.mubr.msk.f32.mxu1 %vm366_vm0, %v14428_v20  ;;  %v14436_v20 = vld [vmem:[#allocation2 + $0x108] sm:$0xff] }
 0x2de   : > { %12867 = vmatmul.mubr.msk.f32.gmra.mrb[42].mxu1 %vm366_vm0, %v14429_v40  ;;  %v14437_v40 = vld [vmem:[#allocation2 + $0x110] sm:$0xff] }
 0x2df   : > { %12869 = vmatprep.mubr.msk.f32.mxu1 %vm366_vm0, %v14430_v0  ;;  %v14438_v0 = vld [vmem:[#allocation2 + $0x120] sm:$0xff] }
 0x2e2   : > { %12870 = vmatmul.mubr.msk.f32.gmra.mrb[44].mxu1 %vm366_vm0, %v14431_v62  ;;  %v14439_v62 = vld [vmem:[#allocation2 + $0x128] sm:$0xff] }
 0x2e3   : > { %12872 = vmatprep.mubr.msk.f32.mxu1 %vm366_vm0, %v14432_v47  ;;  %v14440_v47 = vld [vmem:[#allocation2 + $0x138] sm:$0xff] }
 0x2e6   : > { %12873 = vmatmul.mubr.msk.f32.gmra.mrb[46].mxu1 %vm366_vm0, %v14433_v24  ;;  %v14441_v24 = vld [vmem:[#allocation2 + $0x140] sm:$0xff] }
 0x2e7   : > { %12875 = vmatprep.mubr.msk.f32.mxu1 %vm366_vm0, %v14434_v18  ;;  %v14442_v18 = vld [vmem:[#allocation2 + $0x150] sm:$0xff] }
 0x2ea   : > { %12876 = vmatmul.mubr.msk.f32.gmra.mrb[48].mxu1 %vm366_vm0, %v14435_v28  ;;  %v14443_v28 = vld [vmem:[#allocation2 + $0x158] sm:$0xff] }
 0x2eb   : > { %12878 = vmatprep.mubr.msk.f32.mxu1 %vm366_vm0, %v14436_v20  ;;  %v14444_v20 = vld [vmem:[#allocation2 + $0x168] sm:$0xff] }
 0x2ee   : > { %12879 = vmatmul.mubr.msk.f32.gmra.mrb[50].mxu1 %vm366_vm0, %v14437_v40  ;;  %v14445_v40 = vld [vmem:[#allocation2 + $0x170] sm:$0xff] }
 0x2ef   : > { %12881 = vmatprep.mubr.msk.f32.mxu1 %vm366_vm0, %v14438_v0  ;;  %v18158_v0 = vld [vmem:[#allocation104_spill] sm:$0xff] }
 0x2f2   : > { %12882 = vmatmul.mubr.msk.f32.gmra.mrb[52].mxu1 %vm366_vm0, %v14439_v62  ;;  %v18159_v62 = vld [vmem:[#allocation105_spill] sm:$0xff] }
 0x2f3   : > { %12884 = vmatprep.mubr.msk.f32.mxu1 %vm366_vm0, %v14440_v47  ;;  %v10896_v47 = vld [vmem:[%s17715_s6 + $0x4] sm:$0x7] }
 0x2f4   : > { %12999 = vmatprep.subr.msk.mxu0 %vm6579_vm3, %v10896_v47 }
 0x2f5   : > { %13000 = vmatpush3.msk.msra.mxu0 %vm6579_vm3, %v10896_v47 }
 0x2f6   : > { %12885 = vmatmul.mubr.msk.f32.gmra.mrb[54].mxu1 %vm366_vm0, %v14441_v24 }
 0x2f7   : > { %12887 = vmatprep.mubr.msk.f32.mxu1 %vm366_vm0, %v14442_v18 }
 0x2fa   : > { %12888 = vmatmul.mubr.msk.f32.gmra.mrb[56].mxu1 %vm366_vm0, %v14443_v28 }
 0x2fb   : > { %12890 = vmatprep.mubr.msk.f32.mxu1 %vm366_vm0, %v14444_v20 }
 0x2fe   : > { %12891 = vmatmul.mubr.msk.f32.gmra.mrb[58].mxu1 %vm366_vm0, %v14445_v40 }
 0x2ff   : > { %12893 = vmatprep.mubr.msk.f32.mxu1 %vm366_vm0, %v18147_v4  ;;  %v18160_v4 = vmov 0.0  }
 0x300   : > { %413 = vst.msk [vmem:[#allocation3] sm:$0xff] %vm412_vm4, %v18160_v4  ;;  %414 = vst.msk [vmem:[#allocation3 + $0x8] sm:$0xff] %vm412_vm4, %v18160_v4 }
 0x301   : > { %418 = vst.msk [vmem:[#allocation3 + $0x198] sm:$0xff] %vm412_vm4, %v18160_v4  ;;  %419 = vst.msk [vmem:[#allocation3 + $0x1a0] sm:$0xff] %vm412_vm4, %v18160_v4 }
 0x302   : > { %12894 = vmatmul.mubr.msk.f32.gmra.mrb[60].mxu1 %vm366_vm0, %v18148_v46  ;;  %v18162_v46 = vld [vmem:[#allocation59_spill] sm:$0xff]  ;;  %416 = vst.msk [vmem:[#allocation3 + $0x10] sm:$0x3] %vm415_vm5, %v18160_v4  ;;  %420 = vst.msk [vmem:[#allocation3 + $0x1a8] sm:$0x3] %vm415_vm5, %v18160_v4 }
 0x303   : > { %12896 = vmatprep.mubr.msk.f32.mxu1 %vm366_vm0, %v18158_v0  ;;  %422 = vst.msk [vmem:[#allocation3] sm:$0x1] %vm421_vm6, %v18160_v4  ;;  %423 = vst.msk [vmem:[#allocation3 + $0x18] sm:$0x1] %vm421_vm6, %v18160_v4 }
 0x304   : > { %424 = vst.msk [vmem:[#allocation3 + $0x30] sm:$0x1] %vm421_vm6, %v18160_v4  ;;  %425 = vst.msk [vmem:[#allocation3 + $0x48] sm:$0x1] %vm421_vm6, %v18160_v4 }
 0x305   : > { %426 = vst.msk [vmem:[#allocation3 + $0x60] sm:$0x1] %vm421_vm6, %v18160_v4  ;;  %427 = vst.msk [vmem:[#allocation3 + $0x78] sm:$0x1] %vm421_vm6, %v18160_v4 }
 0x306   : > { %12897 = vmatmul.mubr.msk.f32.gmra.mrb[62].mxu1 %vm366_vm0, %v18159_v62  ;;  %428 = vst.msk [vmem:[#allocation3 + $0x90] sm:$0x1] %vm421_vm6, %v18160_v4  ;;  %429 = vst.msk [vmem:[#allocation3 + $0xa8] sm:$0x1] %vm421_vm6, %v18160_v4  ;;  %v6298_v62 = vld [vmem:[%s16504_s23 + $0x58] sm:$0xff] }
 0x307   : > { %12901 = vmatprep.mubr.msk.f32.mxu1 %vm366_vm0, %v15981_v2  ;;  %430 = vst.msk [vmem:[#allocation3 + $0xc0] sm:$0x1] %vm421_vm6, %v18160_v4  ;;  %431 = vst.msk [vmem:[#allocation3 + $0xd8] sm:$0x1] %vm421_vm6, %v18160_v4 }
 0x308   : > { %432 = vst.msk [vmem:[#allocation3 + $0xf0] sm:$0x1] %vm421_vm6, %v18160_v4  ;;  %433 = vst.msk [vmem:[#allocation3 + $0x108] sm:$0x1] %vm421_vm6, %v18160_v4 }
 0x309   : > { %434 = vst.msk [vmem:[#allocation3 + $0x120] sm:$0x1] %vm421_vm6, %v18160_v4  ;;  %435 = vst.msk [vmem:[#allocation3 + $0x138] sm:$0x1] %vm421_vm6, %v18160_v4 }
 0x30a   : > { %12902 = vmatmul.mubr.msk.f32.vlgmr.msra.gmra.mrb[32].mxu1 %vm366_vm0, %v15986_v10  ;;  %436 = vst.msk [vmem:[#allocation3 + $0x150] sm:$0x1] %vm421_vm6, %v18160_v4  ;;  %437 = vst.msk [vmem:[#allocation3 + $0x168] sm:$0x1] %vm421_vm6, %v18160_v4 }
 0x30b   : > { %12950 = vmatpush3.msra.mxu1 %v16231_v57  ;;  %12904 = vmatprep.mubr.msk.f32.mxu1 %vm366_vm0, %v15990_v23  ;;  %v18161_v57 = vld [vmem:[#allocation58_spill] sm:$0xff]  ;;  %438 = vst.msk [vmem:[#allocation3 + $0x180] sm:$0x1] %vm421_vm6, %v18160_v4  ;;  %439 = vst.msk [vmem:[#allocation3 + $0x198] sm:$0x1] %vm421_vm6, %v18160_v4  ;;  %v6290_v23 = vld [vmem:[%s16504_s23 + $0x18] sm:$0xff] }
 0x30c   : > { %440 = vst.msk [vmem:[#allocation3 + $0x11] sm:$0x1] %vm421_vm6, %v18160_v4  ;;  %441 = vst.msk [vmem:[#allocation3 + $0x29] sm:$0x1] %vm421_vm6, %v18160_v4 }
 0x30d   : > { %442 = vst.msk [vmem:[#allocation3 + $0x41] sm:$0x1] %vm421_vm6, %v18160_v4  ;;  %443 = vst.msk [vmem:[#allocation3 + $0x59] sm:$0x1] %vm421_vm6, %v18160_v4 }
 0x30e   : > { %12905 = vmatmul.mubr.msk.f32.gmra.mrb[34].mxu1 %vm366_vm0, %v15994_v32  ;;  %444 = vst.msk [vmem:[#allocation3 + $0x71] sm:$0x1] %vm421_vm6, %v18160_v4  ;;  %445 = vst.msk [vmem:[#allocation3 + $0x89] sm:$0x1] %vm421_vm6, %v18160_v4 }
 0x30f   : > { %12907 = vmatprep.mubr.msk.f32.mxu1 %vm366_vm0, %v15998_v3  ;;  %446 = vst.msk [vmem:[#allocation3 + $0xa1] sm:$0x1] %vm421_vm6, %v18160_v4  ;;  %447 = vst.msk [vmem:[#allocation3 + $0xb9] sm:$0x1] %vm421_vm6, %v18160_v4 }
 0x310   : > { %448 = vst.msk [vmem:[#allocation3 + $0xd1] sm:$0x1] %vm421_vm6, %v18160_v4  ;;  %449 = vst.msk [vmem:[#allocation3 + $0xe9] sm:$0x1] %vm421_vm6, %v18160_v4 }
 0x311   : > { %450 = vst.msk [vmem:[#allocation3 + $0x101] sm:$0x1] %vm421_vm6, %v18160_v4  ;;  %451 = vst.msk [vmem:[#allocation3 + $0x119] sm:$0x1] %vm421_vm6, %v18160_v4 }
 0x312   : > { %12908 = vmatmul.mubr.msk.f32.gmra.mrb[36].mxu1 %vm366_vm0, %v16002_v37  ;;  %452 = vst.msk [vmem:[#allocation3 + $0x131] sm:$0x1] %vm421_vm6, %v18160_v4  ;;  %453 = vst.msk [vmem:[#allocation3 + $0x149] sm:$0x1] %vm421_vm6, %v18160_v4  ;;  %v6289_v37 = vld [vmem:[%s16504_s23 + $0x10] sm:$0xff] }
 0x313   : > { %12910 = vmatprep.mubr.msk.f32.mxu1 %vm366_vm0, %v16006_v25  ;;  %454 = vst.msk [vmem:[#allocation3 + $0x161] sm:$0x1] %vm421_vm6, %v18160_v4  ;;  %455 = vst.msk [vmem:[#allocation3 + $0x179] sm:$0x1] %vm421_vm6, %v18160_v4 }
 0x314   : > { %456 = vst.msk [vmem:[#allocation3 + $0x191] sm:$0x1] %vm421_vm6, %v18160_v4  ;;  %457 = vst.msk [vmem:[#allocation3 + $0x1a9] sm:$0x1] %vm421_vm6, %v18160_v4 }
 0x316   : > { %12911 = vmatmul.mubr.msk.f32.gmra.mrb[38].mxu1 %vm366_vm0, %v16010_v41 }
 0x317   : > { %12913 = vmatprep.mubr.msk.f32.mxu1 %vm366_vm0, %v16014_v33 }
 0x31a   : > { %12914 = vmatmul.mubr.msk.f32.gmra.mrb[40].mxu1 %vm366_vm0, %v16018_v36 }
 0x31b   : > { %12916 = vmatprep.mubr.msk.f32.mxu1 %vm366_vm0, %v16022_v43  ;;  %v6292_v43 = vld [vmem:[%s16504_s23 + $0x28] sm:$0xff] }
 0x31e   : > { %12917 = vmatmul.mubr.msk.f32.gmra.mrb[42].mxu1 %vm366_vm0, %v16026_v48 }
 0x31f   : > { %12919 = vmatprep.mubr.msk.f32.mxu1 %vm366_vm0, %v16030_v42 }
 0x322   : > { %12920 = vmatmul.mubr.msk.f32.gmra.mrb[44].mxu1 %vm366_vm0, %v16034_v52  ;;  %v6291_v52 = vld [vmem:[%s16504_s23 + $0x20] sm:$0xff] }
 0x323   : > { %12922 = vmatprep.mubr.msk.f32.mxu1 %vm366_vm0, %v16038_v49 }
 0x326   : > { %12923 = vmatmul.mubr.msk.f32.gmra.mrb[46].mxu1 %vm366_vm0, %v16042_v51 }
 0x327   : > { %12925 = vmatprep.mubr.msk.f32.mxu1 %vm366_vm0, %v16046_v7 }
 0x32a   : > { %12926 = vmatmul.mubr.msk.f32.gmra.mrb[48].mxu1 %vm366_vm0, %v16050_v53 }
 0x32b   : > { %12928 = vmatprep.mubr.msk.f32.mxu1 %vm366_vm0, %v16054_v55  ;;  %v6294_v55 = vld [vmem:[%s16504_s23 + $0x38] sm:$0xff] }
 0x32e   : > { %12929 = vmatmul.mubr.msk.f32.gmra.mrb[50].mxu1 %vm366_vm0, %v16058_v56 }
 0x32f   : > { %12931 = vmatprep.mubr.msk.f32.mxu1 %vm366_vm0, %v16062_v14 }
 0x332   : > { %12932 = vmatmul.mubr.msk.f32.gmra.mrb[52].mxu1 %vm366_vm0, %v16066_v19  ;;  %v6293_v19 = vld [vmem:[%s16504_s23 + $0x30] sm:$0xff] }
 0x333   : > { %12934 = vmatprep.mubr.msk.f32.mxu1 %vm366_vm0, %v16070_v54 }
 0x336   : > { %12935 = vmatmul.mubr.msk.f32.gmra.mrb[54].mxu1 %vm366_vm0, %v16074_v59 }
 0x337   : > { %12937 = vmatprep.mubr.msk.f32.mxu1 %vm366_vm0, %v16078_v12 }
 0x33a   : > { %12938 = vmatmul.mubr.msk.f32.gmra.mrb[56].mxu1 %vm366_vm0, %v16082_v63 }
 0x33b   : > { %12940 = vmatprep.mubr.msk.f32.mxu1 %vm366_vm0, %v16086_v11 }
 0x33e   : > { %12941 = vmatmul.mubr.msk.f32.gmra.mrb[58].mxu1 %vm366_vm0, %v16090_v17 }
 0x33f   : > { %12943 = vmatprep.mubr.msk.f32.mxu1 %vm366_vm0, %v18149_v39  ;;  %v6296_v39 = vld [vmem:[%s16504_s23 + $0x48] sm:$0xff] }
 0x342   : > { %12944 = vmatmul.mubr.msk.f32.gmra.mrb[60].mxu1 %vm366_vm0, %v18150_v34 }
 0x343   : > { %12946 = vmatprep.mubr.msk.f32.mxu1 %vm366_vm0, %v18161_v57  ;;  %v6297_v57 = vld [vmem:[%s16504_s23 + $0x50] sm:$0xff] }
 0x346   : > { %12947 = vmatmul.mubr.msk.f32.gmra.mrb[62].mxu1 %vm366_vm0, %v18162_v46 }
 0x347   : > { %12951 = vmatprep.mubr.msk.f32.mxu1 %vm366_vm0, %v16106_v26 }
 0x34a   : > { %12952 = vmatmul.mubr.msk.f32.vlgmr.msra.gmra.mrb[32].mxu1 %vm366_vm0, %v16111_v29  ;;  %v6287_v29 = vld [vmem:[%s16504_s23] sm:$0xff] }
 0x34b   : > { %12954 = vmatprep.mubr.msk.f32.mxu1 %vm366_vm0, %v16115_v30 }
 0x34e   : > { %12955 = vmatmul.mubr.msk.f32.gmra.mrb[34].mxu1 %vm366_vm0, %v16119_v50 }
 0x34f   : > { %12957 = vmatprep.mubr.msk.f32.mxu1 %vm366_vm0, %v16123_v60  ;;  %v6295_v60 = vld [vmem:[%s16504_s23 + $0x40] sm:$0xff] }
 0x352   : > { %12958 = vmatmul.mubr.msk.f32.gmra.mrb[36].mxu1 %vm366_vm0, %v16127_v44 }
 0x353   : > { %12960 = vmatprep.mubr.msk.f32.mxu1 %vm366_vm0, %v16131_v58 }
 0x356   : > { %12961 = vmatmul.mubr.msk.f32.gmra.mrb[38].mxu1 %vm366_vm0, %v16135_v6  ;;  %v6288_v6 = vld [vmem:[%s16504_s23 + $0x8] sm:$0xff] }
 0x357   : > { %12963 = vmatprep.mubr.msk.f32.mxu1 %vm366_vm0, %v16139_v8 }
 0x35a   : > { %12964 = vmatmul.mubr.msk.f32.gmra.mrb[40].mxu1 %vm366_vm0, %v16143_v27  ;;  %v16509_v27 = vld [vmem:[%s17714_s5] ss:$0 sm:$0xff] }
 0x35b   : > { %12966 = vmatprep.mubr.msk.f32.mxu1 %vm366_vm0, %v16147_v15  ;;  %v16496_v15 = vld [vmem:[%s17715_s6 + $0x8] sm:$0x7] }
 0x35e   : > { %12967 = vmatmul.mubr.msk.f32.gmra.mrb[42].mxu1 %vm366_vm0, %v16151_v22  ;;  %v6448_v22 = vld [vmem:[%s17715_s6] sm:$0x7] }
 0x35f   : > { %12969 = vmatprep.mubr.msk.f32.mxu1 %vm366_vm0, %v16155_v38  ;;  %v6450_v38 = vld [vmem:[#allocation3 + $0x9] sm:$0xff]  ;;  %13049 = vmatprep.subr.msk.mxu0 %vm6579_vm3, %v6448_v22 }
 0x362   : > { %12970 = vmatmul.mubr.msk.f32.gmra.mrb[44].mxu1 %vm366_vm0, %v16159_v1  ;;  %v6449_v1 = vld [vmem:[#allocation3 + $0x1] sm:$0xff] }
 0x363   : > { %12972 = vmatprep.mubr.msk.f32.mxu1 %vm366_vm0, %v16163_v9  ;;  %v18171_v9 = vld [vmem:[#allocation61_spill] sm:$0xff]  ;;  %13001 = vmatprep.mubr.msk.f32.mxu0 %vm412_vm4, %v6449_v1 }
 0x364   : > { %13002 = vmatmul.mubr.msk.f32.vlgmr.msra.gmra.mrb[32].mxu0 %vm412_vm4, %v6450_v38 }
 0x365   : > { %13050 = vmatpush3.msk.msra.mxu0 %vm6579_vm3, %v6448_v22 }
 0x366   : > { %12973 = vmatmul.mubr.msk.f32.gmra.mrb[46].mxu1 %vm366_vm0, %v16167_v31  ;;  %v18163_v31 = vld [vmem:[#allocation73_spill] sm:$0xff]  ;;  %13099 = vmatprep.subr.msk.mxu0 %vm6579_vm3, %v16496_v15 }
 0x367   : > { %12975 = vmatprep.mubr.msk.f32.mxu1 %vm366_vm0, %v16171_v21  ;;  %v18164_v21 = vld [vmem:[#allocation74_spill] sm:$0xff] }
 0x36a   : > { %12976 = vmatmul.mubr.msk.f32.gmra.mrb[48].mxu1 %vm366_vm0, %v16175_v5  ;;  %v18165_v5 = vld [vmem:[#allocation75_spill] sm:$0xff] }
 0x36b   : > { %12978 = vmatprep.mubr.msk.f32.mxu1 %vm366_vm0, %v16179_v45  ;;  %v18166_v45 = vld [vmem:[#allocation76_spill] sm:$0xff] }
 0x36e   : > { %12979 = vmatmul.mubr.msk.f32.gmra.mrb[50].mxu1 %vm366_vm0, %v16183_v13  ;;  %v18167_v13 = vld [vmem:[#allocation77_spill] sm:$0xff] }
 0x36f   : > { %12981 = vmatprep.mubr.msk.f32.mxu1 %vm366_vm0, %v16187_v35  ;;  %v18168_v35 = vld [vmem:[#allocation78_spill] sm:$0xff] }
 0x372   : > { %12982 = vmatmul.mubr.msk.f32.gmra.mrb[52].mxu1 %vm366_vm0, %v16191_v16  ;;  %v18169_v16 = vld [vmem:[#allocation79_spill] sm:$0xff] }
 0x373   : > { %12984 = vmatprep.mubr.msk.f32.mxu1 %vm366_vm0, %v16195_v61  ;;  %v18170_v61 = vld [vmem:[#allocation60_spill] sm:$0xff] }
 0x376   : > { %12985 = vmatmul.mubr.msk.f32.gmra.mrb[54].mxu1 %vm366_vm0, %v18163_v31 }
 0x377   : > { %12987 = vmatprep.mubr.msk.f32.mxu1 %vm366_vm0, %v18164_v21 }
 0x37a   : > { %12988 = vmatmul.mubr.msk.f32.gmra.mrb[56].mxu1 %vm366_vm0, %v18165_v5 }
 0x37b   : > { %12990 = vmatprep.mubr.msk.f32.mxu1 %vm366_vm0, %v18166_v45 }
 0x37e   : > { %12991 = vmatmul.mubr.msk.f32.gmra.mrb[58].mxu1 %vm366_vm0, %v18167_v13 }
 0x37f   : > { %12993 = vmatprep.mubr.msk.f32.mxu1 %vm366_vm0, %v18168_v35  ;;  %v6300_v35 = vld [vmem:[%s16504_s23 + $0x68] sm:$0xff] }
 0x382   : > { %12994 = vmatmul.mubr.msk.f32.gmra.mrb[60].mxu1 %vm366_vm0, %v18169_v16 }
 0x383   : > { %12996 = vmatprep.mubr.msk.f32.mxu1 %vm366_vm0, %v18170_v61 }
 0x386   : > { %12997 = vmatmul.mubr.msk.f32.gmra.mrb[62].mxu1 %vm366_vm0, %v18171_v9  ;;  %v6299_v9 = vld [vmem:[%s16504_s23 + $0x60] sm:$0xff] }
 0x41d   : > { %v12953_v8 = vpop.f32.mrb[32].mxu1 }
 0x41e   : > { %v6256_v58 = vadd.f32 %v12953_v8, %v16509_v27  ;;  %v6058_v44 = vpop.f32.mrb[33].mxu1 }
 0x41f   : > { %v6255_v26 = vadd.f32 %v16509_v27, %v6058_v44  ;;  %v6302_v44 = vld [vmem:[%s16504_s23 + $0x78] sm:$0xff] }
 0x420   : > { %v6320_v34 = vadd.f32 %v6288_v6, %v6256_v58 }
 0x421   : > { %v6319_v2 = vadd.f32 %v6287_v29, %v6255_v26  ;;  %v12956_v10 = vpop.f32.mrb[34].mxu1 }
 0x422   : > { %6352 = vst.msk [vmem:[%s16518_s28 + $0x8] sm:$0xff] %vm412_vm4, %v6320_v34  ;;  %6385 = vst.msk [vmem:[#allocation3 + $0x21] sm:$0xff] %vm412_vm4, %v6320_v34  ;;  %v6258_v32 = vadd.f32 %v12956_v10, %v16509_v27  ;;  %v6068_v3 = vpop.f32.mrb[35].mxu1  ;;  %v6301_v34 = vld [vmem:[%s16504_s23 + $0x70] sm:$0xff] }
 0x423   : > { %6351 = vst.msk [vmem:[%s16518_s28] sm:$0xff] %vm412_vm4, %v6319_v2  ;;  %6384 = vst.msk [vmem:[#allocation3 + $0x19] sm:$0xff] %vm412_vm4, %v6319_v2  ;;  %v6257_v25 = vadd.f32 %v16509_v27, %v6068_v3 }
 0x424   : > { %v6322_v41 = vadd.f32 %v6290_v23, %v6258_v32 }
 0x425   : > { %v6321_v33 = vadd.f32 %v6289_v37, %v6257_v25  ;;  %v12959_v36 = vpop.f32.mrb[36].mxu1  ;;  %v6304_v25 = vld [vmem:[%s16504_s23 + $0x88] sm:$0xff] }
 0x426   : > { %6354 = vst.msk [vmem:[%s16518_s28 + $0x18] sm:$0xff] %vm412_vm4, %v6322_v41  ;;  %6387 = vst.msk [vmem:[#allocation3 + $0x39] sm:$0xff] %vm412_vm4, %v6322_v41  ;;  %v6260_v48 = vadd.f32 %v12959_v36, %v16509_v27  ;;  %v6078_v42 = vpop.f32.mrb[37].mxu1  ;;  %v6303_v36 = vld [vmem:[%s16504_s23 + $0x80] sm:$0xff] }
 0x427   : > { %6353 = vst.msk [vmem:[%s16518_s28 + $0x10] sm:$0xff] %vm412_vm4, %v6321_v33  ;;  %6386 = vst.msk [vmem:[#allocation3 + $0x31] sm:$0xff] %vm412_vm4, %v6321_v33  ;;  %v6259_v49 = vadd.f32 %v16509_v27, %v6078_v42 }
 0x428   : > { %v6324_v51 = vadd.f32 %v6292_v43, %v6260_v48 }
 0x429   : > { %v6323_v7 = vadd.f32 %v6291_v52, %v6259_v49  ;;  %v12962_v53 = vpop.f32.mrb[38].mxu1  ;;  %v16555_v12 = vld [vmem:[#allocation3 + $0x21] sm:$0xff] }
 0x42a   : > { %6356 = vst.msk [vmem:[%s16518_s28 + $0x28] sm:$0xff] %vm412_vm4, %v6324_v51  ;;  %6389 = vst.msk [vmem:[#allocation3 + $0x51] sm:$0xff] %vm412_vm4, %v6324_v51  ;;  %v6262_v56 = vadd.f32 %v12962_v53, %v16509_v27  ;;  %v6088_v14 = vpop.f32.mrb[39].mxu1  ;;  %v16547_v54 = vld [vmem:[#allocation3 + $0x19] sm:$0xff] }
 0x42b   : > { %6355 = vst.msk [vmem:[%s16518_s28 + $0x20] sm:$0xff] %vm412_vm4, %v6323_v7  ;;  %6388 = vst.msk [vmem:[#allocation3 + $0x49] sm:$0xff] %vm412_vm4, %v6323_v7  ;;  %v6261_v59 = vadd.f32 %v16509_v27, %v6088_v14  ;;  %13004 = vmatprep.mubr.msk.f32.mxu0 %vm412_vm4, %v16547_v54  ;;  %v6306_v7 = vld [vmem:[%s16504_s23 + $0x98] sm:$0xff] }
 0x42c   : > { %v6326_v63 = vadd.f32 %v6294_v55, %v6262_v56  ;;  %13005 = vmatmul.mubr.msk.f32.gmra.mrb[34].mxu0 %vm412_vm4, %v16555_v12  ;;  %v6305_v56 = vld [vmem:[%s16504_s23 + $0x90] sm:$0xff] }
 0x42d   : > { %v6325_v11 = vadd.f32 %v6293_v19, %v6261_v59  ;;  %v12965_v17 = vpop.f32.mrb[40].mxu1  ;;  %v16573_v28 = vld [vmem:[#allocation3 + $0x39] sm:$0xff] }
 0x42e   : > { %6358 = vst.msk [vmem:[%s16518_s28 + $0x38] sm:$0xff] %vm412_vm4, %v6326_v63  ;;  %6391 = vst.msk [vmem:[#allocation3 + $0x69] sm:$0xff] %vm412_vm4, %v6326_v63  ;;  %v6264_v30 = vadd.f32 %v12965_v17, %v16509_v27  ;;  %v6098_v50 = vpop.f32.mrb[41].mxu1  ;;  %v16565_v24 = vld [vmem:[#allocation3 + $0x31] sm:$0xff] }
 0x42f   : > { %6357 = vst.msk [vmem:[%s16518_s28 + $0x30] sm:$0xff] %vm412_vm4, %v6325_v11  ;;  %6390 = vst.msk [vmem:[#allocation3 + $0x61] sm:$0xff] %vm412_vm4, %v6325_v11  ;;  %v6263_v18 = vadd.f32 %v16509_v27, %v6098_v50  ;;  %13007 = vmatprep.mubr.msk.f32.mxu0 %vm412_vm4, %v16565_v24 }
 0x430   : > { %v6328_v20 = vadd.f32 %v6296_v39, %v6264_v30  ;;  %13008 = vmatmul.mubr.msk.f32.gmra.mrb[36].mxu0 %vm412_vm4, %v16573_v28  ;;  %v6308_v39 = vld [vmem:[%s16504_s23 + $0xa8] sm:$0xff] }
 0x431   : > { %v6327_v40 = vadd.f32 %v6295_v60, %v6263_v18  ;;  %v12968_v0 = vpop.f32.mrb[42].mxu1  ;;  %v16591_v21 = vld [vmem:[#allocation3 + $0x51] sm:$0xff] }
 0x432   : > { %6360 = vst.msk [vmem:[%s16518_s28 + $0x48] sm:$0xff] %vm412_vm4, %v6328_v20  ;;  %6393 = vst.msk [vmem:[#allocation3 + $0x81] sm:$0xff] %vm412_vm4, %v6328_v20  ;;  %v6266_v47 = vadd.f32 %v12968_v0, %v16509_v27  ;;  %v6108_v4 = vpop.f32.mrb[43].mxu1  ;;  %v16583_v46 = vld [vmem:[#allocation3 + $0x49] sm:$0xff] }
 0x433   : > { %6359 = vst.msk [vmem:[%s16518_s28 + $0x40] sm:$0xff] %vm412_vm4, %v6327_v40  ;;  %6392 = vst.msk [vmem:[#allocation3 + $0x79] sm:$0xff] %vm412_vm4, %v6327_v40  ;;  %v6265_v31 = vadd.f32 %v16509_v27, %v6108_v4  ;;  %13010 = vmatprep.mubr.msk.f32.mxu0 %vm412_vm4, %v16583_v46  ;;  %v6307_v60 = vld [vmem:[%s16504_s23 + $0xa0] sm:$0xff]  ;;  %v6310_v4 = vld [vmem:[%s16504_s23 + $0xb8] sm:$0xff] }
 0x434   : > { %v6330_v5 = vadd.f32 %v6298_v62, %v6266_v47  ;;  %13011 = vmatmul.mubr.msk.f32.gmra.mrb[38].mxu0 %vm412_vm4, %v16591_v21 }
 0x435   : > { %v6329_v45 = vadd.f32 %v6297_v57, %v6265_v31  ;;  %v12971_v13 = vpop.f32.mrb[44].mxu1  ;;  %v16609_v22 = vld [vmem:[#allocation3 + $0x69] sm:$0xff] }
 0x436   : > { %6362 = vst.msk [vmem:[%s16518_s28 + $0x58] sm:$0xff] %vm412_vm4, %v6330_v5  ;;  %6395 = vst.msk [vmem:[#allocation3 + $0x99] sm:$0xff] %vm412_vm4, %v6330_v5  ;;  %v6268_v16 = vadd.f32 %v12971_v13, %v16509_v27  ;;  %v6118_v61 = vpop.f32.mrb[45].mxu1  ;;  %v16601_v1 = vld [vmem:[#allocation3 + $0x61] sm:$0xff] }
 0x437   : > { %6361 = vst.msk [vmem:[%s16518_s28 + $0x50] sm:$0xff] %vm412_vm4, %v6329_v45  ;;  %6394 = vst.msk [vmem:[#allocation3 + $0x91] sm:$0xff] %vm412_vm4, %v6329_v45  ;;  %v6267_v38 = vadd.f32 %v16509_v27, %v6118_v61  ;;  %13013 = vmatprep.mubr.msk.f32.mxu0 %vm412_vm4, %v16601_v1  ;;  %v6309_v5 = vld [vmem:[%s16504_s23 + $0xb0] sm:$0xff] }
 0x438   : > { %v6332_v8 = vadd.f32 %v6300_v35, %v6268_v16  ;;  %13014 = vmatmul.mubr.msk.f32.gmra.mrb[40].mxu0 %vm412_vm4, %v16609_v22 }
 0x439   : > { %v6331_v6 = vadd.f32 %v6299_v9, %v6267_v38  ;;  %v12974_v58 = vpop.f32.mrb[46].mxu1  ;;  %v16627_v23 = vld [vmem:[#allocation3 + $0x81] sm:$0xff]  ;;  %v6312_v38 = vld [vmem:[%s16504_s23 + $0xc8] sm:$0xff] }
 0x43a   : > { %6364 = vst.msk [vmem:[%s16518_s28 + $0x68] sm:$0xff] %vm412_vm4, %v6332_v8  ;;  %6397 = vst.msk [vmem:[#allocation3 + $0xb1] sm:$0xff] %vm412_vm4, %v6332_v8  ;;  %v6270_v29 = vadd.f32 %v12974_v58, %v16509_v27  ;;  %v6128_v26 = vpop.f32.mrb[47].mxu1  ;;  %v16619_v2 = vld [vmem:[#allocation3 + $0x79] sm:$0xff]  ;;  %v6311_v58 = vld [vmem:[%s16504_s23 + $0xc0] sm:$0xff] }
 0x43b   : > { %6363 = vst.msk [vmem:[%s16518_s28 + $0x60] sm:$0xff] %vm412_vm4, %v6331_v6  ;;  %6396 = vst.msk [vmem:[#allocation3 + $0xa9] sm:$0xff] %vm412_vm4, %v6331_v6  ;;  %v6269_v10 = vadd.f32 %v16509_v27, %v6128_v26  ;;  %13016 = vmatprep.mubr.msk.f32.mxu0 %vm412_vm4, %v16619_v2 }
 0x43c   : > { %v6334_v32 = vadd.f32 %v6302_v44, %v6270_v29  ;;  %13017 = vmatmul.mubr.msk.f32.gmra.mrb[42].mxu0 %vm412_vm4, %v16627_v23 }
 0x43d   : > { %v6333_v3 = vadd.f32 %v6301_v34, %v6269_v10  ;;  %v12977_v37 = vpop.f32.mrb[48].mxu1  ;;  %v16645_v42 = vld [vmem:[#allocation3 + $0x99] sm:$0xff] }
 0x43e   : > { %6366 = vst.msk [vmem:[%s16518_s28 + $0x78] sm:$0xff] %vm412_vm4, %v6334_v32  ;;  %6399 = vst.msk [vmem:[#allocation3 + $0xc9] sm:$0xff] %vm412_vm4, %v6334_v32  ;;  %v6272_v41 = vadd.f32 %v12977_v37, %v16509_v27  ;;  %v6138_v33 = vpop.f32.mrb[49].mxu1  ;;  %v16637_v43 = vld [vmem:[#allocation3 + $0x91] sm:$0xff] }
 0x43f   : > { %6365 = vst.msk [vmem:[%s16518_s28 + $0x70] sm:$0xff] %vm412_vm4, %v6333_v3  ;;  %6398 = vst.msk [vmem:[#allocation3 + $0xc1] sm:$0xff] %vm412_vm4, %v6333_v3  ;;  %v6271_v48 = vadd.f32 %v16509_v27, %v6138_v33  ;;  %13019 = vmatprep.mubr.msk.f32.mxu0 %vm412_vm4, %v16637_v43  ;;  %v6314_v3 = vld [vmem:[%s16504_s23 + $0xd8] sm:$0xff] }
 0x440   : > { %v6336_v52 = vadd.f32 %v6304_v25, %v6272_v41  ;;  %13020 = vmatmul.mubr.msk.f32.gmra.mrb[44].mxu0 %vm412_vm4, %v16645_v42  ;;  %v6313_v41 = vld [vmem:[%s16504_s23 + $0xd0] sm:$0xff] }
 0x441   : > { %v6335_v49 = vadd.f32 %v6303_v36, %v6271_v48  ;;  %v12980_v51 = vpop.f32.mrb[50].mxu1  ;;  %v16663_v59 = vld [vmem:[#allocation3 + $0xb1] sm:$0xff] }
 0x442   : > { %6368 = vst.msk [vmem:[%s16518_s28 + $0x88] sm:$0xff] %vm412_vm4, %v6336_v52  ;;  %6401 = vst.msk [vmem:[#allocation3 + $0xe1] sm:$0xff] %vm412_vm4, %v6336_v52  ;;  %v6274_v53 = vadd.f32 %v12980_v51, %v16509_v27  ;;  %v6148_v55 = vpop.f32.mrb[51].mxu1  ;;  %v16655_v14 = vld [vmem:[#allocation3 + $0xa9] sm:$0xff] }
 0x443   : > { %6367 = vst.msk [vmem:[%s16518_s28 + $0x80] sm:$0xff] %vm412_vm4, %v6335_v49  ;;  %6400 = vst.msk [vmem:[#allocation3 + $0xd9] sm:$0xff] %vm412_vm4, %v6335_v49  ;;  %v6273_v19 = vadd.f32 %v16509_v27, %v6148_v55  ;;  %13022 = vmatprep.mubr.msk.f32.mxu0 %vm412_vm4, %v16655_v14 }
 0x444   : > { %v6338_v63 = vadd.f32 %v6306_v7, %v6274_v53  ;;  %13023 = vmatmul.mubr.msk.f32.gmra.mrb[46].mxu0 %vm412_vm4, %v16663_v59  ;;  %v6316_v7 = vld [vmem:[%s16504_s23 + $0xe8] sm:$0xff] }
 0x445   : > { %v6337_v11 = vadd.f32 %v6305_v56, %v6273_v19  ;;  %v12983_v17 = vpop.f32.mrb[52].mxu1  ;;  %v16681_v40 = vld [vmem:[#allocation3 + $0xc9] sm:$0xff] }
 0x446   : > { %6370 = vst.msk [vmem:[%s16518_s28 + $0x98] sm:$0xff] %vm412_vm4, %v6338_v63  ;;  %6403 = vst.msk [vmem:[#allocation3 + $0xf9] sm:$0xff] %vm412_vm4, %v6338_v63  ;;  %v6276_v30 = vadd.f32 %v12983_v17, %v16509_v27  ;;  %v6158_v50 = vpop.f32.mrb[53].mxu1  ;;  %v16673_v18 = vld [vmem:[#allocation3 + $0xc1] sm:$0xff]  ;;  %v6315_v56 = vld [vmem:[%s16504_s23 + $0xe0] sm:$0xff] }
 0x447   : > { %6369 = vst.msk [vmem:[%s16518_s28 + $0x90] sm:$0xff] %vm412_vm4, %v6337_v11  ;;  %6402 = vst.msk [vmem:[#allocation3 + $0xf1] sm:$0xff] %vm412_vm4, %v6337_v11  ;;  %v6275_v20 = vadd.f32 %v16509_v27, %v6158_v50  ;;  %13025 = vmatprep.mubr.msk.f32.mxu0 %vm412_vm4, %v16673_v18  ;;  %v6318_v50 = vld [vmem:[%s16504_s23 + $0xf8] sm:$0xff] }
 0x448   : > { %v6340_v0 = vadd.f32 %v6308_v39, %v6276_v30  ;;  %13026 = vmatmul.mubr.msk.f32.gmra.mrb[48].mxu0 %vm412_vm4, %v16681_v40 }
 0x449   : > { %v6339_v62 = vadd.f32 %v6307_v60, %v6275_v20  ;;  %v12986_v47 = vpop.f32.mrb[54].mxu1  ;;  %v16699_v35 = vld [vmem:[#allocation3 + $0xe1] sm:$0xff] }
 0x44a   : > { %6372 = vst.msk [vmem:[%s16518_s28 + $0xa8] sm:$0xff] %vm412_vm4, %v6340_v0  ;;  %6405 = vst.msk [vmem:[#allocation3 + $0x111] sm:$0xff] %vm412_vm4, %v6340_v0  ;;  %v6278_v57 = vadd.f32 %v12986_v47, %v16509_v27  ;;  %v6168_v31 = vpop.f32.mrb[55].mxu1  ;;  %v16691_v45 = vld [vmem:[#allocation3 + $0xd9] sm:$0xff] }
 0x44b   : > { %6371 = vst.msk [vmem:[%s16518_s28 + $0xa0] sm:$0xff] %vm412_vm4, %v6339_v62  ;;  %6404 = vst.msk [vmem:[#allocation3 + $0x109] sm:$0xff] %vm412_vm4, %v6339_v62  ;;  %v6277_v13 = vadd.f32 %v16509_v27, %v6168_v31  ;;  %13028 = vmatprep.mubr.msk.f32.mxu0 %vm412_vm4, %v16691_v45  ;;  %v6317_v0 = vld [vmem:[%s16504_s23 + $0xf0] sm:$0xff] }
 0x44c   : > { %v6342_v16 = vadd.f32 %v6310_v4, %v6278_v57  ;;  %13029 = vmatmul.mubr.msk.f32.gmra.mrb[50].mxu0 %vm412_vm4, %v16699_v35 }
 0x44d   : > { %v6341_v61 = vadd.f32 %v6309_v5, %v6277_v13  ;;  %v12989_v9 = vpop.f32.mrb[56].mxu1  ;;  %v16717_v26 = vld [vmem:[#allocation3 + $0xf9] sm:$0xff] }
 0x44e   : > { %6374 = vst.msk [vmem:[%s16518_s28 + $0xb8] sm:$0xff] %vm412_vm4, %v6342_v16  ;;  %6407 = vst.msk [vmem:[#allocation3 + $0x129] sm:$0xff] %vm412_vm4, %v6342_v16  ;;  %v6280_v8 = vadd.f32 %v12989_v9, %v16509_v27  ;;  %v6178_v6 = vpop.f32.mrb[57].mxu1  ;;  %v16709_v44 = vld [vmem:[#allocation3 + $0xf1] sm:$0xff]  ;;  %v6416_v16 = vld [vmem:[#allocation3] sm:$0xff] }
 0x44f   : > { %6373 = vst.msk [vmem:[%s16518_s28 + $0xb0] sm:$0xff] %vm412_vm4, %v6341_v61  ;;  %6406 = vst.msk [vmem:[#allocation3 + $0x121] sm:$0xff] %vm412_vm4, %v6341_v61  ;;  %v6279_v29 = vadd.f32 %v16509_v27, %v6178_v6  ;;  %13031 = vmatprep.mubr.msk.f32.mxu0 %vm412_vm4, %v16709_v44  ;;  %v6417_v9 = vld [vmem:[#allocation3 + $0x8] sm:$0xff]  ;;  %v16812_v6 = vld [vmem:[#allocation3 + $0x20] sm:$0xff] }
 0x450   : > { %v6344_v34 = vadd.f32 %v6312_v38, %v6280_v8  ;;  %13032 = vmatmul.mubr.msk.f32.gmra.mrb[52].mxu0 %vm412_vm4, %v16717_v26  ;;  %v16801_v38 = vld [vmem:[%s17715_s6 + $0xc] sm:$0x7] }
 0x451   : > { %v6343_v10 = vadd.f32 %v6311_v58, %v6279_v29  ;;  %v12992_v32 = vpop.f32.mrb[58].mxu1  ;;  %v16735_v48 = vld [vmem:[#allocation3 + $0x111] sm:$0xff] }
 0x452   : > { %6376 = vst.msk [vmem:[%s16518_s28 + $0xc8] sm:$0xff] %vm412_vm4, %v6344_v34  ;;  %6409 = vst.msk [vmem:[#allocation3 + $0x141] sm:$0xff] %vm412_vm4, %v6344_v34  ;;  %v6282_v37 = vadd.f32 %v12992_v32, %v16509_v27  ;;  %v6188_v25 = vpop.f32.mrb[59].mxu1  ;;  %v16727_v33 = vld [vmem:[#allocation3 + $0x109] sm:$0xff]  ;;  %v16804_v8 = vld [vmem:[#allocation3 + $0x18] sm:$0xff] }
 0x453   : > { %6375 = vst.msk [vmem:[%s16518_s28 + $0xc0] sm:$0xff] %vm412_vm4, %v6343_v10  ;;  %6408 = vst.msk [vmem:[#allocation3 + $0x139] sm:$0xff] %vm412_vm4, %v6343_v10  ;;  %v6281_v36 = vadd.f32 %v16509_v27, %v6188_v25  ;;  %13034 = vmatprep.mubr.msk.f32.mxu0 %vm412_vm4, %v16727_v33  ;;  %v16816_v58 = vld [vmem:[#allocation3 + $0x30] sm:$0xff]  ;;  %v16820_v29 = vld [vmem:[#allocation3 + $0x38] sm:$0xff] }
 0x454   : > { %v6346_v52 = vadd.f32 %v6314_v3, %v6282_v37  ;;  %13035 = vmatmul.mubr.msk.f32.gmra.mrb[54].mxu0 %vm412_vm4, %v16735_v48  ;;  %v16828_v34 = vld [vmem:[#allocation3 + $0x50] sm:$0xff]  ;;  %v16832_v10 = vld [vmem:[#allocation3 + $0x60] sm:$0xff]  ;;  %v16836_v32 = vld [vmem:[#allocation3 + $0x68] sm:$0xff] }
 0x455   : > { %v6345_v49 = vadd.f32 %v6313_v41, %v6281_v36  ;;  %v12995_v51 = vpop.f32.mrb[60].mxu1  ;;  %v16753_v11 = vld [vmem:[#allocation3 + $0x129] sm:$0xff]  ;;  %v16840_v3 = vld [vmem:[#allocation3 + $0x78] sm:$0xff]  ;;  %v16844_v37 = vld [vmem:[#allocation3 + $0x80] sm:$0xff] }
 0x456   : > { %6378 = vst.msk [vmem:[%s16518_s28 + $0xd8] sm:$0xff] %vm412_vm4, %v6346_v52  ;;  %6411 = vst.msk [vmem:[#allocation3 + $0x159] sm:$0xff] %vm412_vm4, %v6346_v52  ;;  %v6284_v53 = vadd.f32 %v12995_v51, %v16509_v27  ;;  %v6198_v55 = vpop.f32.mrb[61].mxu1  ;;  %v16745_v19 = vld [vmem:[#allocation3 + $0x121] sm:$0xff]  ;;  %v16848_v25 = vld [vmem:[#allocation3 + $0x90] sm:$0xff] }
 0x457   : > { %6377 = vst.msk [vmem:[%s16518_s28 + $0xd0] sm:$0xff] %vm412_vm4, %v6345_v49  ;;  %6410 = vst.msk [vmem:[#allocation3 + $0x151] sm:$0xff] %vm412_vm4, %v6345_v49  ;;  %v6283_v63 = vadd.f32 %v16509_v27, %v6198_v55  ;;  %13037 = vmatprep.mubr.msk.f32.mxu0 %vm412_vm4, %v16745_v19  ;;  %v16852_v41 = vld [vmem:[#allocation3 + $0x98] sm:$0xff]  ;;  %v16856_v36 = vld [vmem:[#allocation3 + $0xa8] sm:$0xff] }
 0x458   : > { %v6348_v17 = vadd.f32 %v6316_v7, %v6284_v53  ;;  %13038 = vmatmul.mubr.msk.f32.gmra.mrb[56].mxu0 %vm412_vm4, %v16753_v11  ;;  %v16860_v52 = vld [vmem:[#allocation3 + $0xb0] sm:$0xff]  ;;  %v16864_v49 = vld [vmem:[#allocation3 + $0xc0] sm:$0xff]  ;;  %v16868_v51 = vld [vmem:[#allocation3 + $0xc8] sm:$0xff] }
 0x459   : > { %v6347_v39 = vadd.f32 %v6315_v56, %v6283_v63  ;;  %v12998_v30 = vpop.f32.mrb[62].mxu1  ;;  %v16771_v4 = vld [vmem:[#allocation3 + $0x141] sm:$0xff]  ;;  %v16872_v7 = vld [vmem:[#allocation3 + $0xd8] sm:$0xff]  ;;  %v16880_v55 = vld [vmem:[#allocation3 + $0xf0] sm:$0xff] }
 0x45a   : > { %6380 = vst.msk [vmem:[%s16518_s28 + $0xe8] sm:$0xff] %vm412_vm4, %v6348_v17  ;;  %6413 = vst.msk [vmem:[#allocation3 + $0x171] sm:$0xff] %vm412_vm4, %v6348_v17  ;;  %v6286_v60 = vadd.f32 %v12998_v30, %v16509_v27  ;;  %v6208_v20 = vpop.f32.mrb[63].mxu1  ;;  %v16763_v62 = vld [vmem:[#allocation3 + $0x139] sm:$0xff]  ;;  %v16888_v63 = vld [vmem:[#allocation3 + $0x108] sm:$0xff] }
 0x45b   : > { %6379 = vst.msk [vmem:[%s16518_s28 + $0xe0] sm:$0xff] %vm412_vm4, %v6347_v39  ;;  %6412 = vst.msk [vmem:[#allocation3 + $0x169] sm:$0xff] %vm412_vm4, %v6347_v39  ;;  %v6285_v47 = vadd.f32 %v16509_v27, %v6208_v20  ;;  %13040 = vmatprep.mubr.msk.f32.mxu0 %vm412_vm4, %v16763_v62  ;;  %v16876_v53 = vld [vmem:[#allocation3 + $0xe0] sm:$0xff]  ;;  %v16884_v56 = vld [vmem:[#allocation3 + $0xf8] sm:$0xff] }
 0x45c   : > { %v6350_v57 = vadd.f32 %v6318_v50, %v6286_v60  ;;  %13041 = vmatmul.mubr.msk.f32.gmra.mrb[58].mxu0 %vm412_vm4, %v16771_v4  ;;  %v16892_v17 = vld [vmem:[#allocation3 + $0x110] sm:$0xff]  ;;  %v16896_v39 = vld [vmem:[#allocation3 + $0x120] sm:$0xff]  ;;  %v16900_v30 = vld [vmem:[#allocation3 + $0x128] sm:$0xff] }
 0x45d   : > { %v6349_v31 = vadd.f32 %v6317_v0, %v6285_v47  ;;  %v16785_v27 = vld [vmem:[#allocation3 + $0x159] sm:$0xff] }
 0x45e   : > { %6382 = vst.msk [vmem:[%s16518_s28 + $0xf8] sm:$0xff] %vm412_vm4, %v6350_v57  ;;  %6415 = vst.msk [vmem:[#allocation3 + $0x189] sm:$0xff] %vm412_vm4, %v6350_v57  ;;  %v16778_v5 = vld [vmem:[#allocation3 + $0x151] sm:$0xff]  ;;  %v16908_v60 = vld [vmem:[#allocation3 + $0x140] sm:$0xff] }
 0x45f   : > { %6381 = vst.msk [vmem:[%s16518_s28 + $0xf0] sm:$0xff] %vm412_vm4, %v6349_v31  ;;  %6414 = vst.msk [vmem:[#allocation3 + $0x181] sm:$0xff] %vm412_vm4, %v6349_v31  ;;  %13043 = vmatprep.mubr.msk.f32.mxu0 %vm412_vm4, %v16778_v5  ;;  %v16904_v50 = vld [vmem:[#allocation3 + $0x138] sm:$0xff]  ;;  %v16912_v20 = vld [vmem:[#allocation3 + $0x150] sm:$0xff]  ;;  %s17531_s28 = scalar_lea.vmem %s17717_s8, %s14622_s19 }
 0x460   : > { %13044 = vmatmul.mubr.msk.f32.gmra.mrb[60].mxu0 %vm412_vm4, %v16785_v27  ;;  %v16916_v0 = vld [vmem:[#allocation3 + $0x158] sm:$0xff]  ;;  %v7132_v57 = vld [vmem:[#allocation3 + $0x2] sm:$0xff] }
 0x461   : > { %v16793_v61 = vld [vmem:[#allocation3 + $0x171] sm:$0xff] }
 0x462   : > { %v16789_v13 = vld [vmem:[#allocation3 + $0x169] sm:$0xff]  ;;  %18173 = vst [vmem:[#allocation81_spill] sm:$0xff] %v16793_v61 }
 0x463   : > { %18172 = vst [vmem:[#allocation80_spill] sm:$0xff] %v16789_v13  ;;  %13046 = vmatprep.mubr.msk.f32.mxu0 %vm412_vm4, %v16789_v13  ;;  %v16920_v47 = vld [vmem:[#allocation3 + $0x168] sm:$0xff]  ;;  %v16924_v31 = vld [vmem:[#allocation3 + $0x170] sm:$0xff] }
 0x464   : > { %13047 = vmatmul.mubr.msk.f32.gmra.mrb[62].mxu0 %vm412_vm4, %v16793_v61  ;;  %v16935_v61 = vld [vmem:[#allocation3 + $0x1a] sm:$0xff]  ;;  %v16947_v13 = vld [vmem:[#allocation3 + $0x32] sm:$0xff] }
 0x465   : > { %13051 = vmatprep.mubr.msk.f32.mxu0 %vm412_vm4, %v6416_v16  ;;  %v7133_v16 = vld [vmem:[#allocation3 + $0xa] sm:$0xff]  ;;  %18174 = vst [vmem:[#allocation82_spill] sm:$0xff] %v16935_v61  ;;  %18176 = vst [vmem:[#allocation85_spill] sm:$0xff] %v16947_v13 }
 0x468   : > { %13052 = vmatmul.mubr.msk.f32.vlgmr.msra.gmra.mrb[32].mxu0 %vm412_vm4, %v6417_v9  ;;  %v16932_v9 = vld [vmem:[%s17715_s6 + $0x10] sm:$0x7] }
 0x469   : > { %13100 = vmatpush3.msk.msra.mxu0 %vm6579_vm3, %v16496_v15  ;;  %13054 = vmatprep.mubr.msk.f32.mxu0 %vm412_vm4, %v16804_v8  ;;  %v16824_v15 = vld [vmem:[#allocation3 + $0x48] sm:$0xff] }
 0x46a   : > { %13149 = vmatprep.subr.msk.mxu0 %vm6579_vm3, %v16801_v38 }
 0x46c   : > { %13055 = vmatmul.mubr.msk.f32.gmra.mrb[34].mxu0 %vm412_vm4, %v16812_v6 }
 0x46d   : > { %13057 = vmatprep.mubr.msk.f32.mxu0 %vm412_vm4, %v16816_v58 }
 0x470   : > { %13058 = vmatmul.mubr.msk.f32.gmra.mrb[36].mxu0 %vm412_vm4, %v16820_v29 }
 0x471   : > { %13060 = vmatprep.mubr.msk.f32.mxu0 %vm412_vm4, %v16824_v15 }
 0x474   : > { %13061 = vmatmul.mubr.msk.f32.gmra.mrb[38].mxu0 %vm412_vm4, %v16828_v34 }
 0x475   : > { %13063 = vmatprep.mubr.msk.f32.mxu0 %vm412_vm4, %v16832_v10 }
 0x478   : > { %13064 = vmatmul.mubr.msk.f32.gmra.mrb[40].mxu0 %vm412_vm4, %v16836_v32 }
 0x479   : > { %13066 = vmatprep.mubr.msk.f32.mxu0 %vm412_vm4, %v16840_v3 }
 0x47c   : > { %13067 = vmatmul.mubr.msk.f32.gmra.mrb[42].mxu0 %vm412_vm4, %v16844_v37 }
 0x47d   : > { %13069 = vmatprep.mubr.msk.f32.mxu0 %vm412_vm4, %v16848_v25 }
 0x480   : > { %13070 = vmatmul.mubr.msk.f32.gmra.mrb[44].mxu0 %vm412_vm4, %v16852_v41 }
 0x481   : > { %13072 = vmatprep.mubr.msk.f32.mxu0 %vm412_vm4, %v16856_v36 }
 0x484   : > { %13073 = vmatmul.mubr.msk.f32.gmra.mrb[46].mxu0 %vm412_vm4, %v16860_v52 }
 0x485   : > { %13075 = vmatprep.mubr.msk.f32.mxu0 %vm412_vm4, %v16864_v49 }
 0x488   : > { %13076 = vmatmul.mubr.msk.f32.gmra.mrb[48].mxu0 %vm412_vm4, %v16868_v51 }
 0x489   : > { %13078 = vmatprep.mubr.msk.f32.mxu0 %vm412_vm4, %v16872_v7 }
 0x48c   : > { %13079 = vmatmul.mubr.msk.f32.gmra.mrb[50].mxu0 %vm412_vm4, %v16876_v53 }
 0x48d   : > { %13081 = vmatprep.mubr.msk.f32.mxu0 %vm412_vm4, %v16880_v55 }
 0x490   : > { %13082 = vmatmul.mubr.msk.f32.gmra.mrb[52].mxu0 %vm412_vm4, %v16884_v56 }
 0x491   : > { %13084 = vmatprep.mubr.msk.f32.mxu0 %vm412_vm4, %v16888_v63 }
 0x494   : > { %13085 = vmatmul.mubr.msk.f32.gmra.mrb[54].mxu0 %vm412_vm4, %v16892_v17 }
 0x495   : > { %13087 = vmatprep.mubr.msk.f32.mxu0 %vm412_vm4, %v16896_v39 }
 0x498   : > { %13088 = vmatmul.mubr.msk.f32.gmra.mrb[56].mxu0 %vm412_vm4, %v16900_v30 }
 0x499   : > { %13090 = vmatprep.mubr.msk.f32.mxu0 %vm412_vm4, %v16904_v50 }
 0x49c   : > { %13091 = vmatmul.mubr.msk.f32.gmra.mrb[58].mxu0 %vm412_vm4, %v16908_v60 }
 0x49d   : > { %13093 = vmatprep.mubr.msk.f32.mxu0 %vm412_vm4, %v16912_v20 }
 0x4a0   : > { %13094 = vmatmul.mubr.msk.f32.gmra.mrb[60].mxu0 %vm412_vm4, %v16916_v0 }
 0x4a1   : > { %13096 = vmatprep.mubr.msk.f32.mxu0 %vm412_vm4, %v16920_v47 }
 0x4a4   : > { %13097 = vmatmul.mubr.msk.f32.gmra.mrb[62].mxu0 %vm412_vm4, %v16924_v31 }
 0x4a5   : > { %13101 = vmatprep.mubr.msk.f32.mxu0 %vm412_vm4, %v7132_v57  ;;  %v16943_v57 = vld [vmem:[#allocation3 + $0x22] sm:$0xff] }
 0x4a6   : > { %18175 = vst [vmem:[#allocation83_spill] sm:$0xff] %v16943_v57 }
 0x4a8   : > { %13102 = vmatmul.mubr.msk.f32.vlgmr.msra.gmra.mrb[32].mxu0 %vm412_vm4, %v7133_v16  ;;  %v16951_v16 = vld [vmem:[#allocation3 + $0x3a] sm:$0xff] }
 0x4a9   : > { %13150 = vmatpush3.msk.msra.mxu0 %vm6579_vm3, %v16801_v38  ;;  %13104 = vmatprep.mubr.msk.f32.mxu0 %vm412_vm4, %v16935_v61  ;;  %18177 = vst [vmem:[#allocation89_spill] sm:$0xff] %v16951_v16  ;;  %v16955_v38 = vld [vmem:[#allocation3 + $0x4a] sm:$0xff]  ;;  %v16959_v61 = vld [vmem:[#allocation3 + $0x52] sm:$0xff] }
 0x4aa   : > { %13199 = vmatprep.subr.msk.mxu0 %vm6579_vm3, %v16932_v9  ;;  %18178 = vst [vmem:[#allocation100_spill] sm:$0xff] %v16955_v38  ;;  %18179 = vst [vmem:[#allocation101_spill] sm:$0xff] %v16959_v61 }
 0x4ac   : > { %13105 = vmatmul.mubr.msk.f32.gmra.mrb[34].mxu0 %vm412_vm4, %v16943_v57  ;;  %v16963_v57 = vld [vmem:[#allocation3 + $0x62] sm:$0xff] }
 0x4ad   : > { %13107 = vmatprep.mubr.msk.f32.mxu0 %vm412_vm4, %v16947_v13  ;;  %18180 = vst [vmem:[#allocation52_spill] sm:$0xff] %v16963_v57  ;;  %v16967_v13 = vld [vmem:[#allocation3 + $0x6a] sm:$0xff] }
 0x4ae   : > { %18181 = vst [vmem:[#allocation57_spill] sm:$0xff] %v16967_v13 }
 0x4b0   : > { %13108 = vmatmul.mubr.msk.f32.gmra.mrb[36].mxu0 %vm412_vm4, %v16951_v16  ;;  %v16971_v16 = vld [vmem:[#allocation3 + $0x7a] sm:$0xff] }
 0x4b1   : > { %13110 = vmatprep.mubr.msk.f32.mxu0 %vm412_vm4, %v16955_v38  ;;  %18182 = vst [vmem:[#allocation84_spill] sm:$0xff] %v16971_v16  ;;  %v16975_v38 = vld [vmem:[#allocation3 + $0x82] sm:$0xff] }
 0x4b2   : > { %18183 = vst [vmem:[#allocation86_spill] sm:$0xff] %v16975_v38 }
 0x4b4   : > { %13111 = vmatmul.mubr.msk.f32.gmra.mrb[38].mxu0 %vm412_vm4, %v16959_v61  ;;  %v16979_v61 = vld [vmem:[#allocation3 + $0x92] sm:$0xff] }
 0x4b5   : > { %13113 = vmatprep.mubr.msk.f32.mxu0 %vm412_vm4, %v16963_v57  ;;  %18184 = vst [vmem:[#allocation88_spill] sm:$0xff] %v16979_v61  ;;  %v16983_v57 = vld [vmem:[#allocation3 + $0x9a] sm:$0xff] }
 0x4b6   : > { %18185 = vst [vmem:[#allocation92_spill] sm:$0xff] %v16983_v57 }
 0x4b8   : > { %13114 = vmatmul.mubr.msk.f32.gmra.mrb[40].mxu0 %vm412_vm4, %v16967_v13  ;;  %v16987_v13 = vld [vmem:[#allocation3 + $0xaa] sm:$0xff] }
 0x4b9   : > { %13116 = vmatprep.mubr.msk.f32.mxu0 %vm412_vm4, %v16971_v16  ;;  %18186 = vst [vmem:[#allocation93_spill] sm:$0xff] %v16987_v13  ;;  %v16991_v16 = vld [vmem:[#allocation3 + $0xb2] sm:$0xff] }
 0x4ba   : > { %18187 = vst [vmem:[#allocation94_spill] sm:$0xff] %v16991_v16 }
 0x4bc   : > { %13117 = vmatmul.mubr.msk.f32.gmra.mrb[42].mxu0 %vm412_vm4, %v16975_v38  ;;  %v16995_v38 = vld [vmem:[#allocation3 + $0xc2] sm:$0xff] }
 0x4bd   : > { %13119 = vmatprep.mubr.msk.f32.mxu0 %vm412_vm4, %v16979_v61  ;;  %18188 = vst [vmem:[#allocation95_spill] sm:$0xff] %v16995_v38  ;;  %v16999_v61 = vld [vmem:[#allocation3 + $0xca] sm:$0xff] }
 0x4be   : > { %18189 = vst [vmem:[#allocation96_spill] sm:$0xff] %v16999_v61 }
 0x4c0   : > { %13120 = vmatmul.mubr.msk.f32.gmra.mrb[44].mxu0 %vm412_vm4, %v16983_v57  ;;  %v17003_v57 = vld [vmem:[#allocation3 + $0xda] sm:$0xff] }
 0x4c1   : > { %13122 = vmatprep.mubr.msk.f32.mxu0 %vm412_vm4, %v16987_v13  ;;  %18190 = vst [vmem:[#allocation97_spill] sm:$0xff] %v17003_v57  ;;  %v17007_v13 = vld [vmem:[#allocation3 + $0xe2] sm:$0xff] }
 0x4c2   : > { %18191 = vst [vmem:[#allocation98_spill] sm:$0xff] %v17007_v13 }
 0x4c4   : > { %13123 = vmatmul.mubr.msk.f32.gmra.mrb[46].mxu0 %vm412_vm4, %v16991_v16  ;;  %v17011_v16 = vld [vmem:[#allocation3 + $0xf2] sm:$0xff] }
 0x4c5   : > { %13125 = vmatprep.mubr.msk.f32.mxu0 %vm412_vm4, %v16995_v38  ;;  %18192 = vst [vmem:[#allocation99_spill] sm:$0xff] %v17011_v16  ;;  %v17015_v38 = vld [vmem:[#allocation3 + $0xfa] sm:$0xff] }
 0x4c6   : > { %18193 = vst [vmem:[#allocation102_spill] sm:$0xff] %v17015_v38 }
 0x4c8   : > { %13126 = vmatmul.mubr.msk.f32.gmra.mrb[48].mxu0 %vm412_vm4, %v16999_v61  ;;  %v17019_v61 = vld [vmem:[#allocation3 + $0x10a] sm:$0xff] }
 0x4c9   : > { %13128 = vmatprep.mubr.msk.f32.mxu0 %vm412_vm4, %v17003_v57  ;;  %18194 = vst [vmem:[#allocation103_spill] sm:$0xff] %v17019_v61  ;;  %v17023_v57 = vld [vmem:[#allocation3 + $0x112] sm:$0xff] }
 0x4ca   : > { %18195 = vst [vmem:[#allocation53_spill] sm:$0xff] %v17023_v57 }
 0x4cc   : > { %13129 = vmatmul.mubr.msk.f32.gmra.mrb[50].mxu0 %vm412_vm4, %v17007_v13  ;;  %v17027_v13 = vld [vmem:[#allocation3 + $0x122] sm:$0xff] }
 0x4cd   : > { %13131 = vmatprep.mubr.msk.f32.mxu0 %vm412_vm4, %v17011_v16  ;;  %18196 = vst [vmem:[#allocation56_spill] sm:$0xff] %v17027_v13  ;;  %v17031_v16 = vld [vmem:[#allocation3 + $0x12a] sm:$0xff] }
 0x4ce   : > { %18197 = vst [vmem:[#allocation104_spill] sm:$0xff] %v17031_v16 }
 0x4d0   : > { %13132 = vmatmul.mubr.msk.f32.gmra.mrb[52].mxu0 %vm412_vm4, %v17015_v38  ;;  %v17035_v38 = vld [vmem:[#allocation3 + $0x13a] sm:$0xff] }
 0x4d1   : > { %13134 = vmatprep.mubr.msk.f32.mxu0 %vm412_vm4, %v17019_v61  ;;  %18198 = vst [vmem:[#allocation105_spill] sm:$0xff] %v17035_v38  ;;  %v17039_v61 = vld [vmem:[#allocation3 + $0x142] sm:$0xff] }
 0x4d4   : > { %13135 = vmatmul.mubr.msk.f32.gmra.mrb[54].mxu0 %vm412_vm4, %v17023_v57  ;;  %v17043_v57 = vld [vmem:[#allocation3 + $0x152] sm:$0xff] }
 0x4d5   : > { %13137 = vmatprep.mubr.msk.f32.mxu0 %vm412_vm4, %v17027_v13  ;;  %18199 = vst [vmem:[#allocation58_spill] sm:$0xff] %v17043_v57  ;;  %v17047_v13 = vld [vmem:[#allocation3 + $0x15a] sm:$0xff] }
 0x4d8   : > { %13138 = vmatmul.mubr.msk.f32.gmra.mrb[56].mxu0 %vm412_vm4, %v17031_v16  ;;  %v17051_v16 = vld [vmem:[#allocation3 + $0x16a] sm:$0xff] }
 0x4d9   : > { %13140 = vmatprep.mubr.msk.f32.mxu0 %vm412_vm4, %v17035_v38  ;;  %18200 = vst [vmem:[#allocation59_spill] sm:$0xff] %v17051_v16  ;;  %v17055_v38 = vld [vmem:[#allocation3 + $0x172] sm:$0xff] }
 0x4dc   : > { %13141 = vmatmul.mubr.msk.f32.gmra.mrb[58].mxu0 %vm412_vm4, %v17039_v61 }
 0x4dd   : > { %13143 = vmatprep.mubr.msk.f32.mxu0 %vm412_vm4, %v17043_v57  ;;  %v11065_v57 = vld [vmem:[%s17715_s6 + $0x14] sm:$0x7] }
 0x4e0   : > { %13144 = vmatmul.mubr.msk.f32.gmra.mrb[60].mxu0 %vm412_vm4, %v17047_v13 }
 0x4e1   : > { %13146 = vmatprep.mubr.msk.f32.mxu0 %vm412_vm4, %v17051_v16 }
 0x4e4   : > { %13147 = vmatmul.mubr.msk.f32.gmra.mrb[62].mxu0 %vm412_vm4, %v17055_v38 }
 0x4e5   : > { %13151 = vmatprep.mubr.msk.f32.mxu0 %vm412_vm4, %v16804_v8  ;;  %v17125_v8 = vld [vmem:[#allocation3 + $0x180] sm:$0xff] }
 0x4e8   : > { %13152 = vmatmul.mubr.msk.f32.vlgmr.msra.gmra.mrb[32].mxu0 %vm412_vm4, %v16812_v6  ;;  %v17129_v6 = vld [vmem:[#allocation3 + $0x188] sm:$0xff] }
 0x4e9   : > { %13200 = vmatpush3.msk.msra.mxu0 %vm6579_vm3, %v16932_v9  ;;  %13154 = vmatprep.mubr.msk.f32.mxu0 %vm412_vm4, %v16816_v58  ;;  %v11099_v9 = vld [vmem:[%s17715_s6 + $0x18] sm:$0x7] }
 0x4ea   : > { %13249 = vmatprep.subr.msk.mxu0 %vm6579_vm3, %v11065_v57 }
 0x4ec   : > { %13155 = vmatmul.mubr.msk.f32.gmra.mrb[34].mxu0 %vm412_vm4, %v16820_v29 }
 0x4ed   : > { %13157 = vmatprep.mubr.msk.f32.mxu0 %vm412_vm4, %v16824_v15 }
 0x4f0   : > { %13158 = vmatmul.mubr.msk.f32.gmra.mrb[36].mxu0 %vm412_vm4, %v16828_v34 }
 0x4f1   : > { %13160 = vmatprep.mubr.msk.f32.mxu0 %vm412_vm4, %v16832_v10 }
 0x4f4   : > { %13161 = vmatmul.mubr.msk.f32.gmra.mrb[38].mxu0 %vm412_vm4, %v16836_v32 }
 0x4f5   : > { %13163 = vmatprep.mubr.msk.f32.mxu0 %vm412_vm4, %v16840_v3 }
 0x4f8   : > { %13164 = vmatmul.mubr.msk.f32.gmra.mrb[40].mxu0 %vm412_vm4, %v16844_v37 }
 0x4f9   : > { %13166 = vmatprep.mubr.msk.f32.mxu0 %vm412_vm4, %v16848_v25 }
 0x4fc   : > { %13167 = vmatmul.mubr.msk.f32.gmra.mrb[42].mxu0 %vm412_vm4, %v16852_v41 }
 0x4fd   : > { %13169 = vmatprep.mubr.msk.f32.mxu0 %vm412_vm4, %v16856_v36 }
 0x500   : > { %13170 = vmatmul.mubr.msk.f32.gmra.mrb[44].mxu0 %vm412_vm4, %v16860_v52 }
 0x501   : > { %13172 = vmatprep.mubr.msk.f32.mxu0 %vm412_vm4, %v16864_v49 }
 0x504   : > { %13173 = vmatmul.mubr.msk.f32.gmra.mrb[46].mxu0 %vm412_vm4, %v16868_v51 }
 0x505   : > { %13175 = vmatprep.mubr.msk.f32.mxu0 %vm412_vm4, %v16872_v7 }
 0x508   : > { %13176 = vmatmul.mubr.msk.f32.gmra.mrb[48].mxu0 %vm412_vm4, %v16876_v53 }
 0x509   : > { %13178 = vmatprep.mubr.msk.f32.mxu0 %vm412_vm4, %v16880_v55 }
 0x50c   : > { %13179 = vmatmul.mubr.msk.f32.gmra.mrb[50].mxu0 %vm412_vm4, %v16884_v56 }
 0x50d   : > { %13181 = vmatprep.mubr.msk.f32.mxu0 %vm412_vm4, %v16888_v63 }
 0x510   : > { %13182 = vmatmul.mubr.msk.f32.gmra.mrb[52].mxu0 %vm412_vm4, %v16892_v17 }
 0x511   : > { %13184 = vmatprep.mubr.msk.f32.mxu0 %vm412_vm4, %v16896_v39 }
 0x514   : > { %13185 = vmatmul.mubr.msk.f32.gmra.mrb[54].mxu0 %vm412_vm4, %v16900_v30 }
 0x515   : > { %13187 = vmatprep.mubr.msk.f32.mxu0 %vm412_vm4, %v16904_v50 }
 0x518   : > { %13188 = vmatmul.mubr.msk.f32.gmra.mrb[56].mxu0 %vm412_vm4, %v16908_v60 }
 0x519   : > { %13190 = vmatprep.mubr.msk.f32.mxu0 %vm412_vm4, %v16912_v20 }
 0x51c   : > { %13191 = vmatmul.mubr.msk.f32.gmra.mrb[58].mxu0 %vm412_vm4, %v16916_v0 }
 0x51d   : > { %13193 = vmatprep.mubr.msk.f32.mxu0 %vm412_vm4, %v16920_v47 }
 0x520   : > { %13194 = vmatmul.mubr.msk.f32.gmra.mrb[60].mxu0 %vm412_vm4, %v16924_v31 }
 0x521   : > { %13196 = vmatprep.mubr.msk.f32.mxu0 %vm412_vm4, %v17125_v8 }
 0x524   : > { %13197 = vmatmul.mubr.msk.f32.gmra.mrb[62].mxu0 %vm412_vm4, %v17129_v6 }
 0x525   : > { %13201 = vmatprep.mubr.msk.f32.mxu0 %vm412_vm4, %v16547_v54  ;;  %v18201_v54 = vld [vmem:[#allocation80_spill] sm:$0xff] }
 0x528   : > { %13202 = vmatmul.mubr.msk.f32.vlgmr.msra.gmra.mrb[32].mxu0 %vm412_vm4, %v16555_v12  ;;  %v18202_v12 = vld [vmem:[#allocation81_spill] sm:$0xff] }
 0x529   : > { %13250 = vmatpush3.msk.msra.mxu0 %vm6579_vm3, %v11065_v57  ;;  %13204 = vmatprep.mubr.msk.f32.mxu0 %vm412_vm4, %v16565_v24  ;;  %v17198_v24 = vld [vmem:[#allocation3 + $0x181] sm:$0xff] }
 0x52a   : > { %13299 = vmatprep.subr.msk.mxu0 %vm6579_vm3, %v11099_v9  ;;  %v18220_v57 = vld [vmem:[#allocation98_spill] sm:$0xff] }
 0x52c   : > { %13205 = vmatmul.mubr.msk.f32.gmra.mrb[34].mxu0 %vm412_vm4, %v16573_v28  ;;  %v17202_v28 = vld [vmem:[#allocation3 + $0x189] sm:$0xff] }
 0x52d   : > { %13207 = vmatprep.mubr.msk.f32.mxu0 %vm412_vm4, %v16583_v46  ;;  %v18203_v46 = vld [vmem:[#allocation82_spill] sm:$0xff] }
 0x530   : > { %13208 = vmatmul.mubr.msk.f32.gmra.mrb[36].mxu0 %vm412_vm4, %v16591_v21  ;;  %v11133_v21 = vld [vmem:[%s17715_s6 + $0x1c] sm:$0x7] }
 0x531   : > { %13210 = vmatprep.mubr.msk.f32.mxu0 %vm412_vm4, %v16601_v1  ;;  %v18204_v1 = vld [vmem:[#allocation83_spill] sm:$0xff] }
 0x534   : > { %13211 = vmatmul.mubr.msk.f32.gmra.mrb[38].mxu0 %vm412_vm4, %v16609_v22  ;;  %v18205_v22 = vld [vmem:[#allocation85_spill] sm:$0xff] }
 0x535   : > { %13213 = vmatprep.mubr.msk.f32.mxu0 %vm412_vm4, %v16619_v2  ;;  %v18206_v2 = vld [vmem:[#allocation89_spill] sm:$0xff] }
 0x538   : > { %13214 = vmatmul.mubr.msk.f32.gmra.mrb[40].mxu0 %vm412_vm4, %v16627_v23  ;;  %v18207_v23 = vld [vmem:[#allocation100_spill] sm:$0xff] }
 0x539   : > { %13216 = vmatprep.mubr.msk.f32.mxu0 %vm412_vm4, %v16637_v43  ;;  %v18208_v43 = vld [vmem:[#allocation101_spill] sm:$0xff] }
 0x53c   : > { %13217 = vmatmul.mubr.msk.f32.gmra.mrb[42].mxu0 %vm412_vm4, %v16645_v42  ;;  %v18209_v42 = vld [vmem:[#allocation52_spill] sm:$0xff] }
 0x53d   : > { %13219 = vmatprep.mubr.msk.f32.mxu0 %vm412_vm4, %v16655_v14  ;;  %v18210_v14 = vld [vmem:[#allocation57_spill] sm:$0xff] }
 0x540   : > { %13220 = vmatmul.mubr.msk.f32.gmra.mrb[44].mxu0 %vm412_vm4, %v16663_v59  ;;  %v18211_v59 = vld [vmem:[#allocation84_spill] sm:$0xff] }
 0x541   : > { %13222 = vmatprep.mubr.msk.f32.mxu0 %vm412_vm4, %v16673_v18  ;;  %v18212_v18 = vld [vmem:[#allocation86_spill] sm:$0xff] }
 0x544   : > { %13223 = vmatmul.mubr.msk.f32.gmra.mrb[46].mxu0 %vm412_vm4, %v16681_v40  ;;  %v18213_v40 = vld [vmem:[#allocation88_spill] sm:$0xff] }
 0x545   : > { %13225 = vmatprep.mubr.msk.f32.mxu0 %vm412_vm4, %v16691_v45  ;;  %v18214_v45 = vld [vmem:[#allocation92_spill] sm:$0xff] }
 0x548   : > { %13226 = vmatmul.mubr.msk.f32.gmra.mrb[48].mxu0 %vm412_vm4, %v16699_v35  ;;  %v18215_v35 = vld [vmem:[#allocation93_spill] sm:$0xff] }
 0x549   : > { %13228 = vmatprep.mubr.msk.f32.mxu0 %vm412_vm4, %v16709_v44  ;;  %v18216_v44 = vld [vmem:[#allocation94_spill] sm:$0xff] }
 0x54c   : > { %13229 = vmatmul.mubr.msk.f32.gmra.mrb[50].mxu0 %vm412_vm4, %v16717_v26  ;;  %v18217_v26 = vld [vmem:[#allocation95_spill] sm:$0xff] }
 0x54d   : > { %13231 = vmatprep.mubr.msk.f32.mxu0 %vm412_vm4, %v16727_v33  ;;  %v18218_v33 = vld [vmem:[#allocation96_spill] sm:$0xff] }
 0x550   : > { %13232 = vmatmul.mubr.msk.f32.gmra.mrb[52].mxu0 %vm412_vm4, %v16735_v48  ;;  %v18219_v48 = vld [vmem:[#allocation97_spill] sm:$0xff] }
 0x551   : > { %13234 = vmatprep.mubr.msk.f32.mxu0 %vm412_vm4, %v16745_v19 }
 0x554   : > { %13235 = vmatmul.mubr.msk.f32.gmra.mrb[54].mxu0 %vm412_vm4, %v16753_v11 }
 0x555   : > { %13237 = vmatprep.mubr.msk.f32.mxu0 %vm412_vm4, %v16763_v62 }
 0x558   : > { %13238 = vmatmul.mubr.msk.f32.gmra.mrb[56].mxu0 %vm412_vm4, %v16771_v4 }
 0x559   : > { %13240 = vmatprep.mubr.msk.f32.mxu0 %vm412_vm4, %v16778_v5 }
 0x55c   : > { %13241 = vmatmul.mubr.msk.f32.gmra.mrb[58].mxu0 %vm412_vm4, %v16785_v27 }
 0x55d   : > { %13243 = vmatprep.mubr.msk.f32.mxu0 %vm412_vm4, %v18201_v54 }
 0x560   : > { %13244 = vmatmul.mubr.msk.f32.gmra.mrb[60].mxu0 %vm412_vm4, %v18202_v12 }
 0x561   : > { %13246 = vmatprep.mubr.msk.f32.mxu0 %vm412_vm4, %v17198_v24 }
 0x564   : > { %13247 = vmatmul.mubr.msk.f32.gmra.mrb[62].mxu0 %vm412_vm4, %v17202_v28 }
 0x565   : > { %13251 = vmatprep.mubr.msk.f32.mxu0 %vm412_vm4, %v18203_v46  ;;  %v18222_v46 = vld [vmem:[#allocation102_spill] sm:$0xff] }
 0x568   : > { %13252 = vmatmul.mubr.msk.f32.vlgmr.msra.gmra.mrb[32].mxu0 %vm412_vm4, %v18204_v1  ;;  %v18223_v1 = vld [vmem:[#allocation103_spill] sm:$0xff] }
 0x569   : > { %13300 = vmatpush3.msk.msra.mxu0 %vm6579_vm3, %v11099_v9  ;;  %13254 = vmatprep.mubr.msk.f32.mxu0 %vm412_vm4, %v18205_v22  ;;  %v18221_v9 = vld [vmem:[#allocation99_spill] sm:$0xff] }
 0x56a   : > { %13349 = vmatprep.subr.msk.mxu0 %vm6579_vm3, %v11133_v21 }
 0x56c   : > { %13255 = vmatmul.mubr.msk.f32.gmra.mrb[34].mxu0 %vm412_vm4, %v18206_v2 }
 0x56d   : > { %13257 = vmatprep.mubr.msk.f32.mxu0 %vm412_vm4, %v18207_v23 }
 0x570   : > { %13258 = vmatmul.mubr.msk.f32.gmra.mrb[36].mxu0 %vm412_vm4, %v18208_v43 }
 0x571   : > { %13260 = vmatprep.mubr.msk.f32.mxu0 %vm412_vm4, %v18209_v42 }
 0x574   : > { %13261 = vmatmul.mubr.msk.f32.gmra.mrb[38].mxu0 %vm412_vm4, %v18210_v14 }
 0x575   : > { %13263 = vmatprep.mubr.msk.f32.mxu0 %vm412_vm4, %v18211_v59 }
 0x578   : > { %13264 = vmatmul.mubr.msk.f32.gmra.mrb[40].mxu0 %vm412_vm4, %v18212_v18 }
 0x579   : > { %13266 = vmatprep.mubr.msk.f32.mxu0 %vm412_vm4, %v18213_v40 }
 0x57c   : > { %13267 = vmatmul.mubr.msk.f32.gmra.mrb[42].mxu0 %vm412_vm4, %v18214_v45 }
 0x57d   : > { %13269 = vmatprep.mubr.msk.f32.mxu0 %vm412_vm4, %v18215_v35 }
 0x580   : > { %13270 = vmatmul.mubr.msk.f32.gmra.mrb[44].mxu0 %vm412_vm4, %v18216_v44  ;;  %v18224_v44 = vld [vmem:[#allocation53_spill] sm:$0xff] }
 0x581   : > { %13272 = vmatprep.mubr.msk.f32.mxu0 %vm412_vm4, %v18217_v26  ;;  %v18225_v26 = vld [vmem:[#allocation56_spill] sm:$0xff] }
 0x584   : > { %13273 = vmatmul.mubr.msk.f32.gmra.mrb[46].mxu0 %vm412_vm4, %v18218_v33  ;;  %v18226_v33 = vld [vmem:[#allocation104_spill] sm:$0xff] }
 0x585   : > { %13275 = vmatprep.mubr.msk.f32.mxu0 %vm412_vm4, %v18219_v48  ;;  %v18227_v48 = vld [vmem:[#allocation105_spill] sm:$0xff] }
 0x588   : > { %13276 = vmatmul.mubr.msk.f32.gmra.mrb[48].mxu0 %vm412_vm4, %v18220_v57 }
 0x589   : > { %13278 = vmatprep.mubr.msk.f32.mxu0 %vm412_vm4, %v18221_v9  ;;  %v18228_v9 = vld [vmem:[#allocation58_spill] sm:$0xff] }
 0x58c   : > { %13279 = vmatmul.mubr.msk.f32.gmra.mrb[50].mxu0 %vm412_vm4, %v18222_v46 }
 0x58d   : > { %13281 = vmatprep.mubr.msk.f32.mxu0 %vm412_vm4, %v18223_v1 }
 0x590   : > { %13282 = vmatmul.mubr.msk.f32.gmra.mrb[52].mxu0 %vm412_vm4, %v18224_v44 }
 0x591   : > { %13284 = vmatprep.mubr.msk.f32.mxu0 %vm412_vm4, %v18225_v26  ;;  %v17271_v26 = vld [vmem:[#allocation3 + $0x182] sm:$0xff] }
 0x594   : > { %13285 = vmatmul.mubr.msk.f32.gmra.mrb[54].mxu0 %vm412_vm4, %v18226_v33 }
 0x595   : > { %13287 = vmatprep.mubr.msk.f32.mxu0 %vm412_vm4, %v18227_v48  ;;  %v17275_v48 = vld [vmem:[#allocation3 + $0x18a] sm:$0xff] }
 0x598   : > { %13288 = vmatmul.mubr.msk.f32.gmra.mrb[56].mxu0 %vm412_vm4, %v17039_v61 }
 0x599   : > { %13290 = vmatprep.mubr.msk.f32.mxu0 %vm412_vm4, %v18228_v9 }
 0x59c   : > { %13291 = vmatmul.mubr.msk.f32.gmra.mrb[58].mxu0 %vm412_vm4, %v17047_v13 }
 0x59d   : > { %13293 = vmatprep.mubr.msk.f32.mxu0 %vm412_vm4, %v17051_v16  ;;  %v11167_v16 = vld [vmem:[%s17715_s6 + $0x20] sm:$0x7] }
 0x5a0   : > { %13294 = vmatmul.mubr.msk.f32.gmra.mrb[60].mxu0 %vm412_vm4, %v17055_v38 }
 0x5a1   : > { %13296 = vmatprep.mubr.msk.f32.mxu0 %vm412_vm4, %v17271_v26 }
 0x5a4   : > { %13297 = vmatmul.mubr.msk.f32.gmra.mrb[62].mxu0 %vm412_vm4, %v17275_v48 }
 0x5a5   : > { %13301 = vmatprep.mubr.msk.f32.mxu0 %vm412_vm4, %v16816_v58  ;;  %v8723_v58 = vld [vmem:[#allocation3 + $0x198] sm:$0xff] }
 0x5a8   : > { %13302 = vmatmul.mubr.msk.f32.vlgmr.msra.gmra.mrb[32].mxu0 %vm412_vm4, %v16820_v29  ;;  %v8724_v29 = vld [vmem:[#allocation3 + $0x1a0] sm:$0xff] }
 0x5a9   : > { %13350 = vmatpush3.msk.msra.mxu0 %vm6579_vm3, %v11133_v21  ;;  %13304 = vmatprep.mubr.msk.f32.mxu0 %vm412_vm4, %v16824_v15  ;;  %v9083_v15 = vld [vmem:[#allocation3 + $0x31] sm:$0xff] }
 0x5aa   : > { %13399 = vmatprep.subr.msk.mxu0 %vm6579_vm3, %v11167_v16 }
 0x5ac   : > { %13305 = vmatmul.mubr.msk.f32.gmra.mrb[34].mxu0 %vm412_vm4, %v16828_v34  ;;  %v9084_v34 = vld [vmem:[#allocation3 + $0x39] sm:$0xff] }
 0x5ad   : > { %13307 = vmatprep.mubr.msk.f32.mxu0 %vm412_vm4, %v16832_v10  ;;  %v9085_v10 = vld [vmem:[#allocation3 + $0x49] sm:$0xff] }
 0x5b0   : > { %13308 = vmatmul.mubr.msk.f32.gmra.mrb[36].mxu0 %vm412_vm4, %v16836_v32  ;;  %v9086_v32 = vld [vmem:[#allocation3 + $0x51] sm:$0xff] }
 0x5b1   : > { %13310 = vmatprep.mubr.msk.f32.mxu0 %vm412_vm4, %v16840_v3  ;;  %v9087_v3 = vld [vmem:[#allocation3 + $0x61] sm:$0xff] }
 0x5b4   : > { %13311 = vmatmul.mubr.msk.f32.gmra.mrb[38].mxu0 %vm412_vm4, %v16844_v37  ;;  %v9088_v37 = vld [vmem:[#allocation3 + $0x69] sm:$0xff] }
 0x5b5   : > { %13313 = vmatprep.mubr.msk.f32.mxu0 %vm412_vm4, %v16848_v25  ;;  %v9089_v25 = vld [vmem:[#allocation3 + $0x79] sm:$0xff] }
 0x5b8   : > { %13314 = vmatmul.mubr.msk.f32.gmra.mrb[40].mxu0 %vm412_vm4, %v16852_v41  ;;  %v9090_v41 = vld [vmem:[#allocation3 + $0x81] sm:$0xff] }
 0x5b9   : > { %13316 = vmatprep.mubr.msk.f32.mxu0 %vm412_vm4, %v16856_v36  ;;  %v9091_v36 = vld [vmem:[#allocation3 + $0x91] sm:$0xff] }
 0x5bc   : > { %13317 = vmatmul.mubr.msk.f32.gmra.mrb[42].mxu0 %vm412_vm4, %v16860_v52  ;;  %v9092_v52 = vld [vmem:[#allocation3 + $0x99] sm:$0xff] }
 0x5bd   : > { %13319 = vmatprep.mubr.msk.f32.mxu0 %vm412_vm4, %v16864_v49  ;;  %v9093_v49 = vld [vmem:[#allocation3 + $0xa9] sm:$0xff] }
 0x5c0   : > { %13320 = vmatmul.mubr.msk.f32.gmra.mrb[44].mxu0 %vm412_vm4, %v16868_v51  ;;  %v9094_v51 = vld [vmem:[#allocation3 + $0xb1] sm:$0xff] }
 0x5c1   : > { %13322 = vmatprep.mubr.msk.f32.mxu0 %vm412_vm4, %v16872_v7  ;;  %v9095_v7 = vld [vmem:[#allocation3 + $0xc1] sm:$0xff] }
 0x5c4   : > { %13323 = vmatmul.mubr.msk.f32.gmra.mrb[46].mxu0 %vm412_vm4, %v16876_v53  ;;  %v9096_v53 = vld [vmem:[#allocation3 + $0xc9] sm:$0xff] }
 0x5c5   : > { %13325 = vmatprep.mubr.msk.f32.mxu0 %vm412_vm4, %v16880_v55  ;;  %v9097_v55 = vld [vmem:[#allocation3 + $0xd9] sm:$0xff] }
 0x5c8   : > { %13326 = vmatmul.mubr.msk.f32.gmra.mrb[48].mxu0 %vm412_vm4, %v16884_v56  ;;  %v9098_v56 = vld [vmem:[#allocation3 + $0xe1] sm:$0xff] }
 0x5c9   : > { %13328 = vmatprep.mubr.msk.f32.mxu0 %vm412_vm4, %v16888_v63  ;;  %v9099_v63 = vld [vmem:[#allocation3 + $0xf1] sm:$0xff] }
 0x5cc   : > { %13329 = vmatmul.mubr.msk.f32.gmra.mrb[50].mxu0 %vm412_vm4, %v16892_v17  ;;  %v9100_v17 = vld [vmem:[#allocation3 + $0xf9] sm:$0xff] }
 0x5cd   : > { %13331 = vmatprep.mubr.msk.f32.mxu0 %vm412_vm4, %v16896_v39  ;;  %v9101_v39 = vld [vmem:[#allocation3 + $0x109] sm:$0xff] }
 0x5d0   : > { %13332 = vmatmul.mubr.msk.f32.gmra.mrb[52].mxu0 %vm412_vm4, %v16900_v30  ;;  %v9102_v30 = vld [vmem:[#allocation3 + $0x111] sm:$0xff] }
 0x5d1   : > { %13334 = vmatprep.mubr.msk.f32.mxu0 %vm412_vm4, %v16904_v50  ;;  %v18233_v50 = vld [vmem:[#allocation99_spill] sm:$0xff] }
 0x5d4   : > { %13335 = vmatmul.mubr.msk.f32.gmra.mrb[54].mxu0 %vm412_vm4, %v16908_v60  ;;  %v18234_v60 = vld [vmem:[#allocation56_spill] sm:$0xff] }
 0x5d5   : > { %13337 = vmatprep.mubr.msk.f32.mxu0 %vm412_vm4, %v16912_v20  ;;  %v18235_v20 = vld [vmem:[#allocation105_spill] sm:$0xff] }
 0x5d8   : > { %13338 = vmatmul.mubr.msk.f32.gmra.mrb[56].mxu0 %vm412_vm4, %v16916_v0  ;;  %v18236_v0 = vld [vmem:[#allocation59_spill] sm:$0xff] }
 0x5d9   : > { %13340 = vmatprep.mubr.msk.f32.mxu0 %vm412_vm4, %v16920_v47  ;;  %v9503_v47 = vld [vmem:[#allocation3 + $0x19a] sm:$0xff] }
 0x5dc   : > { %13341 = vmatmul.mubr.msk.f32.gmra.mrb[58].mxu0 %vm412_vm4, %v16924_v31 }
 0x5dd   : > { %13343 = vmatprep.mubr.msk.f32.mxu0 %vm412_vm4, %v17125_v8 }
 0x5e0   : > { %13344 = vmatmul.mubr.msk.f32.gmra.mrb[60].mxu0 %vm412_vm4, %v17129_v6 }
 0x5e1   : > { %13346 = vmatprep.mubr.msk.f32.mxu0 %vm412_vm4, %v8723_v58 }
 0x5e4   : > { %13347 = vmatmul.mubr.msk.f32.gmra.mrb[62].mxu0 %vm412_vm4, %v8724_v29 }
 0x5e5   : > { %13351 = vmatprep.mubr.msk.f32.mxu0 %vm412_vm4, %v9083_v15 }
 0x5e8   : > { %13352 = vmatmul.mubr.msk.f32.vlgmr.msra.gmra.mrb[32].mxu0 %vm412_vm4, %v9084_v34 }
 0x5e9   : > { %13400 = vmatpush3.msk.msra.mxu0 %vm6579_vm3, %v11167_v16  ;;  %13354 = vmatprep.mubr.msk.f32.mxu0 %vm412_vm4, %v9085_v10 }
 0x5ec   : > { %13355 = vmatmul.mubr.msk.f32.gmra.mrb[34].mxu0 %vm412_vm4, %v9086_v32 }
 0x5ed   : > { %13357 = vmatprep.mubr.msk.f32.mxu0 %vm412_vm4, %v9087_v3 }
 0x5f0   : > { %13358 = vmatmul.mubr.msk.f32.gmra.mrb[36].mxu0 %vm412_vm4, %v9088_v37 }
 0x5f1   : > { %13360 = vmatprep.mubr.msk.f32.mxu0 %vm412_vm4, %v9089_v25 }
 0x5f4   : > { %13361 = vmatmul.mubr.msk.f32.gmra.mrb[38].mxu0 %vm412_vm4, %v9090_v41 }
 0x5f5   : > { %13363 = vmatprep.mubr.msk.f32.mxu0 %vm412_vm4, %v9091_v36 }
 0x5f8   : > { %13364 = vmatmul.mubr.msk.f32.gmra.mrb[40].mxu0 %vm412_vm4, %v9092_v52 }
 0x5f9   : > { %13366 = vmatprep.mubr.msk.f32.mxu0 %vm412_vm4, %v9093_v49  ;;  %v17469_v49 = vld [vmem:[%s17712_s3] ss:$0 sm:$0xff] }
 0x5fc   : > { %13367 = vmatmul.mubr.msk.f32.gmra.mrb[42].mxu0 %vm412_vm4, %v9094_v51  ;;  %v18237_v51 = vld [vmem:[#allocation62_spill] sm:$0xff] }
 0x5fd   : > { %13369 = vmatprep.mubr.msk.f32.mxu0 %vm412_vm4, %v9095_v7  ;;  %v3952_v7 = vadd.f32 %v17469_v49, %v18237_v51  ;;  %v18249_v51 = vld [vmem:[#allocation8_spill] sm:$0xff] }
 0x600   : > { %13370 = vmatmul.mubr.msk.f32.gmra.mrb[44].mxu0 %vm412_vm4, %v9096_v53  ;;  %v18238_v53 = vld [vmem:[#allocation63_spill] sm:$0xff] }
 0x601   : > { %13372 = vmatprep.mubr.msk.f32.mxu0 %vm412_vm4, %v9097_v55  ;;  %v17475_v55 = vadd.f32 %v17469_v49, %v18238_v53  ;;  %v17525_v53 = vadd.f32 %v17469_v49, %v18249_v51 }
 0x604   : > { %13373 = vmatmul.mubr.msk.f32.gmra.mrb[46].mxu0 %vm412_vm4, %v9098_v56 }
 0x605   : > { %13375 = vmatprep.mubr.msk.f32.mxu0 %vm412_vm4, %v9099_v63 }
 0x608   : > { %13376 = vmatmul.mubr.msk.f32.gmra.mrb[48].mxu0 %vm412_vm4, %v9100_v17 }
 0x609   : > { %13378 = vmatprep.mubr.msk.f32.mxu0 %vm412_vm4, %v9101_v39  ;;  %v18239_v39 = vld [vmem:[#allocation64_spill] sm:$0xff] }
 0x60c   : > { %13379 = vmatmul.mubr.msk.f32.gmra.mrb[50].mxu0 %vm412_vm4, %v9102_v30  ;;  %v17479_v30 = vadd.f32 %v17469_v49, %v18239_v39 }
 0x60d   : > { %13381 = vmatprep.mubr.msk.f32.mxu0 %vm412_vm4, %v16745_v19  ;;  %v9113_v19 = vld [vmem:[#allocation3 + $0x199] sm:$0xff] }
 0x610   : > { %13382 = vmatmul.mubr.msk.f32.gmra.mrb[52].mxu0 %vm412_vm4, %v16753_v11  ;;  %v9114_v11 = vld [vmem:[#allocation3 + $0x1a1] sm:$0xff] }
 0x611   : > { %13384 = vmatprep.mubr.msk.f32.mxu0 %vm412_vm4, %v16763_v62  ;;  %v18229_v62 = vld [vmem:[#allocation94_spill] sm:$0xff] }
 0x614   : > { %13385 = vmatmul.mubr.msk.f32.gmra.mrb[54].mxu0 %vm412_vm4, %v16771_v4  ;;  %v18230_v4 = vld [vmem:[#allocation95_spill] sm:$0xff] }
 0x615   : > { %13387 = vmatprep.mubr.msk.f32.mxu0 %vm412_vm4, %v16778_v5  ;;  %v18231_v5 = vld [vmem:[#allocation96_spill] sm:$0xff] }
 0x618   : > { %13388 = vmatmul.mubr.msk.f32.gmra.mrb[56].mxu0 %vm412_vm4, %v16785_v27  ;;  %v18232_v27 = vld [vmem:[#allocation97_spill] sm:$0xff] }
 0x619   : > { %13390 = vmatprep.mubr.msk.f32.mxu0 %vm412_vm4, %v18201_v54 }
 0x61c   : > { %13391 = vmatmul.mubr.msk.f32.gmra.mrb[58].mxu0 %vm412_vm4, %v18202_v12 }
 0x61d   : > { %13393 = vmatprep.mubr.msk.f32.mxu0 %vm412_vm4, %v17198_v24 }
 0x620   : > { %13394 = vmatmul.mubr.msk.f32.gmra.mrb[60].mxu0 %vm412_vm4, %v17202_v28 }
 0x621   : > { %13396 = vmatprep.mubr.msk.f32.mxu0 %vm412_vm4, %v9113_v19 }
 0x624   : > { %13397 = vmatmul.mubr.msk.f32.gmra.mrb[62].mxu0 %vm412_vm4, %v9114_v11 }
 0x625   : > { %13401 = vmatprep.mubr.msk.f32.mxu0 %vm412_vm4, %v18205_v22 }
 0x628   : > { %13402 = vmatmul.mubr.msk.f32.vlgmr.msra.gmra.mrb[32].mxu0 %vm412_vm4, %v18206_v2 }
 0x629   : > { %13404 = vmatprep.mubr.msk.f32.mxu0 %vm412_vm4, %v18207_v23 }
 0x62c   : > { %13405 = vmatmul.mubr.msk.f32.gmra.mrb[34].mxu0 %vm412_vm4, %v18208_v43 }
 0x62d   : > { %13407 = vmatprep.mubr.msk.f32.mxu0 %vm412_vm4, %v18209_v42 }
 0x630   : > { %13408 = vmatmul.mubr.msk.f32.gmra.mrb[36].mxu0 %vm412_vm4, %v18210_v14 }
 0x631   : > { %13410 = vmatprep.mubr.msk.f32.mxu0 %vm412_vm4, %v18211_v59 }
 0x634   : > { %13411 = vmatmul.mubr.msk.f32.gmra.mrb[38].mxu0 %vm412_vm4, %v18212_v18 }
 0x635   : > { %13413 = vmatprep.mubr.msk.f32.mxu0 %vm412_vm4, %v18213_v40 }
 0x638   : > { %13414 = vmatmul.mubr.msk.f32.gmra.mrb[40].mxu0 %vm412_vm4, %v18214_v45 }
 0x639   : > { %13416 = vmatprep.mubr.msk.f32.mxu0 %vm412_vm4, %v18215_v35 }
 0x63c   : > { %13417 = vmatmul.mubr.msk.f32.gmra.mrb[42].mxu0 %vm412_vm4, %v18229_v62 }
 0x63d   : > { %13419 = vmatprep.mubr.msk.f32.mxu0 %vm412_vm4, %v18230_v4 }
 0x640   : > { %13420 = vmatmul.mubr.msk.f32.gmra.mrb[44].mxu0 %vm412_vm4, %v18231_v5 }
 0x641   : > { %13422 = vmatprep.mubr.msk.f32.mxu0 %vm412_vm4, %v18232_v27 }
 0x644   : > { %13423 = vmatmul.mubr.msk.f32.gmra.mrb[46].mxu0 %vm412_vm4, %v18220_v57 }
 0x645   : > { %13425 = vmatprep.mubr.msk.f32.mxu0 %vm412_vm4, %v18233_v50 }
 0x648   : > { %13426 = vmatmul.mubr.msk.f32.gmra.mrb[48].mxu0 %vm412_vm4, %v18222_v46 }
 0x649   : > { %13428 = vmatprep.mubr.msk.f32.mxu0 %vm412_vm4, %v18223_v1 }
 0x64c   : > { %13429 = vmatmul.mubr.msk.f32.gmra.mrb[50].mxu0 %vm412_vm4, %v18224_v44 }
 0x64d   : > { %13431 = vmatprep.mubr.msk.f32.mxu0 %vm412_vm4, %v18234_v60  ;;  %v18240_v60 = vld [vmem:[#allocation65_spill] sm:$0xff] }
 0x650   : > { %13432 = vmatmul.mubr.msk.f32.gmra.mrb[52].mxu0 %vm412_vm4, %v18226_v33 }
 0x651   : > { %13434 = vmatprep.mubr.msk.f32.mxu0 %vm412_vm4, %v18235_v20  ;;  %v17485_v20 = vadd.f32 %v17469_v49, %v18240_v60 }
 0x654   : > { %13435 = vmatmul.mubr.msk.f32.gmra.mrb[54].mxu0 %vm412_vm4, %v17039_v61  ;;  %v9504_v61 = vld [vmem:[#allocation3 + $0x1a2] sm:$0xff] }
 0x655   : > { %13437 = vmatprep.mubr.msk.f32.mxu0 %vm412_vm4, %v18228_v9 }
 0x658   : > { %13438 = vmatmul.mubr.msk.f32.gmra.mrb[56].mxu0 %vm412_vm4, %v17047_v13  ;;  %v17454_v13 = vld [vmem:[%s17716_s7] ss:$0 sm:$0xff] }
 0x659   : > { %13440 = vmatprep.mubr.msk.f32.mxu0 %vm412_vm4, %v18236_v0 }
 0x65c   : > { %13441 = vmatmul.mubr.msk.f32.gmra.mrb[58].mxu0 %vm412_vm4, %v17055_v38 }
 0x65d   : > { %13443 = vmatprep.mubr.msk.f32.mxu0 %vm412_vm4, %v17271_v26 }
 0x660   : > { %13444 = vmatmul.mubr.msk.f32.gmra.mrb[60].mxu0 %vm412_vm4, %v17275_v48 }
 0x661   : > { %13446 = vmatprep.mubr.msk.f32.mxu0 %vm412_vm4, %v9503_v47 }
 0x664   : > { %13447 = vmatmul.mubr.msk.f32.gmra.mrb[62].mxu0 %vm412_vm4, %v9504_v61  ;;  %v18241_v61 = vld [vmem:[#allocation66_spill] sm:$0xff] }
 0x6fb   : > { %v13403_v31 = vpop.f32.mrb[32].mxu0 }
 0x6fc   : > { %v9870_v16 = vadd.f32 %v13403_v31, %v17454_v13  ;;  %v9672_v38 = vpop.f32.mrb[33].mxu0  ;;  %v17489_v31 = vadd.f32 %v17469_v49, %v18241_v61  ;;  %v18252_v61 = vld [vmem:[#allocation28_spill] sm:$0xff] }
 0x6fd   : > { %v9869_v8 = vadd.f32 %v17454_v13, %v9672_v38 }
 0x6fe   : > { %v9902_v6 = vsub.f32 0.0, %v9870_v16  ;;  %v18242_v16 = vld [vmem:[#allocation67_spill] sm:$0xff] }
 0x6ff   : > { %v9901_v54 = vsub.f32 0.0, %v9869_v8  ;;  %v13406_v12 = vpop.f32.mrb[34].mxu0  ;;  %v17493_v38 = vadd.f32 %v17469_v49, %v18242_v16  ;;  %v17539_v16 = vadd.f32 %v17469_v49, %v18252_v61 }
 0x700   : > { %v9935_v24 = vmul.f32 1.442695, %v9902_v6  ;;  %v9872_v28 = vadd.f32 %v13406_v12, %v17454_v13  ;;  %v9682_v21 = vpop.f32.mrb[35].mxu0  ;;  %v18243_v12 = vld [vmem:[#allocation68_spill] sm:$0xff] }
 0x701   : > { %v9933_v22 = vmul.f32 1.442695, %v9901_v54  ;;  %v9871_v2 = vadd.f32 %v17454_v13, %v9682_v21 }
 0x702   : > { %14228 = vpow2.f32 %v9935_v24  ;;  %v9904_v23 = vsub.f32 0.0, %v9872_v28  ;;  %v17497_v24 = vadd.f32 %v17469_v49, %v18243_v12  ;;  %v18253_v12 = vld [vmem:[#allocation29_spill] sm:$0xff] }
 0x703   : > { %14230 = vpow2.f32 %v9933_v22  ;;  %v9903_v43 = vsub.f32 0.0, %v9871_v2  ;;  %v13409_v42 = vpop.f32.mrb[36].mxu0 }
 0x704   : > { %v9939_v14 = vmul.f32 1.442695, %v9904_v23  ;;  %v9874_v59 = vadd.f32 %v13409_v42, %v17454_v13  ;;  %v9692_v18 = vpop.f32.mrb[37].mxu0 }
 0x705   : > { %v9937_v40 = vmul.f32 1.442695, %v9903_v43  ;;  %v9873_v45 = vadd.f32 %v17454_v13, %v9692_v18 }
 0x706   : > { %14232 = vpow2.f32 %v9939_v14  ;;  %v9906_v35 = vsub.f32 0.0, %v9874_v59  ;;  %v18244_v14 = vld [vmem:[#allocation87_spill] sm:$0xff] }
 0x707   : > { %14234 = vpow2.f32 %v9937_v40  ;;  %v9905_v44 = vsub.f32 0.0, %v9873_v45  ;;  %v13412_v26 = vpop.f32.mrb[38].mxu0  ;;  %v17503_v59 = vadd.f32 %v17469_v49, %v18244_v14  ;;  %v18245_v45 = vld [vmem:[#allocation69_spill] sm:$0xff] }
 0x708   : > { %v9943_v33 = vmul.f32 1.442695, %v9906_v35  ;;  %v9876_v48 = vadd.f32 %v13412_v26, %v17454_v13  ;;  %v9702_v57 = vpop.f32.mrb[39].mxu0  ;;  %v17507_v35 = vadd.f32 %v17469_v49, %v18245_v45  ;;  %v18255_v45 = vld [vmem:[#allocation6_spill] sm:$0xff] }
 0x709   : > { %v9941_v9 = vmul.f32 1.442695, %v9905_v44  ;;  %v9875_v46 = vadd.f32 %v17454_v13, %v9702_v57  ;;  %v18246_v44 = vld [vmem:[#allocation90_spill] sm:$0xff] }
 0x70a   : > { %14236 = vpow2.f32 %v9943_v33  ;;  %v9908_v1 = vsub.f32 0.0, %v9876_v48  ;;  %v17511_v26 = vadd.f32 %v17469_v49, %v18246_v44 }
 0x70b   : > { %14238 = vpow2.f32 %v9941_v9  ;;  %v9907_v58 = vsub.f32 0.0, %v9875_v46  ;;  %v13415_v29 = vpop.f32.mrb[40].mxu0  ;;  %v18247_v9 = vld [vmem:[#allocation91_spill] sm:$0xff] }
 0x70c   : > { %v14229_v15 = vpop.eup %14228  ;;  %v9947_v34 = vmul.f32 1.442695, %v9908_v1  ;;  %v9878_v10 = vadd.f32 %v13415_v29, %v17454_v13  ;;  %v9712_v32 = vpop.f32.mrb[41].mxu0  ;;  %v17515_v46 = vadd.f32 %v17469_v49, %v18247_v9 }
 0x70d   : > { %v14231_v3 = vpop.eup %14230  ;;  %v9998_v37 = vadd.f32 1.0, %v14229_v15  ;;  %v9945_v25 = vmul.f32 1.442695, %v9907_v58  ;;  %v9877_v41 = vadd.f32 %v17454_v13, %v9712_v32 }
 0x70e   : > { %v9997_v36 = vadd.f32 1.0, %v14231_v3  ;;  %14240 = vpow2.f32 %v9947_v34  ;;  %v9910_v52 = vsub.f32 0.0, %v9878_v10 }
 0x70f   : > { %14242 = vrcp.f32 %v9998_v37  ;;  %v9909_v56 = vsub.f32 0.0, %v9877_v41  ;;  %v13418_v63 = vpop.f32.mrb[42].mxu0  ;;  %v18248_v37 = vld [vmem:[#allocation7_spill] sm:$0xff] }
 0x710   : > { %v14233_v17 = vpop.eup %14232  ;;  %14244 = vrcp.f32 %v9997_v36  ;;  %v9951_v19 = vmul.f32 1.442695, %v9910_v52  ;;  %v9880_v11 = vadd.f32 %v13418_v63, %v17454_v13  ;;  %v9722_v62 = vpop.f32.mrb[43].mxu0 }
 0x711   : > { %v14235_v4 = vpop.eup %14234  ;;  %v10000_v5 = vadd.f32 1.0, %v14233_v17  ;;  %14246 = vpow2.f32 %v9945_v25  ;;  %v9949_v27 = vmul.f32 1.442695, %v9909_v56  ;;  %v9879_v50 = vadd.f32 %v17454_v13, %v9722_v62 }
 0x712   : > { %v9999_v0 = vadd.f32 1.0, %v14235_v4  ;;  %14248 = vpow2.f32 %v9951_v19  ;;  %v9912_v47 = vsub.f32 0.0, %v9880_v11  ;;  %v17521_v25 = vadd.f32 %v17469_v49, %v18248_v37 }
 0x713   : > { %14250 = vrcp.f32 %v10000_v5  ;;  %v9911_v8 = vsub.f32 0.0, %v9879_v50  ;;  %v13421_v6 = vpop.f32.mrb[44].mxu0 }
 0x714   : > { %v14237_v54 = vpop.eup %14236  ;;  %14252 = vrcp.f32 %v9999_v0  ;;  %v9955_v28 = vmul.f32 1.442695, %v9912_v47  ;;  %v9882_v21 = vadd.f32 %v13421_v6, %v17454_v13  ;;  %v9732_v22 = vpop.f32.mrb[45].mxu0 }
 0x715   : > { %v14239_v2 = vpop.eup %14238  ;;  %v10002_v23 = vadd.f32 1.0, %v14237_v54  ;;  %14254 = vpow2.f32 %v9949_v27  ;;  %v9953_v43 = vmul.f32 1.442695, %v9911_v8  ;;  %v9881_v42 = vadd.f32 %v17454_v13, %v9732_v22  ;;  %v18251_v27 = vld [vmem:[#allocation4_spill] sm:$0xff] }
 0x716   : > { %v10001_v18 = vadd.f32 1.0, %v14239_v2  ;;  %14256 = vpow2.f32 %v9955_v28  ;;  %v9914_v40 = vsub.f32 0.0, %v9882_v21  ;;  %v17547_v28 = vadd.f32 %v17469_v49, %v18253_v12 }
 0x717   : > { %14258 = vrcp.f32 %v10002_v23  ;;  %v9913_v33 = vsub.f32 0.0, %v9881_v42  ;;  %v13424_v48 = vpop.f32.mrb[46].mxu0 }
 0x718   : > { %v14241_v57 = vpop.eup %14240  ;;  %14260 = vrcp.f32 %v10001_v18  ;;  %v9959_v1 = vmul.f32 1.442695, %v9914_v40  ;;  %v9884_v58 = vadd.f32 %v13424_v48, %v17454_v13  ;;  %v9742_v29 = vpop.f32.mrb[47].mxu0 }
 0x719   : > { %v14243_v15 = vpop.eup %14242  ;;  %v10004_v34 = vadd.f32 1.0, %v14241_v57  ;;  %14262 = vpow2.f32 %v9953_v43  ;;  %v9957_v10 = vmul.f32 1.442695, %v9913_v33  ;;  %v9883_v32 = vadd.f32 %v17454_v13, %v9742_v29  ;;  %v18254_v43 = vld [vmem:[#allocation9_spill] sm:$0xff]  ;;  %v18256_v29 = vld [vmem:[#allocation30_spill] sm:$0xff] }
 0x71a   : > { %v14245_v3 = vpop.eup %14244  ;;  %v10094_v41 = vmul.f32 %v14243_v15, %v3952_v7  ;;  %14264 = vpow2.f32 %v9959_v1  ;;  %v9916_v36 = vsub.f32 0.0, %v9884_v58  ;;  %v18250_v7 = vld [vmem:[#allocation5_spill] sm:$0xff]  ;;  %v17560_v15 = vadd.f32 %v17469_v49, %v18256_v29 }
 0x71b   : > { %v14247_v52 = vpop.eup %14246  ;;  %v10093_v56 = vmul.f32 %v14245_v3, %v17475_v55  ;;  %14266 = vrcp.f32 %v10004_v34  ;;  %v9915_v63 = vsub.f32 0.0, %v9883_v32  ;;  %v13427_v17 = vpop.f32.mrb[48].mxu0 }
 0x71c   : > { %v14249_v39 = vpop.eup %14248  ;;  %v10126_v19 = vadd.f32 %v10094_v41, %v18250_v7  ;;  %v10003_v11 = vadd.f32 1.0, %v14247_v52  ;;  %14268 = vpow2.f32 %v9957_v10  ;;  %v9963_v62 = vmul.f32 1.442695, %v9916_v36  ;;  %v9752_v4 = vpop.f32.mrb[49].mxu0 }
 0x71d   : > { %v14251_v5 = vpop.eup %14250  ;;  %v10125_v50 = vadd.f32 %v10093_v56, %v18251_v27  ;;  %v10006_v60 = vadd.f32 1.0, %v14249_v39  ;;  %v9961_v0 = vmul.f32 1.442695, %v9915_v63  ;;  %v9886_v47 = vadd.f32 %v13427_v17, %v17454_v13  ;;  %v18258_v56 = vld [vmem:[#allocation10_spill] sm:$0xff] }
 0x71e   : > { %v14253_v55 = vpop.eup %14252  ;;  %10158 = vst.msk [vmem:[%s17531_s28 + $0x8] sm:$0xff] %vm366_vm0, %v10126_v19  ;;  %v10096_v8 = vmul.f32 %v14251_v5, %v17479_v30  ;;  %14270 = vrcp.f32 %v10003_v11  ;;  %v9885_v6 = vadd.f32 %v17454_v13, %v9752_v4 }
 0x71f   : > { %v14255_v54 = vpop.eup %14254  ;;  %10157 = vst.msk [vmem:[%s17531_s28] sm:$0xff] %vm366_vm0, %v10125_v50  ;;  %v10095_v21 = vmul.f32 %v14253_v55, %v17485_v20  ;;  %14272 = vrcp.f32 %v10006_v60  ;;  %v9918_v22 = vsub.f32 0.0, %v9886_v47  ;;  %v13430_v2 = vpop.f32.mrb[50].mxu0  ;;  %v18259_v60 = vld [vmem:[#allocation13_spill] sm:$0xff] }
 0x720   : > { %v14257_v23 = vpop.eup %14256  ;;  %v10128_v42 = vadd.f32 %v10096_v8, %v18254_v43  ;;  %v10005_v30 = vadd.f32 1.0, %v14255_v54  ;;  %14274 = vpow2.f32 %v9963_v62  ;;  %v9917_v14 = vsub.f32 0.0, %v9885_v6  ;;  %v9762_v18 = vpop.f32.mrb[51].mxu0  ;;  %v18260_v43 = vld [vmem:[#allocation12_spill] sm:$0xff] }
 0x721   : > { %v14259_v40 = vpop.eup %14258  ;;  %v10127_v44 = vadd.f32 %v10095_v21, %v18255_v45  ;;  %v10008_v33 = vadd.f32 1.0, %v14257_v23  ;;  %14276 = vpow2.f32 %v9961_v0  ;;  %v9967_v48 = vmul.f32 1.442695, %v9918_v22  ;;  %v18261_v45 = vld [vmem:[#allocation15_spill] sm:$0xff] }
 0x722   : > { %v14261_v57 = vpop.eup %14260  ;;  %10160 = vst.msk [vmem:[%s17531_s28 + $0x18] sm:$0xff] %vm366_vm0, %v10128_v42  ;;  %v10098_v20 = vmul.f32 %v14259_v40, %v17489_v31  ;;  %14278 = vrcp.f32 %v10005_v30  ;;  %v9965_v9 = vmul.f32 1.442695, %v9917_v14  ;;  %v9888_v1 = vadd.f32 %v13430_v2, %v17454_v13  ;;  %v18257_v31 = vld [vmem:[#allocation11_spill] sm:$0xff] }
 0x723   : > { %v14263_v58 = vpop.eup %14262  ;;  %10159 = vst.msk [vmem:[%s17531_s28 + $0x10] sm:$0xff] %vm366_vm0, %v10127_v44  ;;  %v10097_v34 = vmul.f32 %v14261_v57, %v17493_v38  ;;  %14280 = vrcp.f32 %v10008_v33  ;;  %v9887_v10 = vadd.f32 %v17454_v13, %v9762_v18  ;;  %v13433_v32 = vpop.f32.mrb[52].mxu0 }
 0x724   : > { %v14265_v3 = vpop.eup %14264  ;;  %v10130_v37 = vadd.f32 %v10098_v20, %v18257_v31  ;;  %v10007_v41 = vadd.f32 1.0, %v14263_v58  ;;  %14282 = vpow2.f32 %v9967_v48  ;;  %v9920_v36 = vsub.f32 0.0, %v9888_v1  ;;  %v9772_v52 = vpop.f32.mrb[53].mxu0  ;;  %v18262_v20 = vld [vmem:[#allocation31_spill] sm:$0xff]  ;;  %v18263_v31 = vld [vmem:[#allocation14_spill] sm:$0xff] }
 0x725   : > { %v14267_v51 = vpop.eup %14266  ;;  %v10129_v63 = vadd.f32 %v10097_v34, %v18258_v56  ;;  %v10010_v17 = vadd.f32 1.0, %v14265_v3  ;;  %14284 = vpow2.f32 %v9965_v9  ;;  %v9919_v39 = vsub.f32 0.0, %v9887_v10 }
 0x726   : > { %v14269_v38 = vpop.eup %14268  ;;  %10162 = vst.msk [vmem:[%s17531_s28 + $0x28] sm:$0xff] %vm366_vm0, %v10130_v37  ;;  %v10100_v7 = vmul.f32 %v14267_v51, %v17497_v24  ;;  %14286 = vrcp.f32 %v10007_v41  ;;  %v9971_v19 = vmul.f32 1.442695, %v9920_v36  ;;  %v9890_v11 = vadd.f32 %v13433_v32, %v17454_v13  ;;  %v18264_v51 = vld [vmem:[#allocation17_spill] sm:$0xff] }
 0x727   : > { %10161 = vst.msk [vmem:[%s17531_s28 + $0x20] sm:$0xff] %vm366_vm0, %v10129_v63  ;;  %14288 = vrcp.f32 %v10010_v17  ;;  %v10009_v62 = vadd.f32 1.0, %v14269_v38  ;;  %v9969_v4 = vmul.f32 1.442695, %v9919_v39  ;;  %v9889_v5 = vadd.f32 %v17454_v13, %v9772_v52  ;;  %v13436_v27 = vpop.f32.mrb[54].mxu0 }
 0x728   : > { %v14271_v50 = vpop.eup %14270  ;;  %v10132_v0 = vadd.f32 %v10100_v7, %v18259_v60  ;;  %14290 = vpow2.f32 %v9971_v19  ;;  %v9922_v47 = vsub.f32 0.0, %v9890_v11  ;;  %v9892_v24 = vadd.f32 %v13436_v27, %v17454_v13  ;;  %v9782_v55 = vpop.f32.mrb[55].mxu0 }
 0x729   : > { %v14273_v61 = vpop.eup %14272  ;;  %v10099_v8 = vmul.f32 %v14271_v50, %v17503_v59  ;;  %14292 = vrcp.f32 %v10009_v62  ;;  %v9921_v6 = vsub.f32 0.0, %v9889_v5  ;;  %v9891_v54 = vadd.f32 %v17454_v13, %v9782_v55  ;;  %v18265_v50 = vld [vmem:[#allocation16_spill] sm:$0xff]  ;;  %v18266_v55 = vld [vmem:[#allocation19_spill] sm:$0xff] }
 0x72a   : > { %v14275_v12 = vpop.eup %14274  ;;  %10164 = vst.msk [vmem:[%s17531_s28 + $0x38] sm:$0xff] %vm366_vm0, %v10132_v0  ;;  %v10102_v21 = vmul.f32 %v14273_v61, %v17507_v35  ;;  %14294 = vpow2.f32 %v9969_v4  ;;  %v9975_v22 = vmul.f32 1.442695, %v9922_v47  ;;  %v9924_v2 = vsub.f32 0.0, %v9892_v24 }
 0x72b   : > { %v14277_v23 = vpop.eup %14276  ;;  %v10131_v42 = vadd.f32 %v10099_v8, %v18260_v43  ;;  %v10012_v30 = vadd.f32 1.0, %v14275_v12  ;;  %v9973_v14 = vmul.f32 1.442695, %v9921_v6  ;;  %v9923_v59 = vsub.f32 0.0, %v9891_v54  ;;  %v13439_v18 = vpop.f32.mrb[56].mxu0 }
 0x72c   : > { %v14279_v40 = vpop.eup %14278  ;;  %v10134_v44 = vadd.f32 %v10102_v21, %v18261_v45  ;;  %v10011_v33 = vadd.f32 1.0, %v14277_v23  ;;  %14296 = vpow2.f32 %v9975_v22  ;;  %v9979_v48 = vmul.f32 1.442695, %v9924_v2  ;;  %v9792_v57 = vpop.f32.mrb[57].mxu0  ;;  %v18267_v2 = vld [vmem:[#allocation18_spill] sm:$0xff] }
 0x72d   : > { %v14281_v35 = vpop.eup %14280  ;;  %v17586_v9 = vadd.f32 %v17469_v49, %v18262_v20  ;;  %10163 = vst.msk [vmem:[%s17531_s28 + $0x30] sm:$0xff] %vm366_vm0, %v10131_v42  ;;  %v10101_v1 = vmul.f32 %v14279_v40, %v17511_v26  ;;  %14298 = vrcp.f32 %v10012_v30  ;;  %v9894_v58 = vadd.f32 %v13439_v18, %v17454_v13  ;;  %v18268_v30 = vld [vmem:[#allocation32_spill] sm:$0xff] }
 0x72e   : > { %v14283_v29 = vpop.eup %14282  ;;  %10166 = vst.msk [vmem:[%s17531_s28 + $0x48] sm:$0xff] %vm366_vm0, %v10134_v44  ;;  %v10104_v34 = vmul.f32 %v14281_v35, %v17515_v46  ;;  %14300 = vrcp.f32 %v10011_v33  ;;  %v9977_v10 = vmul.f32 1.442695, %v9923_v59  ;;  %v9893_v32 = vadd.f32 %v17454_v13, %v9792_v57 }
 0x72f   : > { %v14285_v3 = vpop.eup %14284  ;;  %v10133_v37 = vadd.f32 %v10101_v1, %v18263_v31  ;;  %v10014_v41 = vadd.f32 1.0, %v14283_v29  ;;  %14302 = vpow2.f32 %v9973_v14  ;;  %v9926_v26 = vsub.f32 0.0, %v9894_v58  ;;  %v13442_v36 = vpop.f32.mrb[58].mxu0  ;;  %v18270_v31 = vld [vmem:[#allocation20_spill] sm:$0xff] }
 0x730   : > { %v14287_v52 = vpop.eup %14286  ;;  %v10136_v56 = vadd.f32 %v10104_v34, %v18264_v51  ;;  %v10013_v63 = vadd.f32 1.0, %v14285_v3  ;;  %14304 = vpow2.f32 %v9979_v48  ;;  %v9925_v17 = vsub.f32 0.0, %v9893_v32  ;;  %v9802_v46 = vpop.f32.mrb[59].mxu0  ;;  %v18269_v34 = vld [vmem:[#allocation21_spill] sm:$0xff] }
 0x731   : > { %v14289_v39 = vpop.eup %14288  ;;  %10165 = vst.msk [vmem:[%s17531_s28 + $0x40] sm:$0xff] %vm366_vm0, %v10133_v37  ;;  %v10103_v38 = vmul.f32 %v14287_v52, %v17521_v25  ;;  %14306 = vrcp.f32 %v10014_v41  ;;  %v9983_v7 = vmul.f32 1.442695, %v9926_v26  ;;  %v9896_v19 = vadd.f32 %v13442_v36, %v17454_v13  ;;  %v18271_v51 = vld [vmem:[#allocation33_spill] sm:$0xff] }
 0x732   : > { %v14291_v11 = vpop.eup %14290  ;;  %10168 = vst.msk [vmem:[%s17531_s28 + $0x58] sm:$0xff] %vm366_vm0, %v10136_v56  ;;  %v10106_v62 = vmul.f32 %v14289_v39, %v17525_v53  ;;  %14308 = vrcp.f32 %v10013_v63  ;;  %v9981_v4 = vmul.f32 1.442695, %v9925_v17  ;;  %v9895_v5 = vadd.f32 %v17454_v13, %v9802_v46  ;;  %v18272_v39 = vld [vmem:[#allocation23_spill] sm:$0xff] }
 0x733   : > { %v14293_v27 = vpop.eup %14292  ;;  %v10135_v60 = vadd.f32 %v10103_v38, %v18265_v50  ;;  %v10016_v0 = vadd.f32 1.0, %v14291_v11  ;;  %14310 = vpow2.f32 %v9977_v10  ;;  %v9928_v25 = vsub.f32 0.0, %v9896_v19  ;;  %v13445_v47 = vpop.f32.mrb[60].mxu0  ;;  %v18273_v11 = vld [vmem:[#allocation22_spill] sm:$0xff] }
 0x734   : > { %v14295_v24 = vpop.eup %14294  ;;  %v10138_v61 = vadd.f32 %v10106_v62, %v18266_v55  ;;  %v10105_v8 = vmul.f32 %v14293_v27, %v17539_v16  ;;  %14312 = vpow2.f32 %v9983_v7  ;;  %v9927_v53 = vsub.f32 0.0, %v9895_v5  ;;  %v9812_v6 = vpop.f32.mrb[61].mxu0  ;;  %v18274_v27 = vld [vmem:[#allocation34_spill] sm:$0xff] }
 0x735   : > { %10167 = vst.msk [vmem:[%s17531_s28 + $0x50] sm:$0xff] %vm366_vm0, %v10135_v60  ;;  %14314 = vrcp.f32 %v10016_v0  ;;  %v10015_v54 = vadd.f32 1.0, %v14295_v24  ;;  %v9987_v12 = vmul.f32 1.442695, %v9928_v25  ;;  %v9898_v21 = vadd.f32 %v13445_v47, %v17454_v13  ;;  %v18275_v24 = vld [vmem:[#allocation38_spill] sm:$0xff] }
 0x736   : > { %v14297_v22 = vpop.eup %14296  ;;  %10170 = vst.msk [vmem:[%s17531_s28 + $0x68] sm:$0xff] %vm366_vm0, %v10138_v61  ;;  %v10137_v23 = vadd.f32 %v10105_v8, %v18267_v2  ;;  %14316 = vpow2.f32 %v9981_v4  ;;  %v9985_v43 = vmul.f32 1.442695, %v9927_v53  ;;  %v9897_v16 = vadd.f32 %v17454_v13, %v9812_v6  ;;  %v18276_v61 = vld [vmem:[#allocation25_spill] sm:$0xff] }
 0x737   : > { %v14299_v42 = vpop.eup %14298  ;;  %v3967_v14 = vadd.f32 %v17469_v49, %v18268_v30  ;;  %14318 = vrcp.f32 %v10015_v54  ;;  %v10018_v59 = vadd.f32 1.0, %v14297_v22  ;;  %v9930_v18 = vsub.f32 0.0, %v9898_v21  ;;  %v13448_v40 = vpop.f32.mrb[62].mxu0  ;;  %v18277_v21 = vld [vmem:[#allocation24_spill] sm:$0xff] }
 0x738   : > { %v14301_v45 = vpop.eup %14300  ;;  %10169 = vst.msk [vmem:[%s17531_s28 + $0x60] sm:$0xff] %vm366_vm0, %v10137_v23  ;;  %v10108_v44 = vmul.f32 %v14299_v42, %v17547_v28  ;;  %14320 = vpow2.f32 %v9987_v12  ;;  %v9929_v33 = vsub.f32 0.0, %v9897_v16  ;;  %v9900_v48 = vadd.f32 %v13448_v40, %v17454_v13  ;;  %v9822_v57 = vpop.f32.mrb[63].mxu0 }
 0x739   : > { %v14303_v35 = vpop.eup %14302  ;;  %v10107_v20 = vmul.f32 %v14301_v45, %v17560_v15  ;;  %14322 = vrcp.f32 %v10018_v59  ;;  %v9991_v1 = vmul.f32 1.442695, %v9930_v18  ;;  %v9899_v58 = vadd.f32 %v17454_v13, %v9822_v57  ;;  %v18280_v18 = vld [vmem:[#allocation27_spill] sm:$0xff] }
 0x73a   : > { %v14305_v29 = vpop.eup %14304  ;;  %v10140_v10 = vadd.f32 %v10108_v44, %v18269_v34  ;;  %v10017_v32 = vadd.f32 1.0, %v14303_v35  ;;  %14324 = vpow2.f32 %v9985_v43  ;;  %v9989_v28 = vmul.f32 1.442695, %v9929_v33  ;;  %v18278_v43 = vld [vmem:[#allocation40_spill] sm:$0xff] }
 0x73b   : > { %v14307_v3 = vpop.eup %14306  ;;  %v10139_v37 = vadd.f32 %v10107_v20, %v18270_v31  ;;  %v10020_v41 = vadd.f32 1.0, %v14305_v29  ;;  %14326 = vpow2.f32 %v9991_v1  ;;  %v9932_v26 = vsub.f32 0.0, %v9900_v48  ;;  %v18281_v20 = vld [vmem:[#allocation46_spill] sm:$0xff] }
 0x73c   : > { %v14309_v36 = vpop.eup %14308  ;;  %10172 = vst.msk [vmem:[%s17531_s28 + $0x78] sm:$0xff] %vm366_vm0, %v10140_v10  ;;  %v10110_v15 = vmul.f32 %v14307_v3, %v17586_v9  ;;  %14328 = vrcp.f32 %v10017_v32  ;;  %v9931_v13 = vsub.f32 0.0, %v9899_v58  ;;  %v3970_v56 = vadd.f32 %v17469_v49, %v18271_v51  ;;  %v18282_v58 = vld [vmem:[#allocation26_spill] sm:$0xff]  ;;  %v18283_v32 = vld [vmem:[#allocation47_spill] sm:$0xff]  ;;  %v18284_v3 = vld [vmem:[#allocation36_spill] sm:$0xff] }
 0x73d   : > { %v14311_v52 = vpop.eup %14310  ;;  %10171 = vst.msk [vmem:[%s17531_s28 + $0x70] sm:$0xff] %vm366_vm0, %v10139_v37  ;;  %v10109_v63 = vmul.f32 %v14309_v36, %v3967_v14  ;;  %14330 = vrcp.f32 %v10020_v41  ;;  %v9995_v17 = vmul.f32 1.442695, %v9932_v26  ;;  %v3969_v50 = vadd.f32 %v17469_v49, %v18274_v27  ;;  %v18279_v14 = vld [vmem:[#allocation45_spill] sm:$0xff] }
 0x73e   : > { %v14313_v46 = vpop.eup %14312  ;;  %v10142_v38 = vadd.f32 %v10110_v15, %v18272_v39  ;;  %v10019_v7 = vadd.f32 1.0, %v14311_v52  ;;  %14332 = vpow2.f32 %v9989_v28  ;;  %v9993_v19 = vmul.f32 1.442695, %v9931_v13  ;;  %v18285_v15 = vld [vmem:[#allocation48_spill] sm:$0xff] }
 0x73f   : > { %v14315_v9 = vpop.eup %14314  ;;  %v10141_v62 = vadd.f32 %v10109_v63, %v18273_v11  ;;  %v10022_v4 = vadd.f32 1.0, %v14313_v46  ;;  %14334 = vpow2.f32 %v9995_v17  ;;  %v3972_v55 = vadd.f32 %v17469_v49, %v18275_v24  ;;  %v18287_v46 = vld [vmem:[#allocation49_spill] sm:$0xff]  ;;  %v18289_v11 = vld [vmem:[#allocation50_spill] sm:$0xff] }
 0x740   : > { %v14317_v5 = vpop.eup %14316  ;;  %10174 = vst.msk [vmem:[%s17531_s28 + $0x88] sm:$0xff] %vm366_vm0, %v10142_v38  ;;  %v10112_v60 = vmul.f32 %v14315_v9, %v3970_v56  ;;  %14336 = vrcp.f32 %v10019_v7  ;;  %v3971_v16 = vadd.f32 %v17469_v49, %v18278_v43  ;;  %v3974_v59 = vadd.f32 %v17469_v49, %v18279_v14  ;;  %v18286_v56 = vld [vmem:[#allocation35_spill] sm:$0xff] }
 0x741   : > { %v14319_v0 = vpop.eup %14318  ;;  %10173 = vst.msk [vmem:[%s17531_s28 + $0x80] sm:$0xff] %vm366_vm0, %v10141_v62  ;;  %14338 = vrcp.f32 %v10022_v4  ;;  %v10021_v25 = vadd.f32 1.0, %v14317_v5  ;;  %v3973_v1 = vadd.f32 %v17469_v49, %v18281_v20  ;;  %v3976_v28 = vadd.f32 %v17469_v49, %v18283_v32  ;;  %v18288_v38 = vld [vmem:[#allocation39_spill] sm:$0xff]  ;;  %v18290_v4 = vld [vmem:[#allocation37_spill] sm:$0xff] }
 0x742   : > { %v14321_v47 = vpop.eup %14320  ;;  %v10144_v8 = vadd.f32 %v10112_v60, %v18276_v61  ;;  %v10111_v53 = vmul.f32 %v14319_v0, %v3969_v50  ;;  %14340 = vpow2.f32 %v9993_v19  ;;  %v3975_v13 = vadd.f32 %v17469_v49, %v18285_v15  ;;  %v18291_v60 = vld [vmem:[#allocation51_spill] sm:$0xff] }
 0x743   : > { %v14323_v6 = vpop.eup %14322  ;;  %14342 = vrcp.f32 %v10021_v25  ;;  %v10024_v54 = vadd.f32 1.0, %v14321_v47  ;;  %v3978_v39 = vadd.f32 %v17469_v49, %v18287_v46  ;;  %v3977_v62 = vadd.f32 %v17469_v49, %v18289_v11  ;;  %v18292_v47 = vld [vmem:[#allocation42_spill] sm:$0xff] }
 0x744   : > { %v14325_v12 = vpop.eup %14324  ;;  %10176 = vst.msk [vmem:[%s17531_s28 + $0x98] sm:$0xff] %vm366_vm0, %v10144_v8  ;;  %v10143_v22 = vadd.f32 %v10111_v53, %v18277_v21  ;;  %v10114_v2 = vmul.f32 %v14323_v6, %v3972_v55  ;;  %v3980_v0 = vadd.f32 %v17469_v49, %v18291_v60  ;;  %v18293_v8 = vld [vmem:[#allocation70_spill] sm:$0xff]  ;;  %v18294_v6 = vld [vmem:[#allocation41_spill] sm:$0xff]  ;;  %v18295_v21 = vld [vmem:[#allocation71_spill] sm:$0xff] }
 0x745   : > { %v14327_v23 = vpop.eup %14326  ;;  %14344 = vrcp.f32 %v10024_v54  ;;  %v10023_v42 = vadd.f32 1.0, %v14325_v12  ;;  %v3979_v53 = vadd.f32 %v17469_v49, %v18293_v8 }
 0x746   : > { %v14329_v30 = vpop.eup %14328  ;;  %10175 = vst.msk [vmem:[%s17531_s28 + $0x90] sm:$0xff] %vm366_vm0, %v10143_v22  ;;  %v10146_v40 = vadd.f32 %v10114_v2, %v18280_v18  ;;  %v10026_v45 = vadd.f32 1.0, %v14327_v23  ;;  %v3982_v22 = vadd.f32 %v17469_v49, %v18295_v21  ;;  %v18296_v2 = vld [vmem:[#allocation44_spill] sm:$0xff]  ;;  %v18298_v18 = vld [vmem:[#allocation55_spill] sm:$0xff]  ;;  %v18300_v49 = vld [vmem:[#allocation54_spill] sm:$0xff] }
 0x747   : > { %v14331_v44 = vpop.eup %14330  ;;  %v10113_v33 = vmul.f32 %v14329_v30, %v3971_v16  ;;  %14346 = vrcp.f32 %v10023_v42  ;;  %v18297_v30 = vld [vmem:[#allocation43_spill] sm:$0xff] }
 0x748   : > { %v14333_v48 = vpop.eup %14332  ;;  %10178 = vst.msk [vmem:[%s17531_s28 + $0xa8] sm:$0xff] %vm366_vm0, %v10146_v40  ;;  %v10116_v57 = vmul.f32 %v14331_v44, %v3974_v59  ;;  %14348 = vrcp.f32 %v10026_v45  ;;  %v18299_v45 = vld [vmem:[#allocation72_spill] sm:$0xff] }
 0x749   : > { %v14335_v35 = vpop.eup %14334  ;;  %v10145_v29 = vadd.f32 %v10113_v33, %v18282_v58  ;;  %v10025_v34 = vadd.f32 1.0, %v14333_v48 }
 0x74a   : > { %v14337_v10 = vpop.eup %14336  ;;  %v10148_v31 = vadd.f32 %v10116_v57, %v18284_v3  ;;  %v10028_v37 = vadd.f32 1.0, %v14335_v35 }
 0x74b   : > { %v14339_v41 = vpop.eup %14338  ;;  %10177 = vst.msk [vmem:[%s17531_s28 + $0xa0] sm:$0xff] %vm366_vm0, %v10145_v29  ;;  %v10115_v26 = vmul.f32 %v14337_v10, %v3973_v1  ;;  %14350 = vrcp.f32 %v10025_v34 }
 0x74c   : > { %v14341_v36 = vpop.eup %14340  ;;  %10180 = vst.msk [vmem:[%s17531_s28 + $0xb8] sm:$0xff] %vm366_vm0, %v10148_v31  ;;  %v10118_v52 = vmul.f32 %v14339_v41, %v3976_v28  ;;  %14352 = vrcp.f32 %v10028_v37 }
 0x74d   : > { %v14343_v51 = vpop.eup %14342  ;;  %v10147_v63 = vadd.f32 %v10115_v26, %v18286_v56  ;;  %v10027_v17 = vadd.f32 1.0, %v14341_v36 }
 0x74e   : > { %v10150_v7 = vadd.f32 %v10118_v52, %v18288_v38  ;;  %v10117_v19 = vmul.f32 %v14343_v51, %v3975_v13 }
 0x74f   : > { %v14345_v9 = vpop.eup %14344  ;;  %10179 = vst.msk [vmem:[%s17531_s28 + $0xb0] sm:$0xff] %vm366_vm0, %v10147_v63  ;;  %14354 = vrcp.f32 %v10027_v17 }
 0x750   : > { %10182 = vst.msk [vmem:[%s17531_s28 + $0xc8] sm:$0xff] %vm366_vm0, %v10150_v7  ;;  %v10149_v5 = vadd.f32 %v10117_v19, %v18290_v4  ;;  %v10120_v27 = vmul.f32 %v14345_v9, %v3978_v39 }
 0x751   : > { %v14347_v50 = vpop.eup %14346 }
 0x752   : > { %v14349_v25 = vpop.eup %14348  ;;  %10181 = vst.msk [vmem:[%s17531_s28 + $0xc0] sm:$0xff] %vm366_vm0, %v10149_v5  ;;  %v10152_v24 = vadd.f32 %v10120_v27, %v18292_v47  ;;  %v10119_v55 = vmul.f32 %v14347_v50, %v3977_v62 }
 0x753   : > { %v10122_v61 = vmul.f32 %v14349_v25, %v3980_v0 }
 0x754   : > { %10184 = vst.msk [vmem:[%s17531_s28 + $0xd8] sm:$0xff] %vm366_vm0, %v10152_v24  ;;  %v10151_v54 = vadd.f32 %v10119_v55, %v18294_v6 }
 0x755   : > { %v14351_v12 = vpop.eup %14350  ;;  %v10154_v23 = vadd.f32 %v10122_v61, %v18296_v2 }
 0x756   : > { %v14353_v43 = vpop.eup %14352  ;;  %10183 = vst.msk [vmem:[%s17531_s28 + $0xd0] sm:$0xff] %vm366_vm0, %v10151_v54  ;;  %v10121_v16 = vmul.f32 %v14351_v12, %v3979_v53 }
 0x757   : > { %10186 = vst.msk [vmem:[%s17531_s28 + $0xe8] sm:$0xff] %vm366_vm0, %v10154_v23  ;;  %v10124_v42 = vmul.f32 %v14353_v43, %v3982_v22 }
 0x758   : > { %v10153_v14 = vadd.f32 %v10121_v16, %v18297_v30 }
 0x759   : > { %v14355_v59 = vpop.eup %14354  ;;  %v10156_v40 = vadd.f32 %v10124_v42, %v18298_v18 }
 0x75a   : > { %10185 = vst.msk [vmem:[%s17531_s28 + $0xe0] sm:$0xff] %vm366_vm0, %v10153_v14  ;;  %v10123_v44 = vmul.f32 %v14355_v59, %v18299_v45 }
 0x75b   : > { %10188 = vst.msk [vmem:[%s17531_s28 + $0xf8] sm:$0xff] %vm366_vm0, %v10156_v40 }
 0x75c   : > { %v10155_v33 = vadd.f32 %v10123_v44, %v18300_v49 }
 0x75e   : > { %10187 = vst.msk [vmem:[%s17531_s28 + $0xf0] sm:$0xff] %vm366_vm0, %v10155_v33 }
 0x75f PF: > { %s20_s30 = sadd.s32 1, %s14453_s30  }
 0x760   : > { %p17_p4 = scmp.ge.s32.totalorder %s20_s30, 4  }
 0x762   :  { %19 = sbr.rel (!%p17_p4) target bundleno = 1 (0x1), region = 127 }

</bundles_post_ra>
